<compile_context>
chip_gen: v5e
topology: v5e:2x2
jax: 0.10.0
libtpu: 0.0.40
codegen_flags: <defaults>
</compile_context>

<pallas_src>
import functools
import math

import jax
import jax.numpy as jnp
from jax.experimental import pallas as pl
from jax.experimental.pallas import tpu as pltpu

_MIB = 1 << 20


def _pick_tile(total: int, cap: int, multiple: int) -> int:
    """Largest divisor of `total` that is <= cap and a multiple of `multiple`
    (or equal to `total`); falls back to the smallest legal divisor."""
    best = None
    for d in range(1, total + 1):
        if total % d:
            continue
        legal = (d % multiple == 0) or (d == total)
        if legal and d <= cap:
            best = d
    if best is None:
        for d in range(1, total + 1):
            if total % d == 0 and ((d % multiple == 0) or (d == total)):
                best = d
                break
    return best


def _vmem_limit(nbytes: int) -> int:
    # Generous headroom; cap at 64 MiB so the hint is valid on every
    # generation (v7x physical VMEM = 64 MiB; v5e/v6e = 128 MiB).
    return int(min(64 * _MIB, max(16 * _MIB, int(nbytes * 1.5))))


def _refined_reciprocal(d):
    # EUP approx reciprocal + one Newton step -> rows sum to 1 to ~f32 acc.
    r = pl.reciprocal(d, approx=True)
    return r * (2.0 - d * r)


# ---------------------------------------------------------------------------
# Kernel 1: GRU recurrence.  grid = (batch tiles, time tiles).
# ---------------------------------------------------------------------------
def _gru_recurrence_kernel(gi_ref, whh_ref, bhhn_ref, h_out_ref, h_scratch,
                           *, hidden: int, t_block: int):
    H = hidden

    @pl.when(pl.program_id(1) == 0)
    def _():
        # forward() starts with rnn_state = None -> zero initial hidden state.
        h_scratch[...] = jnp.zeros_like(h_scratch)

    h = h_scratch[...]          # (Bb, H) f32 recurrent state
    whh = whh_ref[...]          # (H, 3H) bf16  (at large H, stream per step
    bhn = bhhn_ref[...]         # (1, H)  f32    instead of hoisting)

    hs = []
    for i in range(t_block):    # strictly serial; unroll amortizes overhead
        g = gi_ref[:, i, :]     # (Bb, 3H) f32: x@W_ih + b_ih (+ b_hh for r,z)
        gh = jnp.dot(h.astype(jnp.bfloat16), whh,
                     preferred_element_type=jnp.float32)      # (Bb, 3H) f32
        # PyTorch GRU gate ordering: r, z, n.
        r = jax.nn.sigmoid(g[:, 0:H] + gh[:, 0:H])
        z = jax.nn.sigmoid(g[:, H:2 * H] + gh[:, H:2 * H])
        n = jnp.tanh(g[:, 2 * H:3 * H] + r * (gh[:, 2 * H:3 * H] + bhn))
        h = (1.0 - z) * n + z * h
        hs.append(h)

    # One dense (unmasked) tile store instead of t_block masked row stores.
    h_out_ref[...] = jnp.stack(hs, axis=1).astype(h_out_ref.dtype)
    h_scratch[...] = h          # carry to the next time tile


# ---------------------------------------------------------------------------
# Kernel 2a: projection + softmax, W_out fully resident (single pass).
# ---------------------------------------------------------------------------
def _proj_softmax_resident_kernel(h_ref, wout_ref, bout_ref, out_ref,
                                  *, log_probs: bool):
    logits = jnp.dot(h_ref[...], wout_ref[...],
                     preferred_element_type=jnp.float32) + bout_ref[...]
    m = jnp.max(logits, axis=-1, keepdims=True)
    shifted = logits - m
    e = jnp.exp(shifted)
    denom = jnp.sum(e, axis=-1, keepdims=True)
    if log_probs:
        out = shifted - jnp.log(denom)
    else:
        out = e * _refined_reciprocal(denom)
    out_ref[...] = out.astype(out_ref.dtype)


# ---------------------------------------------------------------------------
# Kernel 2b: V-tiled two-pass online softmax.  grid = (row tiles, 2, V tiles).
# ---------------------------------------------------------------------------
def _proj_softmax_vtiled_kernel(h_ref, wout_ref, bout_ref, out_ref,
                                m_sc, l_sc, *, log_probs: bool):
    p = pl.program_id(1)
    v = pl.program_id(2)

    logits = jnp.dot(h_ref[...], wout_ref[...],
                     preferred_element_type=jnp.float32) + bout_ref[...]

    @pl.when(jnp.logical_and(p == 0, v == 0))
    def _():
        m_sc[...] = jnp.full_like(m_sc, -jnp.inf)
        l_sc[...] = jnp.zeros_like(l_sc)

    @pl.when(p == 0)            # stats pass: running max / denominator
    def _():
        m_prev = m_sc[...]
        m_new = jnp.maximum(m_prev, jnp.max(logits, axis=-1, keepdims=True))
        l_sc[...] = (l_sc[...] * jnp.exp(m_prev - m_new)
                     + jnp.sum(jnp.exp(logits - m_new), axis=-1, keepdims=True))
        m_sc[...] = m_new

    @pl.when(p == 1)            # write pass: normalized probabilities
    def _():
        shifted = logits - m_sc[...]
        if log_probs:
            out = shifted - jnp.log(l_sc[...])
        else:
            out = jnp.exp(shifted) * _refined_reciprocal(l_sc[...])
        out_ref[...] = out.astype(out_ref.dtype)


# ---------------------------------------------------------------------------
# Wrapper: Pallas equivalent of RnnLmWrapper.forward.
# ---------------------------------------------------------------------------
def rnn_lm_wrapper_forward(y_seqs, params, *, gen_probs: bool = True,
                           log_probs: bool = False, t_block: int = 16,
                           b_block=None, row_block: int = 512,
                           v_block=None, out_dtype=jnp.float32):
    """y_seqs: int32 [B, T] token ids -> [B, T, V] (log-)probs."""
    assert gen_probs
    emb, w_ih, w_hh, b_ih, b_hh, w_out, b_out = params
    B, T = y_seqs.shape
    V, D = emb.shape
    H = w_hh.shape[0]

    t_block = _pick_tile(T, min(t_block, T), 8)
    b_block = B if b_block is None else math.gcd(int(b_block), B)

    # --- hoisted input projection: one big bf16 MXU matmul (XLA glue) -------
    x = emb[y_seqs].astype(jnp.bfloat16)                          # [B, T, D]
    gi = jnp.dot(x.reshape(B * T, D), w_ih.astype(jnp.bfloat16),
                 preferred_element_type=jnp.float32) + b_ih       # [B*T, 3H]
    # Fold hidden biases of r/z gates; the n gate keeps b_hh_n separate
    # because of the r * (W_hn h + b_hn) term.
    bh_rz = jnp.concatenate(
        [b_hh[:, :2 * H], jnp.zeros((1, H), b_hh.dtype)], axis=-1)
    gi = (gi + bh_rz).reshape(B, T, 3 * H)                        # batch-major
    b_hh_n = b_hh[:, 2 * H:]                                      # (1, H)

    whh_bf16 = w_hh.astype(jnp.bfloat16)
    wout_bf16 = w_out.astype(jnp.bfloat16)

    # --- kernel 1: sequential recurrence ------------------------------------
    nb, nt = B // b_block, T // t_block
    k1_bytes = (2 * b_block * t_block * 3 * H * 4          # gi tiles (x2 buf)
                + H * 3 * H * 2 + H * 4                    # W_hh + b_hh_n (x1)
                + 2 * b_block * t_block * H * 2            # h_out tiles
                + b_block * H * 4)                         # h scratch
    rec_kernel = functools.partial(_gru_recurrence_kernel,
                                   hidden=H, t_block=t_block)
    h_all = pl.pallas_call(
        rec_kernel,
        out_shape=jax.ShapeDtypeStruct((B, T, H), jnp.bfloat16),
        grid_spec=pltpu.PrefetchScalarGridSpec(
            num_scalar_prefetch=0,
            grid=(nb, nt),
            in_specs=[
                pl.BlockSpec((b_block, t_block, 3 * H), lambda b, t: (b, t, 0)),
                pl.BlockSpec((H, 3 * H), lambda b, t: (0, 0),
                             pipeline_mode=pl.Buffered(1)),      # invariant
                pl.BlockSpec((1, H), lambda b, t: (0, 0),
                             pipeline_mode=pl.Buffered(1)),      # invariant
            ],
            out_specs=pl.BlockSpec((b_block, t_block, H),
                                   lambda b, t: (b, t, 0)),
            scratch_shapes=[pltpu.VMEM((b_block, H), jnp.float32)],
        ),
        compiler_params=pltpu.CompilerParams(
            dimension_semantics=("parallel", "arbitrary"),
            vmem_limit_bytes=_vmem_limit(k1_bytes)),
        cost_estimate=pl.CostEstimate(
            flops=2 * B * T * H * 3 * H,
            transcendentals=3 * B * T * H,
            bytes_accessed=B * T * 3 * H * 4 + B * T * H * 2 + H * 3 * H * 2),
    )(gi, whh_bf16, b_hh_n)

    # --- kernel 2: vocab projection + softmax over flat rows ----------------
    N = B * T
    h_flat = h_all.reshape(N, H)                                  # free reshape
    row_tile = _pick_tile(N, min(row_block, N), 8)
    nr = N // row_tile

    budget = 24 * _MIB      # v7x-safe (32 MiB default scoped VMEM)
    resident_bytes = (H * V * 2 + V * 4
                      + 2 * row_tile * H * 2
                      + 2 * row_tile * V * 4)
    use_vtiled = (v_block is not None) or (resident_bytes > budget)

    if not use_vtiled:
        proj_kernel = functools.partial(_proj_softmax_resident_kernel,
                                        log_probs=log_probs)
        probs = pl.pallas_call(
            proj_kernel,
            out_shape=jax.ShapeDtypeStruct((N, V), out_dtype),
            grid_spec=pltpu.PrefetchScalarGridSpec(
                num_scalar_prefetch=0,
                grid=(nr,),
                in_specs=[
                    pl.BlockSpec((row_tile, H), lambda r: (r, 0)),
                    pl.BlockSpec((H, V), lambda r: (0, 0),
                                 pipeline_mode=pl.Buffered(1)),   # invariant
                    pl.BlockSpec((1, V), lambda r: (0, 0),
                                 pipeline_mode=pl.Buffered(1)),   # invariant
                ],
                out_specs=pl.BlockSpec((row_tile, V), lambda r: (r, 0)),
            ),
            compiler_params=pltpu.CompilerParams(
                dimension_semantics=("parallel",),
                vmem_limit_bytes=_vmem_limit(resident_bytes)),
            cost_estimate=pl.CostEstimate(
                flops=2 * N * H * V,
                transcendentals=N * V,
                bytes_accessed=N * H * 2 + H * V * 2 + N * V * 4),
        )(h_flat, wout_bf16, b_out)
    else:
        v_tile = _pick_tile(V, min(v_block or V, V), 128)
        nv = V // v_tile
        vtiled_bytes = (2 * H * v_tile * 2 + 2 * v_tile * 4
                        + 2 * row_tile * H * 2
                        + 2 * row_tile * v_tile * 4
                        + 2 * row_tile * 128 * 4)
        proj_kernel = functools.partial(_proj_softmax_vtiled_kernel,
                                        log_probs=log_probs)
        probs = pl.pallas_call(
            proj_kernel,
            out_shape=jax.ShapeDtypeStruct((N, V), out_dtype),
            grid_spec=pltpu.PrefetchScalarGridSpec(
                num_scalar_prefetch=0,
                grid=(nr, 2, nv),
                in_specs=[
                    pl.BlockSpec((row_tile, H), lambda r, p, v: (r, 0)),
                    pl.BlockSpec((H, v_tile), lambda r, p, v: (0, v)),
                    pl.BlockSpec((1, v_tile), lambda r, p, v: (0, v)),
                ],
                # During the stats pass (p==0) nothing is written; keeping the
                # output block index pinned at (r, 0) means every HBM output
                # block is written back exactly once, with pass-1 values.
                out_specs=pl.BlockSpec((row_tile, v_tile),
                                       lambda r, p, v: (r, v * p)),
                scratch_shapes=[pltpu.VMEM((row_tile, 1), jnp.float32),
                                pltpu.VMEM((row_tile, 1), jnp.float32)],
            ),
            compiler_params=pltpu.CompilerParams(
                dimension_semantics=("parallel", "arbitrary", "arbitrary"),
                vmem_limit_bytes=_vmem_limit(vtiled_bytes)),
            cost_estimate=pl.CostEstimate(
                flops=2 * 2 * N * H * V,
                transcendentals=2 * N * V,
                bytes_accessed=2 * nr * H * V * 2 + N * H * 2 + N * V * 4),
        )(h_flat, wout_bf16, b_out)

    return probs.reshape(B, T, V)


# ---------------------------------------------------------------------------
# Pure-JAX reference (f32, lax.scan over time) for correctness check.
# ---------------------------------------------------------------------------
def _reference_forward(y_seqs, params, *, log_probs=False):
    emb, w_ih, w_hh, b_ih, b_hh, w_out, b_out = params
    B, T = y_seqs.shape
    H = w_hh.shape[0]
    x = emb[y_seqs].astype(jnp.float32)

    def step(h, xt):
        gi = xt @ w_ih + b_ih
        gh = h @ w_hh + b_hh
        i_r, i_z, i_n = jnp.split(gi, 3, axis=-1)
        h_r, h_z, h_n = jnp.split(gh, 3, axis=-1)
        r = jax.nn.sigmoid(i_r + h_r)
        z = jax.nn.sigmoid(i_z + h_z)
        n = jnp.tanh(i_n + r * h_n)
        h_new = (1.0 - z) * n + z * h
        logits = h_new @ w_out + b_out
        p = jax.nn.log_softmax(logits, -1) if log_probs else jax.nn.softmax(logits, -1)
        return h_new, p

    h0 = jnp.zeros((B, H), jnp.float32)
    _, probs = jax.lax.scan(step, h0, jnp.transpose(x, (1, 0, 2)))
    return jnp.transpose(probs, (1, 0, 2))


def make_params(key, vocab, emb_dim, hidden):
    ks = jax.random.split(key, 7)
    s = 0.1
    emb = s * jax.random.normal(ks[0], (vocab, emb_dim), jnp.float32)
    w_ih = s * jax.random.normal(ks[1], (emb_dim, 3 * hidden), jnp.float32)
    w_hh = s * jax.random.normal(ks[2], (hidden, 3 * hidden), jnp.float32)
    b_ih = s * jax.random.normal(ks[3], (1, 3 * hidden), jnp.float32)
    b_hh = s * jax.random.normal(ks[4], (1, 3 * hidden), jnp.float32)
    w_out = s * jax.random.normal(ks[5], (hidden, vocab), jnp.float32)
    b_out = s * jax.random.normal(ks[6], (1, vocab), jnp.float32)
    return emb, w_ih, w_hh, b_ih, b_hh, w_out, b_out


if __name__ == "__main__":
    root = jax.random.PRNGKey(0)
    ka_p, ka_t, kb_p, kb_t = jax.random.split(root, 4)

    # ---- config A: V fits resident -> single-pass projection kernel --------
    B, T, V, D, H = 4, 16, 128, 64, 128
    params = make_params(ka_p, V, D, H)
    y_seqs = jax.random.randint(ka_t, (B, T), 0, V, dtype=jnp.int32)

    fwd = jax.jit(functools.partial(rnn_lm_wrapper_forward, gen_probs=True,
                                    log_probs=False, t_block=8))
    out = jax.block_until_ready(fwd(y_seqs, params))
    ref = _reference_forward(y_seqs, params, log_probs=False)
    assert out.shape == (B, T, V), out.shape
    err_a = float(jnp.max(jnp.abs(out - ref)))
    assert err_a < 3e-3, err_a
    assert bool(jnp.all(jnp.abs(out.sum(-1) - 1.0) < 1e-3))

    # ---- config B: exercise the batch grid axis (v7x megacore split) and
    #      the V-tiled two-pass online-softmax projection path. --------------
    B2, T2, V2, D2, H2 = 4, 32, 256, 64, 128
    params2 = make_params(kb_p, V2, D2, H2)
    y2 = jax.random.randint(kb_t, (B2, T2), 0, V2, dtype=jnp.int32)
    fwd2 = jax.jit(functools.partial(rnn_lm_wrapper_forward, gen_probs=True,
                                     log_probs=False, t_block=8, b_block=2,
                                     row_block=64, v_block=128))
    out2 = jax.block_until_ready(fwd2(y2, params2))
    ref2 = _reference_forward(y2, params2, log_probs=False)
    assert out2.shape == (B2, T2, V2), out2.shape
    err_b = float(jnp.max(jnp.abs(out2 - ref2)))
    assert err_b < 3e-3, err_b
    assert bool(jnp.all(jnp.abs(out2.sum(-1) - 1.0) < 1e-3))

    print("KERNEL_OK")
</pallas_src>

<mosaic_0001>
module attributes {stable_mosaic.version = 11 : i64} {
  func.func @_gru_recurrence_kernel(%arg0: i32, %arg1: i32, %arg2: memref<4x8x384xf32, #tpu.memory_space<vmem>>, %arg3: memref<128x384xbf16, #tpu.memory_space<vmem>>, %arg4: memref<1x128xf32, #tpu.memory_space<vmem>>, %arg5: memref<4x8x128xbf16, #tpu.memory_space<vmem>>, %arg6: memref<4x128xf32, #tpu.memory_space<vmem>>) attributes {dimension_semantics = [#tpu.dimension_semantics<parallel>, #tpu.dimension_semantics<arbitrary>], iteration_bounds = array<i64: 1, 2>, scalar_prefetch = 0 : i64, scratch_operands = 1 : i64, tpu.core_type = #tpu.core_type<tc>, window_params = [{transform_indices = @transform_0, window_bounds = array<i64: 4, 8, 384>}, {pipeline_mode = #tpu.pipeline_mode<synchronous>, transform_indices = @transform_1, window_bounds = array<i64: 128, 384>}, {pipeline_mode = #tpu.pipeline_mode<synchronous>, transform_indices = @transform_2, window_bounds = array<i64: 1, 128>}, {transform_indices = @transform_3, window_bounds = array<i64: 4, 8, 128>}]} {
    %c0_i32 = arith.constant 0 : i32
    %0 = arith.cmpi eq, %arg1, %c0_i32 : i32
    %1 = arith.extui %0 : i1 to i32
    %c0_i32_0 = arith.constant 0 : i32
    %2 = arith.cmpi ne, %1, %c0_i32_0 : i32
    scf.if %2 {
      %cst_59 = arith.constant 0.000000e+00 : f32
      %274 = vector.broadcast %cst_59 : f32 to vector<4x128xf32>
      %c0_60 = arith.constant 0 : index
      %c0_61 = arith.constant 0 : index
      %275 = vector.load %arg6[%c0_60, %c0_61] : memref<4x128xf32, #tpu.memory_space<vmem>>, vector<4x128xf32>
      tpu.vector_store %arg6[%c0_60, %c0_61], %274 {strides = array<i32>} : memref<4x128xf32, #tpu.memory_space<vmem>>, vector<4x128xf32>,
    } else {
    }
    %c0 = arith.constant 0 : index
    %c0_1 = arith.constant 0 : index
    %3 = vector.load %arg6[%c0, %c0_1] : memref<4x128xf32, #tpu.memory_space<vmem>>, vector<4x128xf32>
    %c0_2 = arith.constant 0 : index
    %c0_3 = arith.constant 0 : index
    %4 = vector.load %arg3[%c0_2, %c0_3] : memref<128x384xbf16, #tpu.memory_space<vmem>>, vector<128x384xbf16>
    %c0_4 = arith.constant 0 : index
    %c0_5 = arith.constant 0 : index
    %5 = vector.load %arg4[%c0_4, %c0_5] : memref<1x128xf32, #tpu.memory_space<vmem>>, vector<1x128xf32>
    %c0_6 = arith.constant 0 : index
    %c0_7 = arith.constant 0 : index
    %c0_8 = arith.constant 0 : index
    %6 = vector.load %arg2[%c0_6, %c0_7, %c0_8] : memref<4x8x384xf32, #tpu.memory_space<vmem>>, vector<4x1x384xf32>
    %7 = vector.shape_cast %6 : vector<4x1x384xf32> to vector<4x384xf32>
    %8 = arith.truncf %3 : vector<4x128xf32> to vector<4x128xbf16>
    %cst = arith.constant dense<0.000000e+00> : vector<4x384xf32>
    %9 = tpu.matmul %8, %4, %cst {dimension_numbers = #tpu.dot_dimension_numbers<[1], [0], [0], [1], [0, 0, 1, 1], [], []>} : vector<4x128xbf16>, vector<128x384xbf16>, vector<4x384xf32> -> vector<4x384xf32>
    %10 = vector.extract_strided_slice %7 {offsets = [0, 0], sizes = [4, 128], strides = [1, 1]} : vector<4x384xf32> to vector<4x128xf32>
    %11 = vector.extract_strided_slice %9 {offsets = [0, 0], sizes = [4, 128], strides = [1, 1]} : vector<4x384xf32> to vector<4x128xf32>
    %12 = arith.addf %10, %11 : vector<4x128xf32>
    %13 = arith.negf %12 : vector<4x128xf32>
    %14 = math.exp %13 : vector<4x128xf32>
    %cst_9 = arith.constant 1.000000e+00 : f32
    %15 = vector.broadcast %cst_9 : f32 to vector<4x128xf32>
    %16 = arith.addf %15, %14 : vector<4x128xf32>
    %17 = arith.divf %15, %16 : vector<4x128xf32>
    %18 = vector.extract_strided_slice %7 {offsets = [0, 128], sizes = [4, 128], strides = [1, 1]} : vector<4x384xf32> to vector<4x128xf32>
    %19 = vector.extract_strided_slice %9 {offsets = [0, 128], sizes = [4, 128], strides = [1, 1]} : vector<4x384xf32> to vector<4x128xf32>
    %20 = arith.addf %18, %19 : vector<4x128xf32>
    %21 = arith.negf %20 : vector<4x128xf32>
    %22 = math.exp %21 : vector<4x128xf32>
    %cst_10 = arith.constant 1.000000e+00 : f32
    %23 = vector.broadcast %cst_10 : f32 to vector<4x128xf32>
    %24 = arith.addf %23, %22 : vector<4x128xf32>
    %25 = arith.divf %23, %24 : vector<4x128xf32>
    %26 = vector.extract_strided_slice %7 {offsets = [0, 256], sizes = [4, 128], strides = [1, 1]} : vector<4x384xf32> to vector<4x128xf32>
    %27 = vector.extract_strided_slice %9 {offsets = [0, 256], sizes = [4, 128], strides = [1, 1]} : vector<4x384xf32> to vector<4x128xf32>
    %28 = vector.broadcast %5 : vector<1x128xf32> to vector<4x128xf32>
    %29 = arith.addf %27, %28 : vector<4x128xf32>
    %30 = arith.mulf %17, %29 : vector<4x128xf32>
    %31 = arith.addf %26, %30 : vector<4x128xf32>
    %32 = math.tanh %31 : vector<4x128xf32>
    %cst_11 = arith.constant 1.000000e+00 : f32
    %33 = vector.broadcast %cst_11 : f32 to vector<4x128xf32>
    %34 = arith.subf %33, %25 : vector<4x128xf32>
    %35 = arith.mulf %34, %32 : vector<4x128xf32>
    %36 = arith.mulf %25, %3 : vector<4x128xf32>
    %37 = arith.addf %35, %36 : vector<4x128xf32>
    %c0_12 = arith.constant 0 : index
    %c1 = arith.constant 1 : index
    %c0_13 = arith.constant 0 : index
    %38 = vector.load %arg2[%c0_12, %c1, %c0_13] : memref<4x8x384xf32, #tpu.memory_space<vmem>>, vector<4x1x384xf32>
    %39 = vector.shape_cast %38 : vector<4x1x384xf32> to vector<4x384xf32>
    %40 = arith.truncf %37 : vector<4x128xf32> to vector<4x128xbf16>
    %cst_14 = arith.constant dense<0.000000e+00> : vector<4x384xf32>
    %41 = tpu.matmul %40, %4, %cst_14 {dimension_numbers = #tpu.dot_dimension_numbers<[1], [0], [0], [1], [0, 0, 1, 1], [], []>} : vector<4x128xbf16>, vector<128x384xbf16>, vector<4x384xf32> -> vector<4x384xf32>
    %42 = vector.extract_strided_slice %39 {offsets = [0, 0], sizes = [4, 128], strides = [1, 1]} : vector<4x384xf32> to vector<4x128xf32>
    %43 = vector.extract_strided_slice %41 {offsets = [0, 0], sizes = [4, 128], strides = [1, 1]} : vector<4x384xf32> to vector<4x128xf32>
    %44 = arith.addf %42, %43 : vector<4x128xf32>
    %45 = arith.negf %44 : vector<4x128xf32>
    %46 = math.exp %45 : vector<4x128xf32>
    %cst_15 = arith.constant 1.000000e+00 : f32
    %47 = vector.broadcast %cst_15 : f32 to vector<4x128xf32>
    %48 = arith.addf %47, %46 : vector<4x128xf32>
    %49 = arith.divf %47, %48 : vector<4x128xf32>
    %50 = vector.extract_strided_slice %39 {offsets = [0, 128], sizes = [4, 128], strides = [1, 1]} : vector<4x384xf32> to vector<4x128xf32>
    %51 = vector.extract_strided_slice %41 {offsets = [0, 128], sizes = [4, 128], strides = [1, 1]} : vector<4x384xf32> to vector<4x128xf32>
    %52 = arith.addf %50, %51 : vector<4x128xf32>
    %53 = arith.negf %52 : vector<4x128xf32>
    %54 = math.exp %53 : vector<4x128xf32>
    %cst_16 = arith.constant 1.000000e+00 : f32
    %55 = vector.broadcast %cst_16 : f32 to vector<4x128xf32>
    %56 = arith.addf %55, %54 : vector<4x128xf32>
    %57 = arith.divf %55, %56 : vector<4x128xf32>
    %58 = vector.extract_strided_slice %39 {offsets = [0, 256], sizes = [4, 128], strides = [1, 1]} : vector<4x384xf32> to vector<4x128xf32>
    %59 = vector.extract_strided_slice %41 {offsets = [0, 256], sizes = [4, 128], strides = [1, 1]} : vector<4x384xf32> to vector<4x128xf32>
    %60 = vector.broadcast %5 : vector<1x128xf32> to vector<4x128xf32>
    %61 = arith.addf %59, %60 : vector<4x128xf32>
    %62 = arith.mulf %49, %61 : vector<4x128xf32>
    %63 = arith.addf %58, %62 : vector<4x128xf32>
    %64 = math.tanh %63 : vector<4x128xf32>
    %cst_17 = arith.constant 1.000000e+00 : f32
    %65 = vector.broadcast %cst_17 : f32 to vector<4x128xf32>
    %66 = arith.subf %65, %57 : vector<4x128xf32>
    %67 = arith.mulf %66, %64 : vector<4x128xf32>
    %68 = arith.mulf %57, %37 : vector<4x128xf32>
    %69 = arith.addf %67, %68 : vector<4x128xf32>
    %c0_18 = arith.constant 0 : index
    %c2 = arith.constant 2 : index
    %c0_19 = arith.constant 0 : index
    %70 = vector.load %arg2[%c0_18, %c2, %c0_19] : memref<4x8x384xf32, #tpu.memory_space<vmem>>, vector<4x1x384xf32>
    %71 = vector.shape_cast %70 : vector<4x1x384xf32> to vector<4x384xf32>
    %72 = arith.truncf %69 : vector<4x128xf32> to vector<4x128xbf16>
    %cst_20 = arith.constant dense<0.000000e+00> : vector<4x384xf32>
    %73 = tpu.matmul %72, %4, %cst_20 {dimension_numbers = #tpu.dot_dimension_numbers<[1], [0], [0], [1], [0, 0, 1, 1], [], []>} : vector<4x128xbf16>, vector<128x384xbf16>, vector<4x384xf32> -> vector<4x384xf32>
    %74 = vector.extract_strided_slice %71 {offsets = [0, 0], sizes = [4, 128], strides = [1, 1]} : vector<4x384xf32> to vector<4x128xf32>
    %75 = vector.extract_strided_slice %73 {offsets = [0, 0], sizes = [4, 128], strides = [1, 1]} : vector<4x384xf32> to vector<4x128xf32>
    %76 = arith.addf %74, %75 : vector<4x128xf32>
    %77 = arith.negf %76 : vector<4x128xf32>
    %78 = math.exp %77 : vector<4x128xf32>
    %cst_21 = arith.constant 1.000000e+00 : f32
    %79 = vector.broadcast %cst_21 : f32 to vector<4x128xf32>
    %80 = arith.addf %79, %78 : vector<4x128xf32>
    %81 = arith.divf %79, %80 : vector<4x128xf32>
    %82 = vector.extract_strided_slice %71 {offsets = [0, 128], sizes = [4, 128], strides = [1, 1]} : vector<4x384xf32> to vector<4x128xf32>
    %83 = vector.extract_strided_slice %73 {offsets = [0, 128], sizes = [4, 128], strides = [1, 1]} : vector<4x384xf32> to vector<4x128xf32>
    %84 = arith.addf %82, %83 : vector<4x128xf32>
    %85 = arith.negf %84 : vector<4x128xf32>
    %86 = math.exp %85 : vector<4x128xf32>
    %cst_22 = arith.constant 1.000000e+00 : f32
    %87 = vector.broadcast %cst_22 : f32 to vector<4x128xf32>
    %88 = arith.addf %87, %86 : vector<4x128xf32>
    %89 = arith.divf %87, %88 : vector<4x128xf32>
    %90 = vector.extract_strided_slice %71 {offsets = [0, 256], sizes = [4, 128], strides = [1, 1]} : vector<4x384xf32> to vector<4x128xf32>
    %91 = vector.extract_strided_slice %73 {offsets = [0, 256], sizes = [4, 128], strides = [1, 1]} : vector<4x384xf32> to vector<4x128xf32>
    %92 = vector.broadcast %5 : vector<1x128xf32> to vector<4x128xf32>
    %93 = arith.addf %91, %92 : vector<4x128xf32>
    %94 = arith.mulf %81, %93 : vector<4x128xf32>
    %95 = arith.addf %90, %94 : vector<4x128xf32>
    %96 = math.tanh %95 : vector<4x128xf32>
    %cst_23 = arith.constant 1.000000e+00 : f32
    %97 = vector.broadcast %cst_23 : f32 to vector<4x128xf32>
    %98 = arith.subf %97, %89 : vector<4x128xf32>
    %99 = arith.mulf %98, %96 : vector<4x128xf32>
    %100 = arith.mulf %89, %69 : vector<4x128xf32>
    %101 = arith.addf %99, %100 : vector<4x128xf32>
    %c0_24 = arith.constant 0 : index
    %c3 = arith.constant 3 : index
    %c0_25 = arith.constant 0 : index
    %102 = vector.load %arg2[%c0_24, %c3, %c0_25] : memref<4x8x384xf32, #tpu.memory_space<vmem>>, vector<4x1x384xf32>
    %103 = vector.shape_cast %102 : vector<4x1x384xf32> to vector<4x384xf32>
    %104 = arith.truncf %101 : vector<4x128xf32> to vector<4x128xbf16>
    %cst_26 = arith.constant dense<0.000000e+00> : vector<4x384xf32>
    %105 = tpu.matmul %104, %4, %cst_26 {dimension_numbers = #tpu.dot_dimension_numbers<[1], [0], [0], [1], [0, 0, 1, 1], [], []>} : vector<4x128xbf16>, vector<128x384xbf16>, vector<4x384xf32> -> vector<4x384xf32>
    %106 = vector.extract_strided_slice %103 {offsets = [0, 0], sizes = [4, 128], strides = [1, 1]} : vector<4x384xf32> to vector<4x128xf32>
    %107 = vector.extract_strided_slice %105 {offsets = [0, 0], sizes = [4, 128], strides = [1, 1]} : vector<4x384xf32> to vector<4x128xf32>
    %108 = arith.addf %106, %107 : vector<4x128xf32>
    %109 = arith.negf %108 : vector<4x128xf32>
    %110 = math.exp %109 : vector<4x128xf32>
    %cst_27 = arith.constant 1.000000e+00 : f32
    %111 = vector.broadcast %cst_27 : f32 to vector<4x128xf32>
    %112 = arith.addf %111, %110 : vector<4x128xf32>
    %113 = arith.divf %111, %112 : vector<4x128xf32>
    %114 = vector.extract_strided_slice %103 {offsets = [0, 128], sizes = [4, 128], strides = [1, 1]} : vector<4x384xf32> to vector<4x128xf32>
    %115 = vector.extract_strided_slice %105 {offsets = [0, 128], sizes = [4, 128], strides = [1, 1]} : vector<4x384xf32> to vector<4x128xf32>
    %116 = arith.addf %114, %115 : vector<4x128xf32>
    %117 = arith.negf %116 : vector<4x128xf32>
    %118 = math.exp %117 : vector<4x128xf32>
    %cst_28 = arith.constant 1.000000e+00 : f32
    %119 = vector.broadcast %cst_28 : f32 to vector<4x128xf32>
    %120 = arith.addf %119, %118 : vector<4x128xf32>
    %121 = arith.divf %119, %120 : vector<4x128xf32>
    %122 = vector.extract_strided_slice %103 {offsets = [0, 256], sizes = [4, 128], strides = [1, 1]} : vector<4x384xf32> to vector<4x128xf32>
    %123 = vector.extract_strided_slice %105 {offsets = [0, 256], sizes = [4, 128], strides = [1, 1]} : vector<4x384xf32> to vector<4x128xf32>
    %124 = vector.broadcast %5 : vector<1x128xf32> to vector<4x128xf32>
    %125 = arith.addf %123, %124 : vector<4x128xf32>
    %126 = arith.mulf %113, %125 : vector<4x128xf32>
    %127 = arith.addf %122, %126 : vector<4x128xf32>
    %128 = math.tanh %127 : vector<4x128xf32>
    %cst_29 = arith.constant 1.000000e+00 : f32
    %129 = vector.broadcast %cst_29 : f32 to vector<4x128xf32>
    %130 = arith.subf %129, %121 : vector<4x128xf32>
    %131 = arith.mulf %130, %128 : vector<4x128xf32>
    %132 = arith.mulf %121, %101 : vector<4x128xf32>
    %133 = arith.addf %131, %132 : vector<4x128xf32>
    %c0_30 = arith.constant 0 : index
    %c4 = arith.constant 4 : index
    %c0_31 = arith.constant 0 : index
    %134 = vector.load %arg2[%c0_30, %c4, %c0_31] : memref<4x8x384xf32, #tpu.memory_space<vmem>>, vector<4x1x384xf32>
    %135 = vector.shape_cast %134 : vector<4x1x384xf32> to vector<4x384xf32>
    %136 = arith.truncf %133 : vector<4x128xf32> to vector<4x128xbf16>
    %cst_32 = arith.constant dense<0.000000e+00> : vector<4x384xf32>
    %137 = tpu.matmul %136, %4, %cst_32 {dimension_numbers = #tpu.dot_dimension_numbers<[1], [0], [0], [1], [0, 0, 1, 1], [], []>} : vector<4x128xbf16>, vector<128x384xbf16>, vector<4x384xf32> -> vector<4x384xf32>
    %138 = vector.extract_strided_slice %135 {offsets = [0, 0], sizes = [4, 128], strides = [1, 1]} : vector<4x384xf32> to vector<4x128xf32>
    %139 = vector.extract_strided_slice %137 {offsets = [0, 0], sizes = [4, 128], strides = [1, 1]} : vector<4x384xf32> to vector<4x128xf32>
    %140 = arith.addf %138, %139 : vector<4x128xf32>
    %141 = arith.negf %140 : vector<4x128xf32>
    %142 = math.exp %141 : vector<4x128xf32>
    %cst_33 = arith.constant 1.000000e+00 : f32
    %143 = vector.broadcast %cst_33 : f32 to vector<4x128xf32>
    %144 = arith.addf %143, %142 : vector<4x128xf32>
    %145 = arith.divf %143, %144 : vector<4x128xf32>
    %146 = vector.extract_strided_slice %135 {offsets = [0, 128], sizes = [4, 128], strides = [1, 1]} : vector<4x384xf32> to vector<4x128xf32>
    %147 = vector.extract_strided_slice %137 {offsets = [0, 128], sizes = [4, 128], strides = [1, 1]} : vector<4x384xf32> to vector<4x128xf32>
    %148 = arith.addf %146, %147 : vector<4x128xf32>
    %149 = arith.negf %148 : vector<4x128xf32>
    %150 = math.exp %149 : vector<4x128xf32>
    %cst_34 = arith.constant 1.000000e+00 : f32
    %151 = vector.broadcast %cst_34 : f32 to vector<4x128xf32>
    %152 = arith.addf %151, %150 : vector<4x128xf32>
    %153 = arith.divf %151, %152 : vector<4x128xf32>
    %154 = vector.extract_strided_slice %135 {offsets = [0, 256], sizes = [4, 128], strides = [1, 1]} : vector<4x384xf32> to vector<4x128xf32>
    %155 = vector.extract_strided_slice %137 {offsets = [0, 256], sizes = [4, 128], strides = [1, 1]} : vector<4x384xf32> to vector<4x128xf32>
    %156 = vector.broadcast %5 : vector<1x128xf32> to vector<4x128xf32>
    %157 = arith.addf %155, %156 : vector<4x128xf32>
    %158 = arith.mulf %145, %157 : vector<4x128xf32>
    %159 = arith.addf %154, %158 : vector<4x128xf32>
    %160 = math.tanh %159 : vector<4x128xf32>
    %cst_35 = arith.constant 1.000000e+00 : f32
    %161 = vector.broadcast %cst_35 : f32 to vector<4x128xf32>
    %162 = arith.subf %161, %153 : vector<4x128xf32>
    %163 = arith.mulf %162, %160 : vector<4x128xf32>
    %164 = arith.mulf %153, %133 : vector<4x128xf32>
    %165 = arith.addf %163, %164 : vector<4x128xf32>
    %c0_36 = arith.constant 0 : index
    %c5 = arith.constant 5 : index
    %c0_37 = arith.constant 0 : index
    %166 = vector.load %arg2[%c0_36, %c5, %c0_37] : memref<4x8x384xf32, #tpu.memory_space<vmem>>, vector<4x1x384xf32>
    %167 = vector.shape_cast %166 : vector<4x1x384xf32> to vector<4x384xf32>
    %168 = arith.truncf %165 : vector<4x128xf32> to vector<4x128xbf16>
    %cst_38 = arith.constant dense<0.000000e+00> : vector<4x384xf32>
    %169 = tpu.matmul %168, %4, %cst_38 {dimension_numbers = #tpu.dot_dimension_numbers<[1], [0], [0], [1], [0, 0, 1, 1], [], []>} : vector<4x128xbf16>, vector<128x384xbf16>, vector<4x384xf32> -> vector<4x384xf32>
    %170 = vector.extract_strided_slice %167 {offsets = [0, 0], sizes = [4, 128], strides = [1, 1]} : vector<4x384xf32> to vector<4x128xf32>
    %171 = vector.extract_strided_slice %169 {offsets = [0, 0], sizes = [4, 128], strides = [1, 1]} : vector<4x384xf32> to vector<4x128xf32>
    %172 = arith.addf %170, %171 : vector<4x128xf32>
    %173 = arith.negf %172 : vector<4x128xf32>
    %174 = math.exp %173 : vector<4x128xf32>
    %cst_39 = arith.constant 1.000000e+00 : f32
    %175 = vector.broadcast %cst_39 : f32 to vector<4x128xf32>
    %176 = arith.addf %175, %174 : vector<4x128xf32>
    %177 = arith.divf %175, %176 : vector<4x128xf32>
    %178 = vector.extract_strided_slice %167 {offsets = [0, 128], sizes = [4, 128], strides = [1, 1]} : vector<4x384xf32> to vector<4x128xf32>
    %179 = vector.extract_strided_slice %169 {offsets = [0, 128], sizes = [4, 128], strides = [1, 1]} : vector<4x384xf32> to vector<4x128xf32>
    %180 = arith.addf %178, %179 : vector<4x128xf32>
    %181 = arith.negf %180 : vector<4x128xf32>
    %182 = math.exp %181 : vector<4x128xf32>
    %cst_40 = arith.constant 1.000000e+00 : f32
    %183 = vector.broadcast %cst_40 : f32 to vector<4x128xf32>
    %184 = arith.addf %183, %182 : vector<4x128xf32>
    %185 = arith.divf %183, %184 : vector<4x128xf32>
    %186 = vector.extract_strided_slice %167 {offsets = [0, 256], sizes = [4, 128], strides = [1, 1]} : vector<4x384xf32> to vector<4x128xf32>
    %187 = vector.extract_strided_slice %169 {offsets = [0, 256], sizes = [4, 128], strides = [1, 1]} : vector<4x384xf32> to vector<4x128xf32>
    %188 = vector.broadcast %5 : vector<1x128xf32> to vector<4x128xf32>
    %189 = arith.addf %187, %188 : vector<4x128xf32>
    %190 = arith.mulf %177, %189 : vector<4x128xf32>
    %191 = arith.addf %186, %190 : vector<4x128xf32>
    %192 = math.tanh %191 : vector<4x128xf32>
    %cst_41 = arith.constant 1.000000e+00 : f32
    %193 = vector.broadcast %cst_41 : f32 to vector<4x128xf32>
    %194 = arith.subf %193, %185 : vector<4x128xf32>
    %195 = arith.mulf %194, %192 : vector<4x128xf32>
    %196 = arith.mulf %185, %165 : vector<4x128xf32>
    %197 = arith.addf %195, %196 : vector<4x128xf32>
    %c0_42 = arith.constant 0 : index
    %c6 = arith.constant 6 : index
    %c0_43 = arith.constant 0 : index
    %198 = vector.load %arg2[%c0_42, %c6, %c0_43] : memref<4x8x384xf32, #tpu.memory_space<vmem>>, vector<4x1x384xf32>
    %199 = vector.shape_cast %198 : vector<4x1x384xf32> to vector<4x384xf32>
    %200 = arith.truncf %197 : vector<4x128xf32> to vector<4x128xbf16>
    %cst_44 = arith.constant dense<0.000000e+00> : vector<4x384xf32>
    %201 = tpu.matmul %200, %4, %cst_44 {dimension_numbers = #tpu.dot_dimension_numbers<[1], [0], [0], [1], [0, 0, 1, 1], [], []>} : vector<4x128xbf16>, vector<128x384xbf16>, vector<4x384xf32> -> vector<4x384xf32>
    %202 = vector.extract_strided_slice %199 {offsets = [0, 0], sizes = [4, 128], strides = [1, 1]} : vector<4x384xf32> to vector<4x128xf32>
    %203 = vector.extract_strided_slice %201 {offsets = [0, 0], sizes = [4, 128], strides = [1, 1]} : vector<4x384xf32> to vector<4x128xf32>
    %204 = arith.addf %202, %203 : vector<4x128xf32>
    %205 = arith.negf %204 : vector<4x128xf32>
    %206 = math.exp %205 : vector<4x128xf32>
    %cst_45 = arith.constant 1.000000e+00 : f32
    %207 = vector.broadcast %cst_45 : f32 to vector<4x128xf32>
    %208 = arith.addf %207, %206 : vector<4x128xf32>
    %209 = arith.divf %207, %208 : vector<4x128xf32>
    %210 = vector.extract_strided_slice %199 {offsets = [0, 128], sizes = [4, 128], strides = [1, 1]} : vector<4x384xf32> to vector<4x128xf32>
    %211 = vector.extract_strided_slice %201 {offsets = [0, 128], sizes = [4, 128], strides = [1, 1]} : vector<4x384xf32> to vector<4x128xf32>
    %212 = arith.addf %210, %211 : vector<4x128xf32>
    %213 = arith.negf %212 : vector<4x128xf32>
    %214 = math.exp %213 : vector<4x128xf32>
    %cst_46 = arith.constant 1.000000e+00 : f32
    %215 = vector.broadcast %cst_46 : f32 to vector<4x128xf32>
    %216 = arith.addf %215, %214 : vector<4x128xf32>
    %217 = arith.divf %215, %216 : vector<4x128xf32>
    %218 = vector.extract_strided_slice %199 {offsets = [0, 256], sizes = [4, 128], strides = [1, 1]} : vector<4x384xf32> to vector<4x128xf32>
    %219 = vector.extract_strided_slice %201 {offsets = [0, 256], sizes = [4, 128], strides = [1, 1]} : vector<4x384xf32> to vector<4x128xf32>
    %220 = vector.broadcast %5 : vector<1x128xf32> to vector<4x128xf32>
    %221 = arith.addf %219, %220 : vector<4x128xf32>
    %222 = arith.mulf %209, %221 : vector<4x128xf32>
    %223 = arith.addf %218, %222 : vector<4x128xf32>
    %224 = math.tanh %223 : vector<4x128xf32>
    %cst_47 = arith.constant 1.000000e+00 : f32
    %225 = vector.broadcast %cst_47 : f32 to vector<4x128xf32>
    %226 = arith.subf %225, %217 : vector<4x128xf32>
    %227 = arith.mulf %226, %224 : vector<4x128xf32>
    %228 = arith.mulf %217, %197 : vector<4x128xf32>
    %229 = arith.addf %227, %228 : vector<4x128xf32>
    %c0_48 = arith.constant 0 : index
    %c7 = arith.constant 7 : index
    %c0_49 = arith.constant 0 : index
    %230 = vector.load %arg2[%c0_48, %c7, %c0_49] : memref<4x8x384xf32, #tpu.memory_space<vmem>>, vector<4x1x384xf32>
    %231 = vector.shape_cast %230 : vector<4x1x384xf32> to vector<4x384xf32>
    %232 = arith.truncf %229 : vector<4x128xf32> to vector<4x128xbf16>
    %cst_50 = arith.constant dense<0.000000e+00> : vector<4x384xf32>
    %233 = tpu.matmul %232, %4, %cst_50 {dimension_numbers = #tpu.dot_dimension_numbers<[1], [0], [0], [1], [0, 0, 1, 1], [], []>} : vector<4x128xbf16>, vector<128x384xbf16>, vector<4x384xf32> -> vector<4x384xf32>
    %234 = vector.extract_strided_slice %231 {offsets = [0, 0], sizes = [4, 128], strides = [1, 1]} : vector<4x384xf32> to vector<4x128xf32>
    %235 = vector.extract_strided_slice %233 {offsets = [0, 0], sizes = [4, 128], strides = [1, 1]} : vector<4x384xf32> to vector<4x128xf32>
    %236 = arith.addf %234, %235 : vector<4x128xf32>
    %237 = arith.negf %236 : vector<4x128xf32>
    %238 = math.exp %237 : vector<4x128xf32>
    %cst_51 = arith.constant 1.000000e+00 : f32
    %239 = vector.broadcast %cst_51 : f32 to vector<4x128xf32>
    %240 = arith.addf %239, %238 : vector<4x128xf32>
    %241 = arith.divf %239, %240 : vector<4x128xf32>
    %242 = vector.extract_strided_slice %231 {offsets = [0, 128], sizes = [4, 128], strides = [1, 1]} : vector<4x384xf32> to vector<4x128xf32>
    %243 = vector.extract_strided_slice %233 {offsets = [0, 128], sizes = [4, 128], strides = [1, 1]} : vector<4x384xf32> to vector<4x128xf32>
    %244 = arith.addf %242, %243 : vector<4x128xf32>
    %245 = arith.negf %244 : vector<4x128xf32>
    %246 = math.exp %245 : vector<4x128xf32>
    %cst_52 = arith.constant 1.000000e+00 : f32
    %247 = vector.broadcast %cst_52 : f32 to vector<4x128xf32>
    %248 = arith.addf %247, %246 : vector<4x128xf32>
    %249 = arith.divf %247, %248 : vector<4x128xf32>
    %250 = vector.extract_strided_slice %231 {offsets = [0, 256], sizes = [4, 128], strides = [1, 1]} : vector<4x384xf32> to vector<4x128xf32>
    %251 = vector.extract_strided_slice %233 {offsets = [0, 256], sizes = [4, 128], strides = [1, 1]} : vector<4x384xf32> to vector<4x128xf32>
    %252 = vector.broadcast %5 : vector<1x128xf32> to vector<4x128xf32>
    %253 = arith.addf %251, %252 : vector<4x128xf32>
    %254 = arith.mulf %241, %253 : vector<4x128xf32>
    %255 = arith.addf %250, %254 : vector<4x128xf32>
    %256 = math.tanh %255 : vector<4x128xf32>
    %cst_53 = arith.constant 1.000000e+00 : f32
    %257 = vector.broadcast %cst_53 : f32 to vector<4x128xf32>
    %258 = arith.subf %257, %249 : vector<4x128xf32>
    %259 = arith.mulf %258, %256 : vector<4x128xf32>
    %260 = arith.mulf %249, %229 : vector<4x128xf32>
    %261 = arith.addf %259, %260 : vector<4x128xf32>
    %262 = vector.shape_cast %37 : vector<4x128xf32> to vector<4x1x128xf32>
    %263 = vector.shape_cast %69 : vector<4x128xf32> to vector<4x1x128xf32>
    %264 = vector.shape_cast %101 : vector<4x128xf32> to vector<4x1x128xf32>
    %265 = vector.shape_cast %133 : vector<4x128xf32> to vector<4x1x128xf32>
    %266 = vector.shape_cast %165 : vector<4x128xf32> to vector<4x1x128xf32>
    %267 = vector.shape_cast %197 : vector<4x128xf32> to vector<4x1x128xf32>
    %268 = vector.shape_cast %229 : vector<4x128xf32> to vector<4x1x128xf32>
    %269 = vector.shape_cast %261 : vector<4x128xf32> to vector<4x1x128xf32>
    %270 = tpu.concatenate %262, %263, %264, %265, %266, %267, %268, %269 in 1 : vector<4x1x128xf32>, vector<4x1x128xf32>, vector<4x1x128xf32>, vector<4x1x128xf32>, vector<4x1x128xf32>, vector<4x1x128xf32>, vector<4x1x128xf32>, vector<4x1x128xf32> -> vector<4x8x128xf32>
    %271 = arith.truncf %270 : vector<4x8x128xf32> to vector<4x8x128xbf16>
    %c0_54 = arith.constant 0 : index
    %c0_55 = arith.constant 0 : index
    %c0_56 = arith.constant 0 : index
    %272 = vector.load %arg5[%c0_54, %c0_55, %c0_56] : memref<4x8x128xbf16, #tpu.memory_space<vmem>>, vector<4x8x128xbf16>
    tpu.vector_store %arg5[%c0_54, %c0_55, %c0_56], %271 {strides = array<i32>} : memref<4x8x128xbf16, #tpu.memory_space<vmem>>, vector<4x8x128xbf16>,
    %c0_57 = arith.constant 0 : index
    %c0_58 = arith.constant 0 : index
    %273 = vector.load %arg6[%c0_57, %c0_58] : memref<4x128xf32, #tpu.memory_space<vmem>>, vector<4x128xf32>
    tpu.vector_store %arg6[%c0_57, %c0_58], %261 {strides = array<i32>} : memref<4x128xf32, #tpu.memory_space<vmem>>, vector<4x128xf32>,
    return
  }
  func.func @transform_0(%arg0: i32, %arg1: i32) -> (i32, i32, i32) {
    %c0_i32 = arith.constant 0 : i32
    %c0_i32_0 = arith.constant 0 : i32
    return %arg0, %arg1, %c0_i32 : i32, i32, i32
  }
  func.func @transform_1(%arg0: i32, %arg1: i32) -> (i32, i32) {
    %c0_i32 = arith.constant 0 : i32
    %c0_i32_0 = arith.constant 0 : i32
    %c0_i32_1 = arith.constant 0 : i32
    return %c0_i32, %c0_i32_0 : i32, i32
  }
  func.func @transform_2(%arg0: i32, %arg1: i32) -> (i32, i32) {
    %c0_i32 = arith.constant 0 : i32
    %c0_i32_0 = arith.constant 0 : i32
    %c0_i32_1 = arith.constant 0 : i32
    return %c0_i32, %c0_i32_0 : i32, i32
  }
  func.func @transform_3(%arg0: i32, %arg1: i32) -> (i32, i32, i32) {
    %c0_i32 = arith.constant 0 : i32
    %c0_i32_0 = arith.constant 0 : i32
    return %arg0, %arg1, %c0_i32 : i32, i32, i32
  }
}

module attributes {stable_mosaic.version = 11 : i64} {
  func.func @_proj_softmax_resident_kernel(%arg0: i32, %arg1: memref<64x128xbf16, #tpu.memory_space<vmem>>, %arg2: memref<128x128xbf16, #tpu.memory_space<vmem>>, %arg3: memref<1x128xf32, #tpu.memory_space<vmem>>, %arg4: memref<64x128xf32, #tpu.memory_space<vmem>>) attributes {dimension_semantics = [#tpu.dimension_semantics<parallel>], iteration_bounds = array<i64: 1>, scalar_prefetch = 0 : i64, scratch_operands = 0 : i64, tpu.core_type = #tpu.core_type<tc>, window_params = [{transform_indices = @transform_0, window_bounds = array<i64: 64, 128>}, {pipeline_mode = #tpu.pipeline_mode<synchronous>, transform_indices = @transform_1, window_bounds = array<i64: 128, 128>}, {pipeline_mode = #tpu.pipeline_mode<synchronous>, transform_indices = @transform_2, window_bounds = array<i64: 1, 128>}, {transform_indices = @transform_3, window_bounds = array<i64: 64, 128>}]} {
    %c0 = arith.constant 0 : index
    %c0_0 = arith.constant 0 : index
    %0 = vector.load %arg1[%c0, %c0_0] : memref<64x128xbf16, #tpu.memory_space<vmem>>, vector<64x128xbf16>
    %c0_1 = arith.constant 0 : index
    %c0_2 = arith.constant 0 : index
    %1 = vector.load %arg2[%c0_1, %c0_2] : memref<128x128xbf16, #tpu.memory_space<vmem>>, vector<128x128xbf16>
    %cst = arith.constant dense<0.000000e+00> : vector<64x128xf32>
    %2 = tpu.matmul %0, %1, %cst {dimension_numbers = #tpu.dot_dimension_numbers<[1], [0], [0], [1], [0, 0, 1, 1], [], []>} : vector<64x128xbf16>, vector<128x128xbf16>, vector<64x128xf32> -> vector<64x128xf32>
    %c0_3 = arith.constant 0 : index
    %c0_4 = arith.constant 0 : index
    %3 = vector.load %arg3[%c0_3, %c0_4] : memref<1x128xf32, #tpu.memory_space<vmem>>, vector<1x128xf32>
    %4 = vector.broadcast %3 : vector<1x128xf32> to vector<64x128xf32>
    %5 = arith.addf %2, %4 : vector<64x128xf32>
    %cst_5 = arith.constant dense<0xFF800000> : vector<64xf32>
    %6 = vector.multi_reduction <maximumf>, %5, %cst_5 [1] : vector<64x128xf32> to vector<64xf32>
    %7 = vector.shape_cast %6 : vector<64xf32> to vector<64x1xf32>
    %8 = vector.broadcast %7 : vector<64x1xf32> to vector<64x128xf32>
    %9 = arith.subf %5, %8 : vector<64x128xf32>
    %10 = math.exp %9 : vector<64x128xf32>
    %cst_6 = arith.constant dense<0.000000e+00> : vector<64xf32>
    %11 = vector.multi_reduction <add>, %10, %cst_6 [1] : vector<64x128xf32> to vector<64xf32>
    %12 = vector.shape_cast %11 : vector<64xf32> to vector<64x1xf32>
    %13 = tpu.reciprocal %12 {approx = true} : vector<64x1xf32> -> vector<64x1xf32>
    %14 = arith.mulf %12, %13 : vector<64x1xf32>
    %cst_7 = arith.constant 2.000000e+00 : f32
    %15 = vector.broadcast %cst_7 : f32 to vector<64x1xf32>
    %16 = arith.subf %15, %14 : vector<64x1xf32>
    %17 = arith.mulf %13, %16 : vector<64x1xf32>
    %18 = vector.broadcast %17 : vector<64x1xf32> to vector<64x128xf32>
    %19 = arith.mulf %10, %18 : vector<64x128xf32>
    %c0_8 = arith.constant 0 : index
    %c0_9 = arith.constant 0 : index
    %20 = vector.load %arg4[%c0_8, %c0_9] : memref<64x128xf32, #tpu.memory_space<vmem>>, vector<64x128xf32>
    tpu.vector_store %arg4[%c0_8, %c0_9], %19 {strides = array<i32>} : memref<64x128xf32, #tpu.memory_space<vmem>>, vector<64x128xf32>,
    return
  }
  func.func @transform_0(%arg0: i32) -> (i32, i32) {
    %c0_i32 = arith.constant 0 : i32
    %c0_i32_0 = arith.constant 0 : i32
    return %arg0, %c0_i32 : i32, i32
  }
  func.func @transform_1(%arg0: i32) -> (i32, i32) {
    %c0_i32 = arith.constant 0 : i32
    %c0_i32_0 = arith.constant 0 : i32
    %c0_i32_1 = arith.constant 0 : i32
    return %c0_i32, %c0_i32_0 : i32, i32
  }
  func.func @transform_2(%arg0: i32) -> (i32, i32) {
    %c0_i32 = arith.constant 0 : i32
    %c0_i32_0 = arith.constant 0 : i32
    %c0_i32_1 = arith.constant 0 : i32
    return %c0_i32, %c0_i32_0 : i32, i32
  }
  func.func @transform_3(%arg0: i32) -> (i32, i32) {
    %c0_i32 = arith.constant 0 : i32
    %c0_i32_0 = arith.constant 0 : i32
    return %arg0, %c0_i32 : i32, i32
  }
}

</mosaic_0001>

<bundles_post_ra>
// kernel: rnn_lm_wrapper_forward.3
= control target key start
LH: loop header
LB: loop body
LE: loop exit
PB: predicated region body
PF: predicated region fallthrough
CT: control target
= control target key end

     0   :  { %s485_s0 = inlined_call_operand.vmem [shape: bf16[64,128], index: 0, kind: input, shape index: {}]   ;;  %s486_s1 = inlined_call_operand.vmem [shape: bf16[128,128], index: 1, kind: input, shape index: {}]   ;;  %s487_s2 = inlined_call_operand.vmem [shape: f32[1,128], index: 2, kind: input, shape index: {}]   ;;  %s488_s3 = inlined_call_operand.hbm [shape: f32[64,128], index: 3, kind: output, shape index: {}]  }
   0x1   :  { %v325_v0 = vld [vmem:[%s486_s1 + $0x38] sm:$0xff]  ;;  %v324_v1 = vld [vmem:[%s486_s1 + $0x30] sm:$0xff] }
   0x2   :  { %115 = vmatpush.bf16.msra.mxu0 %v325_v0  ;;  %326 = vmatpush.bf16.msra.mxu1 %v325_v0 }
   0x3   :  { %327 = vmatpush.bf16.msra.mxu2 %v325_v0  ;;  %328 = vmatpush.bf16.msra.mxu3 %v325_v0 }
   0x4   :  { %8 = vsyncpa [#allocation3], 0  ;;  %v323_v2 = vld [vmem:[%s486_s1 + $0x28] sm:$0xff]  ;;  %v322_v3 = vld [vmem:[%s486_s1 + $0x20] sm:$0xff]  ;;  %s254_s12 = sshll.u32 %s488_s3, 4  ;;  %s413_s13 = smov 128   ;;  %s255_s12 = int_to_ptr.hbm [resolvable:$true] %s254_s12 }
   0x5   :  { %v321_v4 = vld [vmem:[%s486_s1 + $0x18] sm:$0xff]  ;;  %v320_v5 = vld [vmem:[%s486_s1 + $0x10] sm:$0xff]  ;;  %v319_v6 = vld [vmem:[%s486_s1 + $0x8] sm:$0xff]  ;;  %s414_s14 = smov 8  }
   0x6   :  { %116 = vmatpush.bf16.msra.mxu0 %v324_v1  ;;  %329 = vmatpush.bf16.msra.mxu1 %v324_v1  ;;  %v318_v7 = vld [vmem:[%s486_s1] sm:$0xff]  ;;  %v315_v9 = vld [vmem:[%s485_s0 + $0x8] sm:$0xff]  ;;  %v316_v10 = vld [vmem:[%s485_s0 + $0x10] sm:$0xff] }
   0x7   :  { %330 = vmatpush.bf16.msra.mxu2 %v324_v1  ;;  %331 = vmatpush.bf16.msra.mxu3 %v324_v1  ;;  %v314_v8 = vld [vmem:[%s485_s0] sm:$0xff]  ;;  %v317_v11 = vld [vmem:[%s485_s0 + $0x18] sm:$0xff]  ;;  %s412_s0 = smov [#allocation2]  }
   0x8   :  { %v353_v12 = vld [vmem:[%s487_s2] ss:$0 sm:$0xff]  ;;  %s252_s2 = sshll.u32 %s412_s0, 4  ;;  %s253_s2 = int_to_ptr.vmem [resolvable:$true] %s252_s2 }
   0xa   :  { %117 = vmatpush.bf16.msra.mxu0 %v323_v2  ;;  %332 = vmatpush.bf16.msra.mxu1 %v323_v2 }
   0xb   :  { %333 = vmatpush.bf16.msra.mxu2 %v323_v2  ;;  %334 = vmatpush.bf16.msra.mxu3 %v323_v2 }
   0xe   :  { %118 = vmatpush.bf16.msra.mxu0 %v322_v3  ;;  %335 = vmatpush.bf16.msra.mxu1 %v322_v3 }
   0xf   :  { %336 = vmatpush.bf16.msra.mxu2 %v322_v3  ;;  %337 = vmatpush.bf16.msra.mxu3 %v322_v3 }
  0x12   :  { %119 = vmatpush.bf16.msra.mxu0 %v321_v4  ;;  %338 = vmatpush.bf16.msra.mxu1 %v321_v4 }
  0x13   :  { %339 = vmatpush.bf16.msra.mxu2 %v321_v4  ;;  %340 = vmatpush.bf16.msra.mxu3 %v321_v4 }
  0x16   :  { %120 = vmatpush.bf16.msra.mxu0 %v320_v5  ;;  %341 = vmatpush.bf16.msra.mxu1 %v320_v5 }
  0x17   :  { %342 = vmatpush.bf16.msra.mxu2 %v320_v5  ;;  %343 = vmatpush.bf16.msra.mxu3 %v320_v5 }
  0x1a   :  { %121 = vmatpush.bf16.msra.mxu0 %v319_v6  ;;  %344 = vmatpush.bf16.msra.mxu1 %v319_v6 }
  0x1b   :  { %345 = vmatpush.bf16.msra.mxu2 %v319_v6  ;;  %346 = vmatpush.bf16.msra.mxu3 %v319_v6 }
  0x1e   :  { %122 = vmatpush.bf16.msra.mxu0 %v318_v7  ;;  %347 = vmatpush.bf16.msra.mxu1 %v318_v7 }
  0x1f   :  { %348 = vmatpush.bf16.msra.mxu2 %v318_v7  ;;  %349 = vmatpush.bf16.msra.mxu3 %v318_v7 }
  0x21   :  { %123 = vmatmul.bf16.vlgmr.msra.gmra.mxu0 %v314_v8  ;;  %128 = vmatmul.bf16.vlgmr.msra.gmra.mxu1 %v315_v9 }
  0x22   :  { %133 = vmatmul.bf16.vlgmr.msra.gmra.mxu2 %v316_v10  ;;  %138 = vmatmul.bf16.vlgmr.msra.gmra.mxu3 %v317_v11 }
  0x9e   :  { %v124_v13 = vpop.f32.mrf.mxu0  ;;  %v129_v14 = vpop.f32.mrf.mxu1 }
  0x9f   :  { %v125_v15 = vadd.f32 %v353_v12, %v124_v13  ;;  %v130_v16 = vadd.f32 %v353_v12, %v129_v14 }
  0xa1   :  { %148 = vmax.xlane.f32.xlu1 %v130_v16  ;;  %144 = vmax.xlane.f32.xlu0 %v125_v15 }
  0xa5   :  { %v134_v17 = vpop.f32.mrf.mxu2  ;;  %v139_v18 = vpop.f32.mrf.mxu3 }
  0xa6   :  { %v135_v19 = vadd.f32 %v353_v12, %v134_v17  ;;  %v126_v20 = vpop.f32.mrf.mxu0  ;;  %v131_v21 = vpop.f32.mrf.mxu1  ;;  %v140_v27 = vadd.f32 %v353_v12, %v139_v18 }
  0xa7   :  { %v127_v22 = vadd.f32 %v353_v12, %v126_v20  ;;  %v132_v23 = vadd.f32 %v353_v12, %v131_v21 }
  0xa8   :  { %152 = vmax.xlane.f32.xlu2 %v135_v19 }
  0xa9   :  { %150 = vmax.xlane.f32.xlu1 %v132_v23  ;;  %146 = vmax.xlane.f32.xlu0 %v127_v22 }
  0xad   :  { %v136_v24 = vpop.f32.mrf.mxu2  ;;  %v141_v25 = vpop.f32.mrf.mxu3 }
  0xae   :  { %v137_v26 = vadd.f32 %v353_v12, %v136_v24  ;;  %v142_v28 = vadd.f32 %v353_v12, %v141_v25 }
  0xb0   :  { %154 = vmax.xlane.f32.xlu2 %v137_v26 }
  0xb1   :  { %158 = vmax.xlane.f32.xlu1 %v142_v28  ;;  %156 = vmax.xlane.f32.xlu0 %v140_v27 }
 0x114   :  { %v149_v29 = vpop.xlane.xlu1 %148  ;;  %v145_v30 = vpop.xlane.xlu0 %144 }
 0x115   :  { %v162_v31 = vsub.f32 %v130_v16, %v149_v29  ;;  %v160_v32 = vsub.f32 %v125_v15, %v145_v30 }
 0x117   :  { %v172_v33 = vmul.f32 1.442695, %v162_v31  ;;  %v168_v34 = vmul.f32 1.442695, %v160_v32 }
 0x119   :  { %354 = vpow2.f32 %v172_v33 }
 0x11a   :  { %356 = vpow2.f32 %v168_v34 }
 0x11b   :  { %v153_v35 = vpop.xlane.xlu2 %152 }
 0x11c   :  { %v164_v36 = vsub.f32 %v135_v19, %v153_v35  ;;  %v151_v37 = vpop.xlane.xlu1 %150  ;;  %v147_v38 = vpop.xlane.xlu0 %146 }
 0x11d   :  { %v163_v39 = vsub.f32 %v132_v23, %v151_v37  ;;  %v161_v43 = vsub.f32 %v127_v22, %v147_v38 }
 0x11e   :  { %v176_v40 = vmul.f32 1.442695, %v164_v36 }
 0x11f   :  { %v355_v41 = vpop.eup %354  ;;  %v174_v42 = vmul.f32 1.442695, %v163_v39  ;;  %v170_v45 = vmul.f32 1.442695, %v161_v43 }
 0x120   :  { %v357_v44 = vpop.eup %356  ;;  %358 = vpow2.f32 %v176_v40  ;;  %188 = vadd.xlane.f32.xlu1 %v355_v41 }
 0x121   :  { %360 = vpow2.f32 %v174_v42  ;;  %184 = vadd.xlane.f32.xlu2 %v357_v44 }
 0x122   :  { %362 = vpow2.f32 %v170_v45 }
 0x123   :  { %v155_v46 = vpop.xlane.xlu2 %154 }
 0x124   :  { %v165_v47 = vsub.f32 %v137_v26, %v155_v46  ;;  %v157_v48 = vpop.xlane.xlu0 %156  ;;  %v159_v49 = vpop.xlane.xlu1 %158 }
 0x125   :  { %v166_v50 = vsub.f32 %v140_v27, %v157_v48  ;;  %v167_v55 = vsub.f32 %v142_v28, %v159_v49 }
 0x126   :  { %v359_v51 = vpop.eup %358  ;;  %v178_v52 = vmul.f32 1.442695, %v165_v47 }
 0x127   :  { %v361_v53 = vpop.eup %360  ;;  %v180_v54 = vmul.f32 1.442695, %v166_v50  ;;  %192 = vadd.xlane.f32.xlu0 %v359_v51  ;;  %v182_v56 = vmul.f32 1.442695, %v167_v55 }
 0x128   :  { %364 = vpow2.f32 %v178_v52  ;;  %v474_v57 = vpop.eup %362 }
 0x129   :  { %190 = vadd.xlane.f32.xlu2 %v361_v53  ;;  %366 = vpow2.f32 %v180_v54 }
 0x12a   :  { %368 = vpow2.f32 %v182_v56 }
 0x12e   :  { %v365_v58 = vpop.eup %364 }
 0x12f   :  { %194 = vadd.xlane.f32.xlu1 %v365_v58  ;;  %186 = vadd.xlane.f32.xlu0 %v474_v57  ;;  %v367_v59 = vpop.eup %366 }
 0x130   :  { %v477_v60 = vpop.eup %368 }
 0x131   :  { %196 = vadd.xlane.f32.xlu2 %v367_v59 }
 0x137   :  { %198 = vadd.xlane.f32.xlu0 %v477_v60 }
 0x193   :  { %v189_v61 = vpop.xlane.xlu1 %188 }
 0x194   :  { %370 = vrcp.f32 %v189_v61  ;;  %v185_v62 = vpop.xlane.xlu2 %184 }
 0x195   :  { %372 = vrcp.f32 %v185_v62 }
 0x19a   :  { %v371_v63 = vpop.eup %370  ;;  %v193_v0 = vpop.xlane.xlu0 %192 }
 0x19b   :  { %v373_v1 = vpop.eup %372  ;;  %v210_v2 = vmul.f32 %v371_v63, %v189_v61  ;;  %374 = vrcp.f32 %v193_v0 }
 0x19c   :  { %v208_v3 = vmul.f32 %v373_v1, %v185_v62  ;;  %v191_v4 = vpop.xlane.xlu2 %190 }
 0x19d   :  { %v218_v5 = vsub.f32 2.0, %v210_v2  ;;  %376 = vrcp.f32 %v191_v4 }
 0x19e   :  { %v216_v6 = vsub.f32 2.0, %v208_v3 }
 0x19f   :  { %v226_v7 = vmul.f32 %v371_v63, %v218_v5 }
 0x1a0   :  { %v224_v8 = vmul.f32 %v373_v1, %v216_v6 }
 0x1a1   :  { %v375_v9 = vpop.eup %374  ;;  %v234_v10 = vmul.f32 %v355_v41, %v226_v7 }
 0x1a2   :  { %v232_v11 = vmul.f32 %v357_v44, %v224_v8  ;;  %v212_v12 = vmul.f32 %v375_v9, %v193_v0  ;;  %v195_v13 = vpop.xlane.xlu1 %194  ;;  %v187_v14 = vpop.xlane.xlu0 %186 }
 0x1a3   :  { %v377_v15 = vpop.eup %376  ;;  %242 = vst [vmem:[#allocation2 + $0x10] sm:$0xff] %v234_v10  ;;  %378 = vrcp.f32 %v195_v13 }
 0x1a4   :  { %240 = vst [vmem:[#allocation2] sm:$0xff] %v232_v11  ;;  %v220_v16 = vsub.f32 2.0, %v212_v12  ;;  %v211_v17 = vmul.f32 %v377_v15, %v191_v4  ;;  %380 = vrcp.f32 %v187_v14  ;;  %v197_v18 = vpop.xlane.xlu2 %196 }
 0x1a5   :  { %382 = vrcp.f32 %v197_v18 }
 0x1a6   :  { %v228_v19 = vmul.f32 %v375_v9, %v220_v16  ;;  %v219_v20 = vsub.f32 2.0, %v211_v17 }
 0x1a8   :  { %v236_v21 = vmul.f32 %v359_v51, %v228_v19  ;;  %v227_v22 = vmul.f32 %v377_v15, %v219_v20 }
 0x1a9   :  { %v379_v23 = vpop.eup %378 }
 0x1aa   :  { %v381_v24 = vpop.eup %380  ;;  %244 = vst [vmem:[#allocation2 + $0x20] sm:$0xff] %v236_v21  ;;  %v235_v25 = vmul.f32 %v361_v53, %v227_v22  ;;  %v213_v26 = vmul.f32 %v379_v23, %v195_v13  ;;  %v199_v27 = vpop.xlane.xlu0 %198 }
 0x1ab   :  { %v383_v28 = vpop.eup %382  ;;  %v209_v29 = vmul.f32 %v381_v24, %v187_v14  ;;  %384 = vrcp.f32 %v199_v27 }
 0x1ac   :  { %243 = vst [vmem:[#allocation2 + $0x18] sm:$0xff] %v235_v25  ;;  %v221_v30 = vsub.f32 2.0, %v213_v26  ;;  %v214_v31 = vmul.f32 %v383_v28, %v197_v18 }
 0x1ad   :  { %v217_v32 = vsub.f32 2.0, %v209_v29 }
 0x1ae   :  { %v229_v33 = vmul.f32 %v379_v23, %v221_v30  ;;  %v222_v34 = vsub.f32 2.0, %v214_v31 }
 0x1af   :  { %v225_v35 = vmul.f32 %v381_v24, %v217_v32 }
 0x1b0   :  { %v237_v36 = vmul.f32 %v365_v58, %v229_v33  ;;  %v230_v37 = vmul.f32 %v383_v28, %v222_v34 }
 0x1b1   :  { %v385_v38 = vpop.eup %384  ;;  %v233_v39 = vmul.f32 %v474_v57, %v225_v35 }
 0x1b2   :  { %245 = vst [vmem:[#allocation2 + $0x28] sm:$0xff] %v237_v36  ;;  %v238_v40 = vmul.f32 %v367_v59, %v230_v37  ;;  %v215_v41 = vmul.f32 %v385_v38, %v199_v27 }
 0x1b3   :  { %241 = vst [vmem:[#allocation2 + $0x8] sm:$0xff] %v233_v39 }
 0x1b4   :  { %246 = vst [vmem:[#allocation2 + $0x30] sm:$0xff] %v238_v40  ;;  %v223_v42 = vsub.f32 2.0, %v215_v41 }
 0x1b6   :  { %v231_v43 = vmul.f32 %v385_v38, %v223_v42 }
 0x1b8   :  { %v239_v44 = vmul.f32 %v477_v60, %v231_v43 }
 0x1ba   :  { %247 = vst [vmem:[#allocation2 + $0x38] sm:$0xff] %v239_v44 }
 0x1bb   :  { %260 = dma.vmem_to_hbm [thread:$0]  %s253_s2, 1024, %s255_s12, [#allocation3], %s413_s13, %s413_s13, %s414_s14  }
 0x1bc   :  { %410 = dma.done.wait [#allocation3], 1024  }
 0x1bd   :  { %411 = vsyncadd [#allocation3], 4294966272 }
 0x1be   :  { %265 = vsyncpa [#allocation3], 1 }

// kernel: rnn_lm_wrapper_forward.2
= control target key start
LH: loop header
LB: loop body
LE: loop exit
PB: predicated region body
PF: predicated region fallthrough
CT: control target
= control target key end

     0   :  { %s3703_s12 = smov 0   ;;  %s3705_s13 = smov 0   ;;  %s6156_s0 = inlined_call_operand.vmem [shape: f32[4,16,384], index: 0, kind: input, shape index: {}]   ;;  %s6157_s1 = inlined_call_operand.vmem [shape: bf16[128,384], index: 1, kind: input, shape index: {}]   ;;  %s6158_s2 = inlined_call_operand.vmem [shape: f32[1,128], index: 2, kind: input, shape index: {}]   ;;  %s6159_s3 = inlined_call_operand.vmem [shape: bf16[4,16,128], index: 3, kind: output, shape index: {}]  }
   0x1   :  { %s3707_s14 = smov 0   ;;  %s3709_s15 = smov 0  }
   0x2   :  { %s3711_s16 = smov 0  }
   0x3 LB: > { %s22_s17 = sadd.s32 1, %s3676_s15  ;;  %s3036_s18 = sadd.s32 4294967295, %s3680_s16   ;;  %s3680_s16 = sphi %s3711_s16, %s13_s16   ;;  %s3676_s15 = sphi %s3709_s15, %s6448_s15   ;;  %s3672_s14 = sphi %s3707_s14, %s6447_s14   ;;  %s3668_s13 = sphi %s3705_s13, %s6446_s13   ;;  %s3664_s12 = sphi %s3703_s12, %s6445_s12  }
   0x4   : > { %p23_p0 = scmp.ge.s32.totalorder %s22_s17, 2  ;;  %p41_p1 = scmp.ne.s32.totalorder %s3668_s13, %s3664_s12 }
   0x5   : > { %p42_p2 = scmp.eq.s32.totalorder %s3680_s16, 0  ;;  %p115_p4 = scmp.eq.s32.totalorder %s3036_s18, 1 }
   0x6   : > { %s6450_s17 = smov (%p23_p0, %s22_s17), 0  ;;  %s34_s20 = sadd.s32 1, %s3668_s13 }
   0x7   : > { %p43_p3 = por %p42_p2, %p41_p1  ;;  %s30_s19 = ssub.s32 %s3676_s15, %s6450_s17 }
   0x8   : > { %p32_p5 = scmp.eq.s32.totalorder %s30_s19, 0  ;;  %p3738_p6 = por %p115_p4, %p41_p1 }
   0x9   : > { %p3039_p7 = scmp.ge.s32.totalorder %s3680_s16, 2 }
   0xa   : > { %s3743_s22 = scalar_select %p32_p5, %s3668_s13, %s34_s20  }
   0xb   : > { %143 = sbr.rel (%p3039_p7) target bundleno = 33 (0x21), region = 24 }
  0x10   : > { %146 = sbr.rel (!%p43_p3) target bundleno = 33 (0x21), region = 28  ;;  %s148_s23 = sand.u32 (%p43_p3), 1, %s3668_s13  }
  0x11   : > { %s3275_s24 = smul.u32 (%p43_p3), 24, %s3676_s15 }
  0x12   : > { %s3274_s25 = smul.u32 (%p43_p3), 96, %s148_s23 }
  0x13   : > { %s156_s28 = scalar_lea.vmem (%p43_p3), %s6156_s0, %s3275_s24 }
  0x14   : > { %v169_v0 = vld [vmem:[%s156_s28] sm:$0xff] (%p43_p3)  ;;  %v171_v1 = vld [vmem:[%s156_s28 + $0x8] sm:$0xff] (%p43_p3)  ;;  %v173_v2 = vld [vmem:[%s156_s28 + $0x10] sm:$0xff] (%p43_p3)  ;;  %s150_s29 = scalar_lea.vmem (%p43_p3), [#allocation3], %s3274_s25 }
  0x15   : > { %170 = vst [vmem:[%s150_s29] sm:$0xff] %v169_v0  ;;  %v175_v3 = vld [vmem:[%s156_s28 + $0x30] sm:$0xff]  ;;  %v177_v4 = vld [vmem:[%s156_s28 + $0x38] sm:$0xff]  ;;  %v179_v5 = vld [vmem:[%s156_s28 + $0x40] sm:$0xff] }
  0x16   : > { %172 = vst [vmem:[%s150_s29 + $0x8] sm:$0xff] %v171_v1  ;;  %v181_v6 = vld [vmem:[%s156_s28 + $0x60] sm:$0xff]  ;;  %v183_v7 = vld [vmem:[%s156_s28 + $0x68] sm:$0xff]  ;;  %v185_v8 = vld [vmem:[%s156_s28 + $0x70] sm:$0xff] }
  0x17   : > { %174 = vst [vmem:[%s150_s29 + $0x10] sm:$0xff] %v173_v2  ;;  %v187_v9 = vld [vmem:[%s156_s28 + $0x90] sm:$0xff]  ;;  %v189_v10 = vld [vmem:[%s156_s28 + $0x98] sm:$0xff]  ;;  %v191_v11 = vld [vmem:[%s156_s28 + $0xa0] sm:$0xff] }
  0x18   : > { %176 = vst [vmem:[%s150_s29 + $0x18] sm:$0xff] %v175_v3 }
  0x19   : > { %178 = vst [vmem:[%s150_s29 + $0x20] sm:$0xff] %v177_v4 }
  0x1a   : > { %180 = vst [vmem:[%s150_s29 + $0x28] sm:$0xff] %v179_v5 }
  0x1b   : > { %182 = vst [vmem:[%s150_s29 + $0x30] sm:$0xff] %v181_v6 }
  0x1c   : > { %184 = vst [vmem:[%s150_s29 + $0x38] sm:$0xff] %v183_v7 }
  0x1d   : > { %186 = vst [vmem:[%s150_s29 + $0x40] sm:$0xff] %v185_v8 }
  0x1e   : > { %188 = vst [vmem:[%s150_s29 + $0x48] sm:$0xff] %v187_v9 }
  0x1f   : > { %190 = vst [vmem:[%s150_s29 + $0x50] sm:$0xff] %v189_v10 }
  0x20   : > { %192 = vst [vmem:[%s150_s29 + $0x58] sm:$0xff] %v191_v11 }
  0x21 PF: > { %p3041_p8 = scmp.ge.s32.totalorder %s3680_s16, 1  ;;  %p197_p9 = scmp.lt.s32.totalorder %s3680_s16, 3 }
  0x23   : > { %p198_p10 = pnand %p3041_p8, %p197_p9 }
  0x25   : > { %201 = sbr.rel (%p198_p10) target bundleno = 1659 (0x67b), region = 51 }
  0x2a   : > { %s204_s30 = sand.u32 1, %s3664_s12   ;;  %p3043_p11 = scmp.ne.s32.totalorder %s3672_s14, 0 }
  0x2b   : > { %s3276_s4 = smul.u32 96, %s204_s30  ;;  %s3042_s5 = sshll.u32 %s204_s30, 4 }
  0x2c   : > { %s3756_s7 = scalar_lea.vmem [#allocation4], %s3042_s5  ;;  %231 = sbr.rel (%p3043_p11) target bundleno = 51 (0x33), region = 59 }
  0x2d   : > { %s3754_s6 = scalar_lea.vmem [#allocation3], %s3276_s4 }
  0x31   : > { %v3682_v12 = vmov 0.0  }
  0x32   : > { %232 = vst [vmem:[#allocation2] sm:$0xf] %v3682_v12 }
  0x33 PF: > { %v3133_v13 = vld [vmem:[%s6157_s1 + $0xa8] sm:$0xf]  ;;  %v3261_v14 = vld [vmem:[%s6157_s1 + $0xb0] sm:$0xf0]  ;;  %v3260_v15 = vld [vmem:[%s6157_s1 + $0xac] sm:$0xf] }
  0x34   : > { %v3768_v16 = vor.u32 %v3261_v14, %v3133_v13  ;;  %v3135_v17 = vld [vmem:[%s6157_s1 + $0xb4] sm:$0xf0]  ;;  %v3121_v18 = vld [vmem:[%s6157_s1 + $0x90] sm:$0xf]  ;;  %v3258_v19 = vld [vmem:[%s6157_s1 + $0x98] sm:$0xf0] }
  0x35   : > { %v3779_v20 = vor.u32 %v3260_v15, %v3135_v17  ;;  %v3257_v21 = vld [vmem:[%s6157_s1 + $0x94] sm:$0xf]  ;;  %v3123_v22 = vld [vmem:[%s6157_s1 + $0x9c] sm:$0xf0]  ;;  %v3788_v23 = vor.u32 %v3258_v19, %v3121_v18  ;;  %v3109_v25 = vld [vmem:[%s6157_s1 + $0x78] sm:$0xf] }
  0x36   : > { %403 = vmatpush.bf16.msra.mxu0 %v3768_v16  ;;  %713 = vmatpush.bf16.msra.mxu3 %v3768_v16  ;;  %v3792_v24 = vor.u32 %v3257_v21, %v3123_v22  ;;  %v3255_v26 = vld [vmem:[%s6157_s1 + $0x80] sm:$0xf0]  ;;  %v3254_v27 = vld [vmem:[%s6157_s1 + $0x7c] sm:$0xf]  ;;  %v3111_v28 = vld [vmem:[%s6157_s1 + $0x84] sm:$0xf0] }
  0x37   : > { %416 = vmatpush.bf16.msra.mxu1 %v3779_v20  ;;  %v3141_v29 = vld [vmem:[%s6157_s1 + $0xb0] sm:$0xf]  ;;  %v3262_v30 = vld [vmem:[%s6157_s1 + $0xb8] sm:$0xf0]  ;;  %v3815_v32 = vor.u32 %v3255_v26, %v3109_v25  ;;  %v3129_v33 = vld [vmem:[%s6157_s1 + $0x98] sm:$0xf]  ;;  %v3825_v35 = vor.u32 %v3254_v27, %v3111_v28 }
  0x38   : > { %v3812_v31 = vor.u32 %v3262_v30, %v3141_v29  ;;  %v3259_v34 = vld [vmem:[%s6157_s1 + $0xa0] sm:$0xf0]  ;;  %v3097_v36 = vld [vmem:[%s6157_s1 + $0x60] sm:$0xf]  ;;  %v3252_v37 = vld [vmem:[%s6157_s1 + $0x68] sm:$0xf0] }
  0x39   : > { %v3251_v38 = vld [vmem:[%s6157_s1 + $0x64] sm:$0xf]  ;;  %v3837_v39 = vor.u32 %v3259_v34, %v3129_v33  ;;  %v3099_v40 = vld [vmem:[%s6157_s1 + $0x6c] sm:$0xf0]  ;;  %v3117_v41 = vld [vmem:[%s6157_s1 + $0x80] sm:$0xf]  ;;  %v3849_v43 = vor.u32 %v3252_v37, %v3097_v36 }
  0x3a   : > { %404 = vmatpush.bf16.msra.mxu0 %v3788_v23  ;;  %714 = vmatpush.bf16.msra.mxu3 %v3788_v23  ;;  %v3256_v42 = vld [vmem:[%s6157_s1 + $0x88] sm:$0xf0]  ;;  %v3853_v44 = vor.u32 %v3251_v38, %v3099_v40  ;;  %v3085_v45 = vld [vmem:[%s6157_s1 + $0x48] sm:$0xf]  ;;  %v3249_v46 = vld [vmem:[%s6157_s1 + $0x50] sm:$0xf0] }
  0x3b   : > { %417 = vmatpush.bf16.msra.mxu1 %v3792_v24  ;;  %429 = vmatpush.bf16.msra.mxu2 %v3812_v31  ;;  %v3248_v47 = vld [vmem:[%s6157_s1 + $0x4c] sm:$0xf]  ;;  %v3865_v48 = vor.u32 %v3256_v42, %v3117_v41  ;;  %v3087_v49 = vld [vmem:[%s6157_s1 + $0x54] sm:$0xf0]  ;;  %v3105_v50 = vld [vmem:[%s6157_s1 + $0x68] sm:$0xf]  ;;  %v3877_v52 = vor.u32 %v3249_v46, %v3085_v45 }
  0x3c   : > { %v3253_v51 = vld [vmem:[%s6157_s1 + $0x70] sm:$0xf0]  ;;  %v3073_v53 = vld [vmem:[%s6157_s1 + $0x30] sm:$0xf]  ;;  %v3884_v54 = vor.u32 %v3248_v47, %v3087_v49  ;;  %v3246_v55 = vld [vmem:[%s6157_s1 + $0x38] sm:$0xf0] }
  0x3d   : > { %v3245_v56 = vld [vmem:[%s6157_s1 + $0x34] sm:$0xf]  ;;  %v3893_v57 = vor.u32 %v3253_v51, %v3105_v50  ;;  %v3075_v58 = vld [vmem:[%s6157_s1 + $0x3c] sm:$0xf0]  ;;  %v3093_v59 = vld [vmem:[%s6157_s1 + $0x50] sm:$0xf]  ;;  %v3905_v61 = vor.u32 %v3246_v55, %v3073_v53 }
  0x3e   : > { %405 = vmatpush.bf16.msra.mxu0 %v3815_v32  ;;  %715 = vmatpush.bf16.msra.mxu3 %v3815_v32  ;;  %v3250_v60 = vld [vmem:[%s6157_s1 + $0x58] sm:$0xf0]  ;;  %v3909_v62 = vor.u32 %v3245_v56, %v3075_v58  ;;  %v3061_v63 = vld [vmem:[%s6157_s1 + $0x18] sm:$0xf]  ;;  %v3243_v0 = vld [vmem:[%s6157_s1 + $0x20] sm:$0xf0] }
  0x3f   : > { %418 = vmatpush.bf16.msra.mxu1 %v3825_v35  ;;  %430 = vmatpush.bf16.msra.mxu2 %v3837_v39  ;;  %6198 = vst [vmem:[#allocation5_spill] sm:$0xff] %v3905_v61  ;;  %v3242_v1 = vld [vmem:[%s6157_s1 + $0x1c] sm:$0xf]  ;;  %v3921_v2 = vor.u32 %v3250_v60, %v3093_v59  ;;  %v3063_v3 = vld [vmem:[%s6157_s1 + $0x24] sm:$0xf0]  ;;  %v3933_v6 = vor.u32 %v3243_v0, %v3061_v63  ;;  %s3236_s28 = sshll.u32 (%p3738_p6), %s3672_s14, 2 }
  0x40   : > { %6199 = vst [vmem:[#allocation6_spill] sm:$0xff] %v3909_v62  ;;  %v3081_v4 = vld [vmem:[%s6157_s1 + $0x38] sm:$0xf]  ;;  %v3247_v5 = vld [vmem:[%s6157_s1 + $0x40] sm:$0xf0]  ;;  %v3937_v7 = vor.u32 %v3242_v1, %v3063_v3  ;;  %s2912_s4 = scalar_lea.vmem (%p3738_p6), %s6159_s3, %s3236_s28 }
  0x41   : > { %6200 = vst [vmem:[#allocation7_spill] sm:$0xff] %v3933_v6  ;;  %v3049_v8 = vld [vmem:[%s6157_s1] sm:$0xf]  ;;  %v3240_v9 = vld [vmem:[%s6157_s1 + $0x8] sm:$0xf0]  ;;  %v3949_v11 = vor.u32 %v3247_v5, %v3081_v4 }
  0x42   : > { %406 = vmatpush.bf16.msra.mxu0 %v3849_v43  ;;  %716 = vmatpush.bf16.msra.mxu3 %v3849_v43  ;;  %6201 = vst [vmem:[#allocation8_spill] sm:$0xff] %v3937_v7  ;;  %v3239_v10 = vld [vmem:[%s6157_s1 + $0x4] sm:$0xf]  ;;  %v3051_v12 = vld [vmem:[%s6157_s1 + $0xc] sm:$0xf0]  ;;  %v3961_v15 = vor.u32 %v3240_v9, %v3049_v8 }
  0x43   : > { %419 = vmatpush.bf16.msra.mxu1 %v3853_v44  ;;  %431 = vmatpush.bf16.msra.mxu2 %v3865_v48  ;;  %6202 = vst [vmem:[#allocation9_spill] sm:$0xff] %v3949_v11  ;;  %v3069_v13 = vld [vmem:[%s6157_s1 + $0x20] sm:$0xf]  ;;  %v3244_v14 = vld [vmem:[%s6157_s1 + $0x28] sm:$0xf0]  ;;  %v3967_v18 = vor.u32 %v3239_v10, %v3051_v12 }
  0x44   : > { %6203 = vst [vmem:[#allocation10_spill] sm:$0xff] %v3961_v15  ;;  %v3963_v17 = vld [vmem:[#allocation2] sm:$0xf]  ;;  %v3970_v19 = vor.u32 %v3244_v14, %v3069_v13  ;;  %v3241_v22 = vld [vmem:[%s6157_s1 + $0x10] sm:$0xf0] }
  0x45   : > { %6204 = vst [vmem:[#allocation11_spill] sm:$0xff] %v3967_v18  ;;  %v3057_v21 = vld [vmem:[%s6157_s1 + $0x8] sm:$0xf]  ;;  %v274_v25 = vpack.c.bf16 %v3963_v17, %v3963_v17  ;;  %v4044_v27 = vld [vmem:[%s3754_s6] ss:$8 sm:$0x7] }
  0x46   : > { %407 = vmatpush.bf16.msra.mxu0 %v3877_v52  ;;  %717 = vmatpush.bf16.msra.mxu3 %v3877_v52  ;;  %6205 = vst [vmem:[#allocation12_spill] sm:$0xff] %v3970_v19  ;;  %v3984_v26 = vor.u32 %v3241_v22, %v3057_v21  ;;  %v4047_v28 = vld [vmem:[%s3754_s6 + $0x18] ss:$8 sm:$0x7]  ;;  %v533_v33 = vrot.slane %v4044_v27, 1 }
  0x47   : > { %420 = vmatpush.bf16.msra.mxu1 %v3884_v54  ;;  %432 = vmatpush.bf16.msra.mxu2 %v3893_v57  ;;  %v4050_v29 = vld [vmem:[%s3754_s6 + $0x30] ss:$8 sm:$0x7]  ;;  %v534_v36 = vrot.slane %v4047_v28, 1 }
  0x48   : > { %6206 = vst [vmem:[#allocation13_spill] sm:$0xff] %v3984_v26  ;;  %v4053_v30 = vld [vmem:[%s3754_s6 + $0x48] ss:$8 sm:$0x7]  ;;  %v535_v37 = vrot.slane %v4050_v29, 1 }
  0x49   : > { %v536_v38 = vrot.slane %v4053_v30, 1 }
  0x4a   : > { %408 = vmatpush.bf16.msra.mxu0 %v3905_v61  ;;  %718 = vmatpush.bf16.msra.mxu3 %v3905_v61 }
  0x4b   : > { %421 = vmatpush.bf16.msra.mxu1 %v3909_v62  ;;  %433 = vmatpush.bf16.msra.mxu2 %v3921_v2 }
  0x4e   : > { %409 = vmatpush.bf16.msra.mxu0 %v3933_v6  ;;  %719 = vmatpush.bf16.msra.mxu3 %v3933_v6 }
  0x4f   : > { %422 = vmatpush.bf16.msra.mxu1 %v3937_v7  ;;  %434 = vmatpush.bf16.msra.mxu2 %v3949_v11 }
  0x52   : > { %410 = vmatpush.bf16.msra.mxu0 %v3961_v15  ;;  %720 = vmatpush.bf16.msra.mxu3 %v3961_v15 }
  0x53   : > { %423 = vmatpush.bf16.msra.mxu1 %v3967_v18  ;;  %435 = vmatpush.bf16.msra.mxu2 %v3970_v19 }
  0x55   : > { %411 = vmatmul.bf16.vlgmr.msra.gmra.mxu0 %v274_v25 }
  0x56   : > { %726 = vmatpush.bf16.msrb.mxu0 %v3779_v20  ;;  %1023 = vmatpush.bf16.msrb.mxu3 %v3779_v20 }
  0x57   : > { %739 = vmatpush.bf16.msrb.mxu1 %v3812_v31  ;;  %436 = vmatpush.bf16.msra.mxu2 %v3984_v26 }
  0x58   : > { %424 = vmatmul.bf16.vlgmr.msra.gmra.mxu1 %v274_v25 }
  0x5a   : > { %727 = vmatpush.bf16.msrb.mxu0 %v3792_v24  ;;  %1024 = vmatpush.bf16.msrb.mxu3 %v3792_v24 }
  0x5b   : > { %740 = vmatpush.bf16.msrb.mxu1 %v3837_v39  ;;  %1010 = vmatpush.bf16.msrb.mxu2 %v3768_v16 }
  0x5c   : > { %437 = vmatmul.bf16.vlgmr.msra.gmra.mxu2 %v274_v25 }
  0x5e   : > { %728 = vmatpush.bf16.msrb.mxu0 %v3825_v35  ;;  %1025 = vmatpush.bf16.msrb.mxu3 %v3825_v35 }
  0x5f   : > { %741 = vmatpush.bf16.msrb.mxu1 %v3865_v48  ;;  %1011 = vmatpush.bf16.msrb.mxu2 %v3788_v23 }
  0x62   : > { %729 = vmatpush.bf16.msrb.mxu0 %v3853_v44  ;;  %1026 = vmatpush.bf16.msrb.mxu3 %v3853_v44 }
  0x63   : > { %742 = vmatpush.bf16.msrb.mxu1 %v3893_v57  ;;  %1012 = vmatpush.bf16.msrb.mxu2 %v3815_v32 }
  0x66   : > { %730 = vmatpush.bf16.msrb.mxu0 %v3884_v54  ;;  %1027 = vmatpush.bf16.msrb.mxu3 %v3884_v54 }
  0x67   : > { %743 = vmatpush.bf16.msrb.mxu1 %v3921_v2  ;;  %1013 = vmatpush.bf16.msrb.mxu2 %v3849_v43 }
  0x6a   : > { %731 = vmatpush.bf16.msrb.mxu0 %v3909_v62  ;;  %1028 = vmatpush.bf16.msrb.mxu3 %v3909_v62 }
  0x6b   : > { %744 = vmatpush.bf16.msrb.mxu1 %v3949_v11  ;;  %1014 = vmatpush.bf16.msrb.mxu2 %v3877_v52 }
  0x6e   : > { %732 = vmatpush.bf16.msrb.mxu0 %v3937_v7  ;;  %1029 = vmatpush.bf16.msrb.mxu3 %v3937_v7 }
  0x6f   : > { %745 = vmatpush.bf16.msrb.mxu1 %v3970_v19  ;;  %1015 = vmatpush.bf16.msrb.mxu2 %v3905_v61 }
  0x72   : > { %733 = vmatpush.bf16.msrb.mxu0 %v3967_v18  ;;  %1030 = vmatpush.bf16.msrb.mxu3 %v3967_v18 }
  0x73   : > { %746 = vmatpush.bf16.msrb.mxu1 %v3984_v26  ;;  %1016 = vmatpush.bf16.msrb.mxu2 %v3933_v6 }
  0x76   : > { %1036 = vmatpush.bf16.msra.mxu0 %v3812_v31 }
  0x77   : > { %1307 = vmatpush.bf16.msra.mxu1 %v3768_v16  ;;  %1017 = vmatpush.bf16.msrb.mxu2 %v3961_v15 }
  0x7a   : > { %1037 = vmatpush.bf16.msra.mxu0 %v3837_v39 }
  0x7b   : > { %1320 = vmatpush.bf16.msra.mxu2 %v3779_v20  ;;  %1308 = vmatpush.bf16.msra.mxu1 %v3788_v23 }
  0x7e   : > { %1038 = vmatpush.bf16.msra.mxu0 %v3865_v48 }
  0x7f   : > { %1321 = vmatpush.bf16.msra.mxu2 %v3792_v24  ;;  %1309 = vmatpush.bf16.msra.mxu1 %v3815_v32 }
  0x82   : > { %1039 = vmatpush.bf16.msra.mxu0 %v3893_v57 }
  0x83   : > { %1322 = vmatpush.bf16.msra.mxu2 %v3825_v35  ;;  %1310 = vmatpush.bf16.msra.mxu1 %v3849_v43 }
  0x86   : > { %1040 = vmatpush.bf16.msra.mxu0 %v3921_v2 }
  0x87   : > { %1323 = vmatpush.bf16.msra.mxu2 %v3853_v44  ;;  %1311 = vmatpush.bf16.msra.mxu1 %v3877_v52 }
  0x8a   : > { %1041 = vmatpush.bf16.msra.mxu0 %v3949_v11 }
  0x8b   : > { %1324 = vmatpush.bf16.msra.mxu2 %v3884_v54  ;;  %1312 = vmatpush.bf16.msra.mxu1 %v3905_v61 }
  0x8e   : > { %1042 = vmatpush.bf16.msra.mxu0 %v3970_v19 }
  0x8f   : > { %1325 = vmatpush.bf16.msra.mxu2 %v3909_v62  ;;  %1313 = vmatpush.bf16.msra.mxu1 %v3933_v6 }
  0x92   : > { %1043 = vmatpush.bf16.msra.mxu0 %v3984_v26 }
  0x93   : > { %1326 = vmatpush.bf16.msra.mxu2 %v3937_v7  ;;  %1314 = vmatpush.bf16.msra.mxu1 %v3961_v15 }
  0x97   : > { %1327 = vmatpush.bf16.msra.mxu2 %v3967_v18 }
  0xd2   : > { %v412_v34 = vpop.f32.mrf.mxu0 }
  0xd3   : > { %v443_v40 = vrot.slane %v412_v34, 1  ;;  %v444_v41 = vrot.slane %v412_v34, 2  ;;  %v445_v42 = vrot.slane %v412_v34, 3  ;;  %v449_v45 = vadd.f32 %v412_v34, %v4044_v27 }
  0xd5   : > { %v425_v46 = vpop.f32.mrf.mxu1  ;;  %v450_v53 = vadd.f32 %v4047_v28, %v443_v40  ;;  %v451_v55 = vadd.f32 %v4050_v29, %v444_v41  ;;  %v452_v56 = vadd.f32 %v4053_v30, %v445_v42  ;;  %v3143_v58 = vmul.f32 -1.442695, %v449_v45  ;;  %v4077_v41 = vld [vmem:[%s6158_s2] ss:$0 sm:$0xff] }
  0xd6   : > { %v542_v47 = vrot.slane %v425_v46, 1  ;;  %v543_v49 = vrot.slane %v425_v46, 2  ;;  %v544_v50 = vrot.slane %v425_v46, 3  ;;  %v548_v51 = vadd.f32 %v533_v33, %v425_v46  ;;  %6207 = vst [vmem:[#allocation14_spill] sm:$0xff] %v4077_v41 }
  0xd7   : > { %3319 = vpow2.f32 %v3143_v58  ;;  %v3144_v1 = vmul.f32 -1.442695, %v450_v53  ;;  %v3145_v3 = vmul.f32 -1.442695, %v451_v55  ;;  %v3146_v4 = vmul.f32 -1.442695, %v452_v56 }
  0xd8   : > { %v549_v59 = vadd.f32 %v542_v47, %v534_v36  ;;  %v550_v60 = vadd.f32 %v543_v49, %v535_v37  ;;  %v551_v63 = vadd.f32 %v544_v50, %v536_v38  ;;  %v3147_v0 = vmul.f32 -1.442695, %v548_v51 }
  0xda   : > { %3321 = vpow2.f32 %v3147_v0  ;;  %v3148_v5 = vmul.f32 -1.442695, %v549_v59  ;;  %v3149_v8 = vmul.f32 -1.442695, %v550_v60  ;;  %v3150_v9 = vmul.f32 -1.442695, %v551_v63  ;;  %v414_v10 = vpop.f32.mrf.mxu0 }
  0xdb   : > { %3323 = vpow2.f32 %v3144_v1 }
  0xdc   : > { %3325 = vpow2.f32 %v3145_v3 }
  0xdd   : > { %3327 = vpow2.f32 %v3146_v4  ;;  %v427_v12 = vpop.f32.mrf.mxu1  ;;  %v3320_v13 = vpop.eup %3319 }
  0xde   : > { %3329 = vpow2.f32 %v3148_v5  ;;  %v4063_v22 = vadd.f32 1.0, %v3320_v13 }
  0xdf   : > { %3331 = vpow2.f32 %v3149_v8  ;;  %v438_v14 = vpop.f32.mrf.mxu2 }
  0xe0   : > { %v3322_v21 = vpop.eup %3321  ;;  %3333 = vpow2.f32 %v3150_v9  ;;  %v478_v59 = vand.u32 2147483647, %v4063_v22  ;;  %vm474_vm0 = vweird.f32 %v4063_v22  ;;  %v4101_v1 = vadd.f32 %v4077_v41, %v438_v14 }
  0xe1   : > { %v3324_v25 = vpop.eup %3323  ;;  %v4065_v33 = vadd.f32 1.0, %v3322_v21  ;;  %3335 = vrcp.f32 %v4063_v22  ;;  %v480_v8 = vand.u32 2147483648, %v4063_v22 }
  0xe2   : > { %v3326_v34 = vpop.eup %3325  ;;  %v4067_v36 = vadd.f32 1.0, %v3324_v25  ;;  %vm4122_vm2 = vcmp.eq.f32.partialorder %v478_v59, 8.507059e+37 }
  0xe3   : > { %v3328_v37 = vpop.eup %3327  ;;  %v4070_v38 = vadd.f32 1.0, %v3326_v34  ;;  %3337 = vrcp.f32 %v4065_v33  ;;  %v579_v55 = vand.u32 2147483648, %v4065_v33  ;;  %vm573_vm3 = vweird.f32 %v4065_v33 }
  0xe4   : > { %v3330_v40 = vpop.eup %3329  ;;  %3339 = vrcp.f32 %v4067_v36  ;;  %v4084_v50 = vadd.f32 1.0, %v3328_v37  ;;  %vm489_vm1 = vweird.f32 %v4067_v36  ;;  %v493_v21 = vand.u32 2147483647, %v4067_v36 }
  0xe5   : > { %v3332_v42 = vpop.eup %3331  ;;  %3341 = vrcp.f32 %v4070_v38  ;;  %v4082_v47 = vadd.f32 1.0, %v3330_v40  ;;  %v4115_v12 = vor.u32 1.1754944e-38, %v579_v55  ;;  %v495_v51 = vand.u32 2147483648, %v4067_v36 }
  0xe6   : > { %v3334_v49 = vpop.eup %3333  ;;  %v4087_v53 = vadd.f32 1.0, %v3332_v42  ;;  %vm504_vm8 = vweird.f32 %v4070_v38  ;;  %vm4184_vm14 = vcmp.eq.f32.partialorder %v493_v21, 8.507059e+37 }
  0xe7   : > { %v4091_v58 = vadd.f32 1.0, %v3334_v49  ;;  %3343 = vrcp.f32 %v4082_v47  ;;  %v440_v60 = vpop.f32.mrf.mxu2  ;;  %v4095_v63 = vpop.eup %3335  ;;  %v594_v4 = vand.u32 2147483648, %v4082_v47  ;;  %v592_v14 = vand.u32 2147483647, %v4082_v47 }
  0xe8   : > { %3345 = vrcp.f32 %v4087_v53  ;;  %v470_v5 = vmul.f32 %v4095_v63, %v4063_v22  ;;  %vm475_vm5 = vweird.f32 %v4095_v63  ;;  %vm588_vm6 = vweird.f32 %v4082_v47 }
  0xe9   : > { %v4103_v3 = vpop.eup %3337  ;;  %3347 = vrcp.f32 %v4091_v58  ;;  %v4136_v55 = vor.u32 1.1754944e-38, %v594_v4  ;;  %v481_v60 = vor.u32 1.1754944e-38, %v480_v8  ;;  %vm4162_vm9 = vmor %vm474_vm0, %vm475_vm5  ;;  %vm603_vm10 = vweird.f32 %v4087_v53 }
  0xea   : > { %v4110_v9 = vpop.eup %3339  ;;  %3349 = vrcp.f32 %v4084_v50  ;;  %v569_v10 = vmul.f32 %v4103_v3, %v4065_v33  ;;  %v471_v25 = vsub.f32 1.0, %v470_v5  ;;  %vm574_vm4 = vweird.f32 %v4103_v3 }
  0xeb   : > { %v4118_v13 = vpop.eup %3341  ;;  %v485_v37 = vmul.f32 %v4110_v9, %v4067_v36  ;;  %vm490_vm7 = vweird.f32 %v4110_v9  ;;  %vm4225_vm5 = vcmp.eq.f32.partialorder %v592_v14, 8.507059e+37  ;;  %v525_v14 = vand.u32 2147483648, %v4084_v50 }
  0xec   : > { %v570_v40 = vsub.f32 1.0, %v569_v10  ;;  %v500_v42 = vmul.f32 %v4118_v13, %v4070_v38  ;;  %v472_v59 = vmul.f32 %v4095_v63, %v471_v25  ;;  %vm505_vm11 = vweird.f32 %v4118_v13  ;;  %vm4180_vm13 = vmor %vm489_vm1, %vm490_vm7 }
  0xed   : > { %v4133_v49 = vpop.eup %3343  ;;  %v486_v5 = vsub.f32 1.0, %v485_v37  ;;  %vm4200_vm15 = vmor %vm504_vm8, %vm505_vm11  ;;  %vm519_vm7 = vweird.f32 %v4084_v50 }
  0xee   : > { %v4139_v10 = vpop.eup %3345  ;;  %v584_v56 = vmul.f32 %v4133_v49, %v4082_v47  ;;  %v473_v25 = vadd.f32 %v4095_v63, %v472_v59  ;;  %v571_v45 = vmul.f32 %v4103_v3, %v570_v40  ;;  %v501_v59 = vsub.f32 1.0, %v500_v42 }
  0xef   : > { %v4146_v46 = vpop.eup %3347  ;;  %v599_v4 = vmul.f32 %v4139_v10, %v4087_v53  ;;  %v487_v8 = vmul.f32 %v4110_v9, %v486_v5  ;;  %vm589_vm12 = vweird.f32 %v4133_v49  ;;  %v634_v47 = vrot.slane %v4101_v1, 2 }
  0xf0   : > { %v4153_v37 = vpop.eup %3349  ;;  %v585_v0 = vsub.f32 1.0, %v584_v56  ;;  %v614_v41 = vmul.f32 %v4146_v46, %v4091_v58  ;;  %v477_v15 = vsel %vm4162_vm9, %v4095_v63, %v473_v25  ;;  %v508_v56 = vand.u32 2147483647, %v4070_v38 }
  0xf1   : > { %v600_v5 = vsub.f32 1.0, %v599_v4  ;;  %v488_v40 = vadd.f32 %v4110_v9, %v487_v8  ;;  %v502_v22 = vmul.f32 %v4118_v13, %v501_v59  ;;  %v572_v42 = vadd.f32 %v4103_v3, %v571_v45 }
  0xf2   : > { %v586_v26 = vmul.f32 %v4133_v49, %v585_v0  ;;  %v615_v7 = vsub.f32 1.0, %v614_v41  ;;  %v496_v0 = vor.u32 1.1754944e-38, %v495_v51  ;;  %v510_v41 = vand.u32 2147483648, %v4070_v38 }
  0xf3   : > { %v482_v4 = vsel %vm4122_vm2, %v481_v60, %v477_v15  ;;  %v492_v36 = vsel %vm4180_vm13, %v4110_v9, %v488_v40  ;;  %v503_v25 = vadd.f32 %v4118_v13, %v502_v22  ;;  %v601_v21 = vmul.f32 %v4139_v10, %v600_v5  ;;  %vm4221_vm2 = vmor %vm573_vm3, %vm574_vm4 }
  0xf4   : > { %v587_v8 = vadd.f32 %v4133_v49, %v586_v26  ;;  %vm509_vm0 = vcmp.eq.f32.partialorder %v508_v56, 8.507059e+37  ;;  %v515_v15 = vmul.f32 %v4153_v37, %v4084_v50  ;;  %v6218_v45 = vand.u32 2147483647, %v4065_v33  ;;  %vm4237_vm3 = vmor %vm588_vm6, %vm589_vm12 }
  0xf5   : > { %v616_v26 = vmul.f32 %v4146_v46, %v615_v7  ;;  %v507_v38 = vsel %vm4200_vm15, %v4118_v13, %v503_v25  ;;  %v511_v34 = vor.u32 1.1754944e-38, %v510_v41  ;;  %v523_v60 = vand.u32 2147483647, %v4084_v50 }
  0xf6   : > { %vm4208_vm1 = vcmp.eq.f32.partialorder %v6218_v45, 8.507059e+37  ;;  %v497_v7 = vsel %vm4184_vm14, %v496_v0, %v492_v36  ;;  %v516_v40 = vsub.f32 1.0, %v515_v15  ;;  %vm520_vm8 = vweird.f32 %v4153_v37 }
  0xf7   : > { %v512_v13 = vsel %vm509_vm0, %v511_v34, %v507_v38  ;;  %v576_v56 = vsel %vm4221_vm2, %v4103_v3, %v572_v42  ;;  %v633_v22 = vrot.slane %v4101_v1, 1  ;;  %v591_v63 = vsel %vm4237_vm3, %v4133_v49, %v587_v8  ;;  %vm521_vm9 = vmor %vm519_vm7, %vm520_vm8 }
  0xf8   : > { %v517_v18 = vmul.f32 %v4153_v37, %v516_v40  ;;  %v639_v0 = vmul.f32 %v4101_v1, %v482_v4  ;;  %vm4252_vm4 = vcmp.eq.f32.partialorder %v523_v60, 8.507059e+37  ;;  %v635_v36 = vrot.slane %v4101_v1, 3 }
  0xf9   : > { %v640_v25 = vmul.f32 %v633_v22, %v497_v7  ;;  %v602_v3 = vadd.f32 %v4139_v10, %v601_v21  ;;  %v641_v51 = vmul.f32 %v634_v47, %v512_v13  ;;  %v6229_v15 = vrot.slane %v4044_v27, 2 }
  0xfa   : > { %v518_v42 = vadd.f32 %v4153_v37, %v517_v18  ;;  %vm604_vm6 = vweird.f32 %v4139_v10  ;;  %v526_v49 = vor.u32 1.1754944e-38, %v525_v14  ;;  %v6230_v4 = vrot.slane %v4047_v28, 2 }
  0xfb   : > { %v651_v45 = vadd.f32 %v6229_v15, %v639_v0  ;;  %v607_v8 = vand.u32 2147483647, %v4087_v53  ;;  %v617_v21 = vadd.f32 %v4146_v46, %v616_v26  ;;  %v6231_v27 = vrot.slane %v4050_v29, 2  ;;  %vm4275_vm11 = vmor %vm603_vm10, %vm604_vm6 }
  0xfc   : > { %v652_v1 = vadd.f32 %v6230_v4, %v640_v25  ;;  %v522_v38 = vsel %vm521_vm9, %v4153_v37, %v518_v42  ;;  %vm618_vm12 = vweird.f32 %v4091_v58  ;;  %v606_v50 = vsel %vm4275_vm11, %v4139_v10, %v602_v3 }
  0xfd   : > { %v653_v34 = vadd.f32 %v6231_v27, %v641_v51  ;;  %3351 = vtanh.f32 %v651_v45  ;;  %v527_v28 = vsel %vm4252_vm4, %v526_v49, %v522_v38  ;;  %vm619_vm13 = vweird.f32 %v4146_v46 }
  0xfe   : > { %3353 = vtanh.f32 %v652_v1  ;;  %v6234_v29 = vand.u32 2147483648, %v4087_v53  ;;  %v581_v26 = vsel %vm4208_vm1, %v4115_v12, %v576_v56  ;;  %v642_v59 = vmul.f32 %v635_v36, %v527_v28  ;;  %vm4301_vm14 = vmor %vm618_vm12, %vm619_vm13  ;;  %v6245_v12 = vld [vmem:[#allocation11_spill] sm:$0xff] }
  0xff   : > { %3355 = vtanh.f32 %v653_v34  ;;  %v596_v7 = vsel %vm4225_vm5, %v4136_v55, %v591_v63  ;;  %vm608_vm10 = vcmp.eq.f32.partialorder %v607_v8, 8.507059e+37  ;;  %v622_v40 = vand.u32 2147483647, %v4091_v58 }
 0x100   : > { %v610_v37 = vor.u32 1.1754944e-38, %v6234_v29  ;;  %v624_v10 = vand.u32 2147483648, %v4091_v58  ;;  %v668_v33 = vrot.slane %v3963_v17, 1  ;;  %v6235_v53 = vrot.slane %v4053_v30, 2 }
 0x101   : > { %v659_v9 = vsub.f32 1.0, %v581_v26  ;;  %v621_v55 = vsel %vm4301_vm14, %v4146_v46, %v617_v21  ;;  %v669_v5 = vrot.slane %v3963_v17, 2  ;;  %v660_v22 = vsub.f32 1.0, %v596_v7 }
 0x102   : > { %v654_v13 = vadd.f32 %v6235_v53, %v642_v59  ;;  %v611_v14 = vsel %vm608_vm10, %v610_v37, %v606_v50  ;;  %v625_v18 = vor.u32 1.1754944e-38, %v624_v10  ;;  %vm623_vm15 = vcmp.eq.f32.partialorder %v622_v40, 8.507059e+37  ;;  %v6242_v53 = vld [vmem:[#allocation8_spill] sm:$0xff] }
 0x103   : > { %v3352_v56 = vpop.eup %3351  ;;  %v661_v47 = vsub.f32 1.0, %v611_v14  ;;  %v674_v58 = vmul.f32 %v581_v26, %v3963_v17  ;;  %v675_v25 = vmul.f32 %v668_v33, %v596_v7  ;;  %v670_v42 = vrot.slane %v3963_v17, 3 }
 0x104   : > { %3357 = vtanh.f32 %v654_v13  ;;  %v3354_v30 = vpop.eup %3353  ;;  %v663_v63 = vmul.f32 %v3352_v56, %v659_v9  ;;  %v626_v36 = vsel %vm623_vm15, %v625_v18, %v621_v55  ;;  %v676_v46 = vmul.f32 %v669_v5, %v611_v14  ;;  %v6243_v13 = vld [vmem:[#allocation13_spill] sm:$0xff]  ;;  %v6244_v14 = vld [vmem:[#allocation10_spill] sm:$0xff] }
 0x105   : > { %v3356_v0 = vpop.eup %3355  ;;  %v664_v41 = vmul.f32 %v3354_v30, %v660_v22  ;;  %v662_v45 = vsub.f32 1.0, %v626_v36  ;;  %v677_v38 = vmul.f32 %v670_v42, %v626_v36  ;;  %vm6179_vm0 = vcmask 1041409   ;;  %v4355_v9 = vld [vmem:[%s3754_s6 + $0x1] ss:$8 sm:$0x7] }
 0x106   : > { %v665_v3 = vmul.f32 %v3356_v0, %v661_v47  ;;  %v4311_v51 = vadd.f32 %v674_v58, %v663_v63  ;;  %vm6178_vm1 = vcmask 1042434   ;;  %vm6177_vm2 = vcmask 1043459   ;;  %v4358_v55 = vld [vmem:[%s3754_s6 + $0x19] ss:$8 sm:$0x7] }
 0x107   : > { %v4313_v15 = vadd.f32 %v675_v25, %v664_v41  ;;  %v4361_v5 = vld [vmem:[%s3754_s6 + $0x31] ss:$8 sm:$0x7]  ;;  %v843_v22 = vrot.slane %v4355_v9, 1  ;;  %v844_v18 = vrot.slane %v4358_v55, 1 }
 0x108   : > { %6238 = vst [vmem:[#allocation15_spill] sm:$0xff] %v4311_v51  ;;  %v4315_v49 = vadd.f32 %v676_v46, %v665_v3  ;;  %v690_v1 = vpack.c.bf16 %v4311_v51, %v4311_v51  ;;  %v4364_v56 = vld [vmem:[%s3754_s6 + $0x49] ss:$8 sm:$0x7]  ;;  %v845_v30 = vrot.slane %v4361_v5, 1 }
 0x109   : > { %6239 = vst [vmem:[#allocation16_spill] sm:$0xff] %v4313_v15  ;;  %v691_v8 = vpack.c.bf16 %v4313_v15, %v4313_v15  ;;  %v846_v63 = vrot.slane %v4364_v56, 1 }
 0x10a   : > { %6240 = vst [vmem:[#allocation17_spill] sm:$0xff] %v4315_v49  ;;  %v3358_v4 = vpop.eup %3357  ;;  %v692_v17 = vpack.c.bf16 %v4315_v49, %v4315_v49  ;;  %v698_v28 = vunpack.c.l.b16 %v690_v1 }
 0x10b   : > { %v666_v21 = vmul.f32 %v3358_v4, %v662_v45  ;;  %v699_v27 = vunpack.c.l.b16 %v691_v8 }
 0x10c   : > { %v700_v60 = vunpack.c.l.b16 %v692_v17 }
 0x10d   : > { %v4323_v34 = vadd.f32 %v677_v38, %v666_v21  ;;  %v702_v50 = vrot.slane %v699_v27, 7 }
 0x10e   : > { %v705_v37 = vrot.slane %v700_v60, 6 }
 0x10f   : > { %6241 = vst [vmem:[#allocation18_spill] sm:$0xff] %v4323_v34  ;;  %v693_v29 = vpack.c.bf16 %v4323_v34, %v4323_v34  ;;  %v704_v26 = vsel %vm6179_vm0, %v702_v50, %v698_v28 }
 0x110   : > { %v707_v7 = vsel %vm6178_vm1, %v705_v37, %v704_v26 }
 0x111   : > { %v701_v59 = vunpack.c.l.b16 %v693_v29 }
 0x113   : > { %v708_v40 = vrot.slane %v701_v59, 5 }
 0x115   : > { %v710_v10 = vsel %vm6177_vm2, %v708_v40, %v707_v7 }
 0x116   : > { %v711_v33 = vpack.c.b16 %v710_v10, %v710_v10 }
 0x118   : > { %721 = vmatmul.bf16.vlgmr.msra.gmra.mxu3 %v711_v33  ;;  %734 = vmatmul.bf16.vlgmr.msrb.gmra.mxu0 %v711_v33 }
 0x119   : > { %747 = vmatmul.bf16.vlgmr.msrb.gmra.mxu1 %v711_v33  ;;  %1333 = vmatpush.bf16.msra.mxu3 %v3812_v31 }
 0x11a   : > { %1604 = vmatpush.bf16.msrb.mxu0 %v3768_v16  ;;  %1617 = vmatpush.bf16.msrb.mxu1 %v3779_v20 }
 0x11d   : > { %1334 = vmatpush.bf16.msra.mxu3 %v3837_v39 }
 0x11e   : > { %1605 = vmatpush.bf16.msrb.mxu0 %v3788_v23  ;;  %1618 = vmatpush.bf16.msrb.mxu1 %v3792_v24 }
 0x121   : > { %1335 = vmatpush.bf16.msra.mxu3 %v3865_v48 }
 0x122   : > { %1606 = vmatpush.bf16.msrb.mxu0 %v3815_v32  ;;  %1619 = vmatpush.bf16.msrb.mxu1 %v3825_v35 }
 0x125   : > { %1336 = vmatpush.bf16.msra.mxu3 %v3893_v57 }
 0x126   : > { %1607 = vmatpush.bf16.msrb.mxu0 %v3849_v43  ;;  %1620 = vmatpush.bf16.msrb.mxu1 %v3853_v44 }
 0x129   : > { %1337 = vmatpush.bf16.msra.mxu3 %v3921_v2 }
 0x12a   : > { %1608 = vmatpush.bf16.msrb.mxu0 %v3877_v52  ;;  %1621 = vmatpush.bf16.msrb.mxu1 %v3884_v54 }
 0x12d   : > { %1338 = vmatpush.bf16.msra.mxu3 %v3949_v11 }
 0x12e   : > { %1609 = vmatpush.bf16.msrb.mxu0 %v3905_v61  ;;  %1622 = vmatpush.bf16.msrb.mxu1 %v3909_v62 }
 0x131   : > { %1339 = vmatpush.bf16.msra.mxu3 %v3970_v19 }
 0x132   : > { %1610 = vmatpush.bf16.msrb.mxu0 %v3933_v6  ;;  %1623 = vmatpush.bf16.msrb.mxu1 %v6242_v53 }
 0x135   : > { %1340 = vmatpush.bf16.msra.mxu3 %v6243_v13 }
 0x136   : > { %1611 = vmatpush.bf16.msrb.mxu0 %v6244_v14  ;;  %1624 = vmatpush.bf16.msrb.mxu1 %v6245_v12 }
 0x195   : > { %v735_v47 = vpop.f32.mrf.mxu0 }
 0x196   : > { %v852_v58 = vrot.slane %v735_v47, 1  ;;  %v853_v0 = vrot.slane %v735_v47, 2  ;;  %v854_v41 = vrot.slane %v735_v47, 3  ;;  %v858_v36 = vadd.f32 %v843_v22, %v735_v47  ;;  %v748_v25 = vpop.f32.mrf.mxu1 }
 0x198   : > { %v859_v3 = vadd.f32 %v852_v58, %v844_v18  ;;  %v860_v42 = vadd.f32 %v853_v0, %v845_v30  ;;  %v861_v46 = vadd.f32 %v854_v41, %v846_v63  ;;  %v3159_v45 = vmul.f32 -1.442695, %v858_v36 }
 0x19a   : > { %3359 = vpow2.f32 %v3159_v45  ;;  %v3160_v4 = vmul.f32 -1.442695, %v859_v3  ;;  %v3161_v1 = vmul.f32 -1.442695, %v860_v42  ;;  %v3162_v8 = vmul.f32 -1.442695, %v861_v46 }
 0x19b   : > { %v722_v21 = vpop.f32.mrf.mxu3  ;;  %v6246_v42 = vld [vmem:[#allocation14_spill] sm:$0xff] }
 0x19c   : > { %3361 = vpow2.f32 %v3160_v4  ;;  %v753_v38 = vrot.slane %v722_v21, 1  ;;  %v754_v17 = vrot.slane %v722_v21, 2  ;;  %v755_v27 = vrot.slane %v722_v21, 3 }
 0x19d   : > { %3363 = vpow2.f32 %v3161_v1  ;;  %v759_v60 = vadd.f32 %v4355_v9, %v722_v21  ;;  %v737_v28 = vpop.f32.mrf.mxu0  ;;  %v4387_v46 = vadd.f32 %v6246_v42, %v748_v25 }
 0x19e   : > { %3365 = vpow2.f32 %v3162_v8  ;;  %v760_v50 = vadd.f32 %v4358_v55, %v753_v38  ;;  %v761_v29 = vadd.f32 %v4361_v5, %v754_v17  ;;  %v750_v37 = vpop.f32.mrf.mxu1  ;;  %v762_v7 = vadd.f32 %v4364_v56, %v755_v27 }
 0x19f   : > { %v3155_v26 = vmul.f32 -1.442695, %v759_v60  ;;  %v6257_v19 = vrot.slane %v4387_v46, 1 }
 0x1a0   : > { %v3360_v59 = vpop.eup %3359  ;;  %v3156_v40 = vmul.f32 -1.442695, %v760_v50  ;;  %v3157_v10 = vmul.f32 -1.442695, %v761_v29  ;;  %v3158_v0 = vmul.f32 -1.442695, %v762_v7 }
 0x1a1   : > { %v4374_v33 = vadd.f32 1.0, %v3360_v59  ;;  %3367 = vpow2.f32 %v3155_v26 }
 0x1a2   : > { %v3362_v22 = vpop.eup %3361  ;;  %3369 = vpow2.f32 %v3156_v40 }
 0x1a3   : > { %v3364_v18 = vpop.eup %3363  ;;  %v4376_v30 = vadd.f32 1.0, %v3362_v22  ;;  %3371 = vrcp.f32 %v4374_v33  ;;  %v724_v63 = vpop.f32.mrf.mxu3  ;;  %v889_v1 = vand.u32 2147483648, %v4374_v33  ;;  %v887_v40 = vand.u32 2147483647, %v4374_v33 }
 0x1a4   : > { %v3366_v47 = vpop.eup %3365  ;;  %v4379_v58 = vadd.f32 1.0, %v3364_v18  ;;  %3373 = vpow2.f32 %v3157_v10  ;;  %vm883_vm8 = vweird.f32 %v4374_v33 }
 0x1a5   : > { %v4381_v41 = vadd.f32 1.0, %v3366_v47  ;;  %3375 = vrcp.f32 %v4376_v30  ;;  %v904_v25 = vand.u32 2147483648, %v4376_v30  ;;  %v4417_v10 = vor.u32 1.1754944e-38, %v889_v1 }
 0x1a6   : > { %3377 = vrcp.f32 %v4379_v58  ;;  %vm898_vm6 = vweird.f32 %v4376_v30  ;;  %vm4460_vm14 = vcmp.eq.f32.partialorder %v887_v40, 8.507059e+37  ;;  %vm913_vm2 = vweird.f32 %v4379_v58 }
 0x1a7   : > { %v3368_v36 = vpop.eup %3367  ;;  %3379 = vrcp.f32 %v4381_v41  ;;  %v4424_v42 = vor.u32 1.1754944e-38, %v904_v25 }
 0x1a8   : > { %v3370_v3 = vpop.eup %3369  ;;  %3381 = vpow2.f32 %v3158_v0  ;;  %v4389_v45 = vadd.f32 1.0, %v3368_v36 }
 0x1a9   : > { %v4391_v4 = vpop.eup %3371  ;;  %v4394_v8 = vadd.f32 1.0, %v3370_v3 }
 0x1aa   : > { %v3374_v21 = vpop.eup %3373  ;;  %v879_v38 = vmul.f32 %v4391_v4, %v4374_v33  ;;  %3383 = vrcp.f32 %v4389_v45  ;;  %vm884_vm5 = vweird.f32 %v4391_v4  ;;  %v790_v37 = vand.u32 2147483648, %v4389_v45 }
 0x1ab   : > { %v4400_v27 = vpop.eup %3375  ;;  %v4404_v28 = vadd.f32 1.0, %v3374_v21  ;;  %3385 = vrcp.f32 %v4394_v8  ;;  %vm784_vm7 = vweird.f32 %v4389_v45  ;;  %vm799_vm4 = vweird.f32 %v4394_v8 }
 0x1ac   : > { %v4407_v50 = vpop.eup %3377  ;;  %v894_v29 = vmul.f32 %v4400_v27, %v4376_v30  ;;  %v880_v47 = vsub.f32 1.0, %v879_v38  ;;  %v788_v38 = vand.u32 2147483647, %v4389_v45  ;;  %vm899_vm3 = vweird.f32 %v4400_v27 }
 0x1ad   : > { %v4414_v7 = vpop.eup %3379  ;;  %v909_v21 = vmul.f32 %v4407_v50, %v4379_v58  ;;  %3387 = vrcp.f32 %v4404_v28  ;;  %v805_v17 = vand.u32 2147483648, %v4394_v8  ;;  %v791_v12 = vor.u32 1.1754944e-38, %v790_v37 }
 0x1ae   : > { %v3382_v63 = vpop.eup %3381  ;;  %v895_v18 = vsub.f32 1.0, %v894_v29  ;;  %v924_v25 = vmul.f32 %v4414_v7, %v4381_v41  ;;  %v881_v0 = vmul.f32 %v4391_v4, %v880_v47  ;;  %vm4448_vm9 = vcmp.eq.f32.partialorder %v788_v38, 8.507059e+37 }
 0x1af   : > { %v4428_v26 = vadd.f32 1.0, %v3382_v63  ;;  %v803_v63 = vand.u32 2147483647, %v4394_v8  ;;  %v910_v22 = vsub.f32 1.0, %v909_v21  ;;  %v806_v61 = vor.u32 1.1754944e-38, %v805_v17 }
 0x1b0   : > { %v3384_v1 = vpop.eup %3383  ;;  %v896_v59 = vmul.f32 %v4400_v27, %v895_v18  ;;  %v925_v53 = vsub.f32 1.0, %v924_v25  ;;  %vm814_vm10 = vweird.f32 %v4404_v28  ;;  %v818_v25 = vand.u32 2147483647, %v4404_v28 }
 0x1b1   : > { %v3386_v36 = vpop.eup %3385  ;;  %v780_v3 = vmul.f32 %v3384_v1, %v4389_v45  ;;  %3389 = vrcp.f32 %v4428_v26  ;;  %vm785_vm11 = vweird.f32 %v3384_v1  ;;  %vm4452_vm12 = vcmp.eq.f32.partialorder %v803_v63, 8.507059e+37 }
 0x1b2   : > { %v795_v29 = vmul.f32 %v3386_v36, %v4394_v8  ;;  %vm800_vm13 = vweird.f32 %v3386_v36  ;;  %v911_v38 = vmul.f32 %v4407_v50, %v910_v22  ;;  %vm786_vm15 = vmor %vm784_vm7, %vm785_vm11  ;;  %v833_v8 = vand.u32 2147483647, %v4428_v26 }
 0x1b3   : > { %v781_v60 = vsub.f32 1.0, %v780_v3  ;;  %v3388_v13 = vpop.eup %3387  ;;  %v882_v3 = vadd.f32 %v4391_v4, %v881_v0  ;;  %vm801_vm1 = vmor %vm799_vm4, %vm800_vm13  ;;  %vm829_vm4 = vweird.f32 %v4428_v26  ;;  %vm929_vm13 = vweird.f32 %v4414_v7 }
 0x1b4   : > { %v796_v14 = vsub.f32 1.0, %v795_v29  ;;  %v810_v18 = vmul.f32 %v3388_v13, %v4404_v28  ;;  %vm815_vm0 = vweird.f32 %v3388_v13  ;;  %vm4481_vm7 = vmor %vm883_vm8, %vm884_vm5  ;;  %vm819_vm5 = vcmp.eq.f32.partialorder %v818_v25, 8.507059e+37 }
 0x1b5   : > { %v782_v6 = vmul.f32 %v3384_v1, %v781_v60  ;;  %v897_v60 = vadd.f32 %v4400_v27, %v896_v59  ;;  %v820_v59 = vand.u32 2147483648, %v4404_v28  ;;  %vm816_vm8 = vmor %vm814_vm10, %vm815_vm0  ;;  %vm914_vm0 = vweird.f32 %v4407_v50 }
 0x1b6   : > { %v797_v21 = vmul.f32 %v3386_v36, %v796_v14  ;;  %v811_v14 = vsub.f32 1.0, %v810_v18  ;;  %v6258_v18 = vrot.slane %v4355_v9, 2  ;;  %vm834_vm11 = vcmp.eq.f32.partialorder %v833_v8, 8.507059e+37 }
 0x1b7   : > { %v783_v62 = vadd.f32 %v3384_v1, %v782_v6  ;;  %v3390_v63 = vpop.eup %3389  ;;  %v926_v6 = vmul.f32 %v4414_v7, %v925_v53  ;;  %v6266_v37 = vrot.slane %v4387_v46, 3  ;;  %vm928_vm10 = vweird.f32 %v4381_v41 }
 0x1b8   : > { %v798_v0 = vadd.f32 %v3386_v36, %v797_v21  ;;  %v812_v22 = vmul.f32 %v3388_v13, %v811_v14  ;;  %v825_v29 = vmul.f32 %v3390_v63, %v4428_v26  ;;  %v821_v21 = vor.u32 1.1754944e-38, %v820_v59 }
 0x1b9   : > { %v787_v17 = vsel %vm786_vm15, %v3384_v1, %v783_v62  ;;  %v835_v1 = vand.u32 2147483648, %v4428_v26  ;;  %v886_v14 = vsel %vm4481_vm7, %v4391_v4, %v882_v3  ;;  %v912_v59 = vadd.f32 %v4407_v50, %v911_v38 }
 0x1ba   : > { %v792_v45 = vsel %vm4448_vm9, %v791_v12, %v787_v17  ;;  %v802_v40 = vsel %vm801_vm1, %v3386_v36, %v798_v0  ;;  %vm4494_vm1 = vmor %vm898_vm6, %vm899_vm3  ;;  %v813_v33 = vadd.f32 %v3388_v13, %v812_v22  ;;  %v826_v47 = vsub.f32 1.0, %v825_v29 }
 0x1bb   : > { %v807_v53 = vsel %vm4452_vm12, %v806_v61, %v802_v40  ;;  %v946_v12 = vmul.f32 %v4387_v46, %v792_v45  ;;  %v901_v25 = vsel %vm4494_vm1, %v4400_v27, %v897_v60  ;;  %vm830_vm3 = vweird.f32 %v3390_v63  ;;  %vm4528_vm12 = vmor %vm913_vm2, %vm914_vm0 }
 0x1bc   : > { %v947_v61 = vmul.f32 %v6257_v19, %v807_v53  ;;  %v817_v17 = vsel %vm816_vm8, %v3388_v13, %v813_v33  ;;  %v827_v45 = vmul.f32 %v3390_v63, %v826_v47  ;;  %v6259_v40 = vrot.slane %v4358_v55, 2  ;;  %vm831_vm9 = vmor %vm829_vm4, %vm830_vm3 }
 0x1bd   : > { %v958_v0 = vadd.f32 %v6258_v18, %v946_v12  ;;  %v822_v28 = vsel %vm819_vm5, %v821_v21, %v817_v17  ;;  %v6260_v4 = vrot.slane %v4387_v46, 2  ;;  %v6261_v13 = vand.u32 2147483647, %v4376_v30 }
 0x1be   : > { %v959_v22 = vadd.f32 %v6259_v40, %v947_v61  ;;  %v828_v9 = vadd.f32 %v3390_v63, %v827_v45  ;;  %v6262_v27 = vand.u32 2147483648, %v4379_v58  ;;  %v836_v60 = vor.u32 1.1754944e-38, %v835_v1 }
 0x1bf   : > { %3391 = vtanh.f32 %v958_v0  ;;  %v948_v3 = vmul.f32 %v6260_v4, %v822_v28  ;;  %vm903_vm6 = vcmp.eq.f32.partialorder %v6261_v13, 8.507059e+37  ;;  %v891_v38 = vsel %vm4460_vm14, %v4417_v10, %v886_v14  ;;  %vm930_vm14 = vmor %vm928_vm10, %vm929_vm13 }
 0x1c0   : > { %3393 = vtanh.f32 %v959_v22  ;;  %v920_v55 = vor.u32 1.1754944e-38, %v6262_v27  ;;  %v832_v29 = vsel %vm831_vm9, %v3390_v63, %v828_v9  ;;  %v906_v26 = vsel %vm903_vm6, %v4424_v42, %v901_v25 }
 0x1c1   : > { %v6265_v30 = vrot.slane %v4361_v5, 2  ;;  %v837_v12 = vsel %vm834_vm11, %v836_v60, %v832_v29  ;;  %v916_v1 = vsel %vm4528_vm12, %v4407_v50, %v912_v59  ;;  %v927_v10 = vadd.f32 %v4414_v7, %v926_v6 }
 0x1c2   : > { %v934_v42 = vand.u32 2147483648, %v4381_v41  ;;  %v949_v63 = vmul.f32 %v6266_v37, %v837_v12  ;;  %v966_v8 = vsub.f32 1.0, %v891_v38  ;;  %v6267_v5 = vand.u32 2147483647, %v4379_v58 }
 0x1c3   : > { %v960_v53 = vadd.f32 %v6265_v30, %v948_v3  ;;  %v932_v33 = vand.u32 2147483647, %v4381_v41  ;;  %v967_v50 = vsub.f32 1.0, %v906_v26  ;;  %v6268_v19 = vrot.slane %v4364_v56, 2 }
 0x1c4   : > { %vm918_vm2 = vcmp.eq.f32.partialorder %v6267_v5, 8.507059e+37  ;;  %v931_v46 = vsel %vm930_vm14, %v4414_v7, %v927_v10  ;;  %v974_v0 = vmul.f32 %v891_v38, %v4311_v51  ;;  %v975_v58 = vmul.f32 %v906_v26, %v4313_v15  ;;  %v6279_v5 = vld [vmem:[#allocation7_spill] sm:$0xff] }
 0x1c5   : > { %3395 = vtanh.f32 %v960_v53  ;;  %v3392_v36 = vpop.eup %3391  ;;  %v921_v6 = vsel %vm918_vm2, %v920_v55, %v916_v1  ;;  %v961_v61 = vadd.f32 %v6268_v19, %v949_v63  ;;  %v935_v14 = vor.u32 1.1754944e-38, %v934_v42  ;;  %v6276_v63 = vld [vmem:[#allocation5_spill] sm:$0xff] }
 0x1c6   : > { %v3394_v47 = vpop.eup %3393  ;;  %v970_v21 = vmul.f32 %v3392_v36, %v966_v8  ;;  %vm933_vm15 = vcmp.eq.f32.partialorder %v932_v33, 8.507059e+37  ;;  %v968_v25 = vsub.f32 1.0, %v921_v6  ;;  %v976_v22 = vmul.f32 %v921_v6, %v4315_v49  ;;  %v6277_v8 = vld [vmem:[#allocation6_spill] sm:$0xff]  ;;  %v6278_v36 = vld [vmem:[#allocation12_spill] sm:$0xff]  ;;  %v6283_v6 = vld [vmem:[#allocation11_spill] sm:$0xff] }
 0x1c7   : > { %v971_v18 = vmul.f32 %v3394_v47, %v967_v50  ;;  %3397 = vtanh.f32 %v961_v61  ;;  %v936_v40 = vsel %vm933_vm15, %v935_v14, %v931_v46  ;;  %vm6273_vm7 = vcmask 1041409   ;;  %v6280_v33 = vld [vmem:[#allocation8_spill] sm:$0xff]  ;;  %v6281_v50 = vld [vmem:[#allocation13_spill] sm:$0xff]  ;;  %v6282_v47 = vld [vmem:[#allocation10_spill] sm:$0xff] }
 0x1c8   : > { %v4551_v41 = vadd.f32 %v974_v0, %v970_v21  ;;  %v969_v28 = vsub.f32 1.0, %v936_v40  ;;  %v977_v27 = vmul.f32 %v936_v40, %v4323_v34  ;;  %vm6274_vm1 = vcmask 1042434   ;;  %v4597_v61 = vld [vmem:[%s3754_s6 + $0x2] ss:$8 sm:$0x7] }
 0x1c9   : > { %v4553_v17 = vadd.f32 %v975_v58, %v971_v18  ;;  %vm6275_vm5 = vcmask 1043459   ;;  %v4600_v21 = vld [vmem:[%s3754_s6 + $0x1a] ss:$8 sm:$0x7]  ;;  %v1140_v46 = vrot.slane %v4597_v61, 1 }
 0x1ca   : > { %6269 = vst [vmem:[#allocation14_spill] sm:$0xff] %v4551_v41  ;;  %v990_v9 = vpack.c.bf16 %v4551_v41, %v4551_v41  ;;  %v4604_v18 = vld [vmem:[%s3754_s6 + $0x32] ss:$8 sm:$0x7]  ;;  %v1141_v14 = vrot.slane %v4600_v21, 1 }
 0x1cb   : > { %6270 = vst [vmem:[#allocation19_spill] sm:$0xff] %v4553_v17  ;;  %v3396_v45 = vpop.eup %3395  ;;  %v991_v7 = vpack.c.bf16 %v4553_v17, %v4553_v17 }
 0x1cc   : > { %v972_v56 = vmul.f32 %v3396_v45, %v968_v25  ;;  %v998_v29 = vunpack.c.l.b16 %v990_v9 }
 0x1cd   : > { %v999_v4 = vunpack.c.l.b16 %v991_v7  ;;  %v3398_v3 = vpop.eup %3397  ;;  %v1142_v7 = vrot.slane %v4604_v18, 1 }
 0x1ce   : > { %v4558_v59 = vadd.f32 %v976_v22, %v972_v56  ;;  %v973_v13 = vmul.f32 %v3398_v3, %v969_v28  ;;  %v4609_v22 = vld [vmem:[%s3754_s6 + $0x4a] ss:$8 sm:$0x7] }
 0x1cf   : > { %v1002_v60 = vrot.slane %v999_v4, 7 }
 0x1d0   : > { %6271 = vst [vmem:[#allocation20_spill] sm:$0xff] %v4558_v59  ;;  %v992_v55 = vpack.c.bf16 %v4558_v59, %v4558_v59  ;;  %v4565_v38 = vadd.f32 %v977_v27, %v973_v13 }
 0x1d1   : > { %v1003_v30 = vsel %vm6273_vm7, %v1002_v60, %v998_v29 }
 0x1d2   : > { %6272 = vst [vmem:[#allocation21_spill] sm:$0xff] %v4565_v38  ;;  %v1000_v26 = vunpack.c.l.b16 %v992_v55  ;;  %v993_v62 = vpack.c.bf16 %v4565_v38, %v4565_v38 }
 0x1d4   : > { %v1004_v53 = vrot.slane %v1000_v26, 6  ;;  %v1001_v12 = vunpack.c.l.b16 %v993_v62 }
 0x1d6   : > { %v1005_v1 = vsel %vm6274_vm1, %v1004_v53, %v1003_v30  ;;  %v1006_v10 = vrot.slane %v1001_v12, 5 }
 0x1d8   : > { %v1007_v42 = vsel %vm6275_vm5, %v1006_v10, %v1005_v1  ;;  %v1143_v1 = vrot.slane %v4609_v22, 1 }
 0x1d9   : > { %v1008_v37 = vpack.c.b16 %v1007_v42, %v1007_v42 }
 0x1db   : > { %1018 = vmatmul.bf16.vlgmr.msrb.gmra.mxu2 %v1008_v37  ;;  %1031 = vmatmul.bf16.vlgmr.msrb.gmra.mxu3 %v1008_v37 }
 0x1dc   : > { %1044 = vmatmul.bf16.vlgmr.msra.gmra.mxu0 %v1008_v37  ;;  %1630 = vmatpush.bf16.msrb.mxu2 %v3812_v31 }
 0x1dd   : > { %1901 = vmatpush.bf16.msrb.mxu3 %v3768_v16  ;;  %1914 = vmatpush.bf16.msra.mxu0 %v3779_v20 }
 0x1e0   : > { %1631 = vmatpush.bf16.msrb.mxu2 %v3837_v39 }
 0x1e1   : > { %1902 = vmatpush.bf16.msrb.mxu3 %v3788_v23  ;;  %1915 = vmatpush.bf16.msra.mxu0 %v3792_v24 }
 0x1e4   : > { %1632 = vmatpush.bf16.msrb.mxu2 %v3865_v48 }
 0x1e5   : > { %1903 = vmatpush.bf16.msrb.mxu3 %v3815_v32  ;;  %1916 = vmatpush.bf16.msra.mxu0 %v3825_v35 }
 0x1e8   : > { %1633 = vmatpush.bf16.msrb.mxu2 %v3893_v57 }
 0x1e9   : > { %1904 = vmatpush.bf16.msrb.mxu3 %v3849_v43  ;;  %1917 = vmatpush.bf16.msra.mxu0 %v3853_v44 }
 0x1ec   : > { %1634 = vmatpush.bf16.msrb.mxu2 %v3921_v2 }
 0x1ed   : > { %1905 = vmatpush.bf16.msrb.mxu3 %v3877_v52  ;;  %1918 = vmatpush.bf16.msra.mxu0 %v3884_v54 }
 0x1f0   : > { %1635 = vmatpush.bf16.msrb.mxu2 %v3949_v11 }
 0x1f1   : > { %1906 = vmatpush.bf16.msrb.mxu3 %v6276_v63  ;;  %1919 = vmatpush.bf16.msra.mxu0 %v6277_v8 }
 0x1f4   : > { %1636 = vmatpush.bf16.msrb.mxu2 %v6278_v36 }
 0x1f5   : > { %1907 = vmatpush.bf16.msrb.mxu3 %v6279_v5  ;;  %1920 = vmatpush.bf16.msra.mxu0 %v6280_v33 }
 0x1f8   : > { %1637 = vmatpush.bf16.msrb.mxu2 %v6281_v50 }
 0x1f9   : > { %1908 = vmatpush.bf16.msrb.mxu3 %v6282_v47  ;;  %1921 = vmatpush.bf16.msra.mxu0 %v6283_v6 }
 0x259   : > { %v1045_v19 = vpop.f32.mrf.mxu0 }
 0x25e   : > { %v1019_v0 = vpop.f32.mrf.mxu2  ;;  %v1032_v58 = vpop.f32.mrf.mxu3 }
 0x25f   : > { %v1050_v25 = vrot.slane %v1019_v0, 1  ;;  %v1051_v45 = vrot.slane %v1019_v0, 2  ;;  %v1052_v40 = vrot.slane %v1019_v0, 3  ;;  %v1056_v56 = vadd.f32 %v4597_v61, %v1019_v0 }
 0x260   : > { %v1149_v28 = vrot.slane %v1032_v58, 1  ;;  %v1150_v9 = vrot.slane %v1032_v58, 2  ;;  %v1155_v4 = vadd.f32 %v1140_v46, %v1032_v58  ;;  %v1151_v10 = vrot.slane %v1032_v58, 3 }
 0x261   : > { %v1057_v3 = vadd.f32 %v4600_v21, %v1050_v25  ;;  %v1058_v13 = vadd.f32 %v4604_v18, %v1051_v45  ;;  %v1059_v27 = vadd.f32 %v4609_v22, %v1052_v40  ;;  %v3167_v55 = vmul.f32 -1.442695, %v1056_v56  ;;  %v1047_v60 = vpop.f32.mrf.mxu0 }
 0x262   : > { %v1156_v30 = vadd.f32 %v1149_v28, %v1141_v14  ;;  %v1157_v53 = vadd.f32 %v1150_v9, %v1142_v7  ;;  %v3171_v12 = vmul.f32 -1.442695, %v1155_v4  ;;  %v1158_v40 = vadd.f32 %v1151_v10, %v1143_v1  ;;  %v4621_v14 = vld [vmem:[%s6158_s2] ss:$0 sm:$0xff] }
 0x263   : > { %3399 = vpow2.f32 %v3167_v55  ;;  %v3168_v29 = vmul.f32 -1.442695, %v1057_v3  ;;  %v3169_v26 = vmul.f32 -1.442695, %v1058_v13  ;;  %v3170_v62 = vmul.f32 -1.442695, %v1059_v27 }
 0x264   : > { %v3172_v46 = vmul.f32 -1.442695, %v1156_v30  ;;  %v3173_v25 = vmul.f32 -1.442695, %v1157_v53  ;;  %6284 = vst [vmem:[#allocation22_spill] sm:$0xff] %v4621_v14  ;;  %v4624_v7 = vadd.f32 %v4621_v14, %v1045_v19 }
 0x265   : > { %3401 = vpow2.f32 %v3168_v29  ;;  %v3174_v13 = vmul.f32 -1.442695, %v1158_v40 }
 0x266   : > { %3403 = vpow2.f32 %v3169_v26  ;;  %v1021_v42 = vpop.f32.mrf.mxu2  ;;  %v1034_v37 = vpop.f32.mrf.mxu3 }
 0x267   : > { %3405 = vpow2.f32 %v3170_v62 }
 0x268   : > { %3407 = vpow2.f32 %v3171_v12 }
 0x269   : > { %v3400_v0 = vpop.eup %3399  ;;  %3409 = vpow2.f32 %v3172_v46 }
 0x26a   : > { %v4616_v45 = vadd.f32 1.0, %v3400_v0 }
 0x26b   : > { %v3402_v56 = vpop.eup %3401 }
 0x26c   : > { %v3404_v58 = vpop.eup %3403  ;;  %v4626_v28 = vadd.f32 1.0, %v3402_v56  ;;  %3411 = vrcp.f32 %v4616_v45  ;;  %v1085_v19 = vand.u32 2147483647, %v4616_v45  ;;  %v1087_v60 = vand.u32 2147483648, %v4616_v45 }
 0x26d   : > { %v3406_v9 = vpop.eup %3405  ;;  %v4629_v4 = vadd.f32 1.0, %v3404_v58  ;;  %3413 = vpow2.f32 %v3173_v25  ;;  %vm1081_vm8 = vweird.f32 %v4616_v45 }
 0x26e   : > { %v4631_v3 = vadd.f32 1.0, %v3406_v9  ;;  %3415 = vrcp.f32 %v4626_v28  ;;  %v3408_v27 = vpop.eup %3407  ;;  %v1100_v53 = vand.u32 2147483647, %v4626_v28  ;;  %v1102_v37 = vand.u32 2147483648, %v4626_v28 }
 0x26f   : > { %3417 = vrcp.f32 %v4629_v4  ;;  %v3410_v30 = vpop.eup %3409  ;;  %v4648_v46 = vadd.f32 1.0, %v3408_v27  ;;  %vm4651_vm3 = vcmp.eq.f32.partialorder %v1085_v19, 8.507059e+37  ;;  %v1088_v56 = vor.u32 1.1754944e-38, %v1087_v60 }
 0x270   : > { %3419 = vrcp.f32 %v4631_v3  ;;  %vm1096_vm0 = vweird.f32 %v4626_v28  ;;  %vm1111_vm4 = vweird.f32 %v4629_v4  ;;  %v1115_v9 = vand.u32 2147483647, %v4629_v4 }
 0x271   : > { %3421 = vpow2.f32 %v3174_v13  ;;  %v4658_v10 = vadd.f32 1.0, %v3410_v30  ;;  %vm4662_vm6 = vcmp.eq.f32.partialorder %v1100_v53, 8.507059e+37  ;;  %v1117_v60 = vand.u32 2147483648, %v4629_v4 }
 0x272   : > { %v3412_v42 = vpop.eup %3411  ;;  %3423 = vrcp.f32 %v4648_v46  ;;  %v1103_v12 = vor.u32 1.1754944e-38, %v1102_v37  ;;  %v1130_v30 = vand.u32 2147483647, %v4631_v3  ;;  %vm4675_vm11 = vcmp.eq.f32.partialorder %v1115_v9, 8.507059e+37 }
 0x273   : > { %v3414_v0 = vpop.eup %3413  ;;  %v1077_v25 = vmul.f32 %v3412_v42, %v4616_v45  ;;  %vm1082_vm9 = vweird.f32 %v3412_v42  ;;  %vm1126_vm12 = vweird.f32 %v4631_v3  ;;  %v1132_v37 = vand.u32 2147483648, %v4631_v3 }
 0x274   : > { %v3416_v58 = vpop.eup %3415  ;;  %v4671_v29 = vadd.f32 1.0, %v3414_v0  ;;  %3425 = vrcp.f32 %v4658_v10  ;;  %vm1083_vm2 = vmor %vm1081_vm8, %vm1082_vm9  ;;  %v1118_v9 = vor.u32 1.1754944e-38, %v1117_v60  ;;  %vm4694_vm15 = vcmp.eq.f32.partialorder %v1130_v30, 8.507059e+37 }
 0x275   : > { %v3418_v13 = vpop.eup %3417  ;;  %v1078_v27 = vsub.f32 1.0, %v1077_v25  ;;  %v1092_v26 = vmul.f32 %v3416_v58, %v4626_v28  ;;  %vm1097_vm13 = vweird.f32 %v3416_v58  ;;  %v1133_v60 = vor.u32 1.1754944e-38, %v1132_v37 }
 0x276   : > { %v4667_v1 = vpop.eup %3419  ;;  %v1107_v62 = vmul.f32 %v3418_v13, %v4629_v4  ;;  %vm1112_vm10 = vweird.f32 %v3418_v13  ;;  %3427 = vrcp.f32 %v4671_v29  ;;  %vm1098_vm14 = vmor %vm1096_vm0, %vm1097_vm13  ;;  %v6293_v4 = vrot.slane %v4624_v7, 1 }
 0x277   : > { %v1079_v55 = vmul.f32 %v3412_v42, %v1078_v27  ;;  %v1093_v25 = vsub.f32 1.0, %v1092_v26  ;;  %v1122_v53 = vmul.f32 %v4667_v1, %v4631_v3  ;;  %v3422_v34 = vpop.eup %3421  ;;  %vm1113_vm7 = vmor %vm1111_vm4, %vm1112_vm10  ;;  %vm1127_vm1 = vweird.f32 %v4667_v1 }
 0x278   : > { %v1108_v49 = vsub.f32 1.0, %v1107_v62  ;;  %v4682_v26 = vpop.eup %3423  ;;  %vm1180_vm5 = vweird.f32 %v4648_v46  ;;  %v6294_v37 = vrot.slane %v4624_v7, 2  ;;  %vm4721_vm8 = vmor %vm1126_vm12, %vm1127_vm1  ;;  %vm1210_vm13 = vweird.f32 %v4671_v29 }
 0x279   : > { %v1080_v0 = vadd.f32 %v3412_v42, %v1079_v55  ;;  %v1094_v51 = vmul.f32 %v3416_v58, %v1093_v25  ;;  %v1123_v27 = vsub.f32 1.0, %v1122_v53  ;;  %v1176_v55 = vmul.f32 %v4682_v26, %v4648_v46 }
 0x27a   : > { %v1109_v62 = vmul.f32 %v3418_v13, %v1108_v49  ;;  %v3426_v40 = vpop.eup %3425  ;;  %vm1181_vm0 = vweird.f32 %v4682_v26 }
 0x27b   : > { %v1084_v14 = vsel %vm1083_vm2, %v3412_v42, %v1080_v0  ;;  %v1095_v6 = vadd.f32 %v3416_v58, %v1094_v51  ;;  %v1124_v47 = vmul.f32 %v4667_v1, %v1123_v27  ;;  %v4701_v42 = vadd.f32 1.0, %v3422_v34  ;;  %vm4744_vm9 = vmor %vm1180_vm5, %vm1181_vm0 }
 0x27c   : > { %v1089_v25 = vsel %vm4651_vm3, %v1088_v56, %v1084_v14  ;;  %v1110_v45 = vadd.f32 %v3418_v13, %v1109_v62  ;;  %v1177_v0 = vsub.f32 1.0, %v1176_v55  ;;  %v1184_v34 = vand.u32 2147483647, %v4648_v46  ;;  %v3428_v30 = vpop.eup %3427 }
 0x27d   : > { %v1099_v53 = vsel %vm1098_vm14, %v3416_v58, %v1095_v6  ;;  %v1243_v51 = vmul.f32 %v4624_v7, %v1089_v25  ;;  %v1125_v56 = vadd.f32 %v4667_v1, %v1124_v47  ;;  %v1191_v27 = vmul.f32 %v3426_v40, %v4658_v10 }
 0x27e   : > { %v1104_v14 = vsel %vm4662_vm6, %v1103_v12, %v1099_v53  ;;  %v1114_v28 = vsel %vm1113_vm7, %v3418_v13, %v1110_v45  ;;  %v6295_v12 = vrot.slane %v4597_v61, 2  ;;  %v1178_v47 = vmul.f32 %v4682_v26, %v1177_v0 }
 0x27f   : > { %v1119_v6 = vsel %vm4675_vm11, %v1118_v9, %v1114_v28  ;;  %v1244_v58 = vmul.f32 %v6293_v4, %v1104_v14  ;;  %v6298_v62 = vrot.slane %v4600_v21, 2  ;;  %v1186_v55 = vand.u32 2147483648, %v4648_v46 }
 0x280   : > { %v1245_v19 = vmul.f32 %v6294_v37, %v1119_v6  ;;  %v1255_v13 = vadd.f32 %v6295_v12, %v1243_v51  ;;  %vm1195_vm3 = vweird.f32 %v4658_v10  ;;  %v1199_v61 = vand.u32 2147483647, %v4658_v10 }
 0x281   : > { %v1256_v9 = vadd.f32 %v6298_v62, %v1244_v58  ;;  %v1129_v25 = vsel %vm4721_vm8, %v4667_v1, %v1125_v56  ;;  %v6299_v45 = vrot.slane %v4604_v18, 2  ;;  %v1192_v53 = vsub.f32 1.0, %v1191_v27 }
 0x282   : > { %v1206_v51 = vmul.f32 %v3428_v30, %v4671_v29  ;;  %v1179_v21 = vadd.f32 %v4682_v26, %v1178_v47  ;;  %v1201_v0 = vand.u32 2147483648, %v4658_v10  ;;  %vm1196_vm4 = vweird.f32 %v3426_v40 }
 0x283   : > { %v1257_v3 = vadd.f32 %v6299_v45, %v1245_v19  ;;  %3429 = vtanh.f32 %v1256_v9  ;;  %v1193_v14 = vmul.f32 %v3426_v40, %v1192_v53  ;;  %v1134_v1 = vsel %vm4694_vm15, %v1133_v60, %v1129_v25  ;;  %vm1197_vm11 = vmor %vm1195_vm3, %vm1196_vm4 }
 0x284   : > { %3431 = vtanh.f32 %v1255_v13  ;;  %v1207_v28 = vsub.f32 1.0, %v1206_v51  ;;  %vm1211_vm6 = vweird.f32 %v3428_v30  ;;  %v1216_v18 = vand.u32 2147483648, %v4671_v29 }
 0x285   : > { %3433 = vtanh.f32 %v1257_v3  ;;  %v1194_v6 = vadd.f32 %v3426_v40, %v1193_v14  ;;  %v1214_v58 = vand.u32 2147483647, %v4671_v29  ;;  %v1183_v49 = vsel %vm4744_vm9, %v4682_v26, %v1179_v21  ;;  %vm1212_vm10 = vmor %vm1210_vm13, %vm1211_vm6 }
 0x286   : > { %v1208_v4 = vmul.f32 %v3428_v30, %v1207_v28  ;;  %3435 = vrcp.f32 %v4701_v42  ;;  %v1187_v60 = vor.u32 1.1754944e-38, %v1186_v55  ;;  %vm1200_vm12 = vcmp.eq.f32.partialorder %v1199_v61, 8.507059e+37 }
 0x287   : > { %v1202_v46 = vor.u32 1.1754944e-38, %v1201_v0  ;;  %v6302_v37 = vrot.slane %v4624_v7, 3  ;;  %v1198_v12 = vsel %vm1197_vm11, %v3426_v40, %v1194_v6  ;;  %vm1185_vm2 = vcmp.eq.f32.partialorder %v1184_v34, 8.507059e+37 }
 0x288   : > { %v1209_v13 = vadd.f32 %v3428_v30, %v1208_v4  ;;  %v1217_v27 = vor.u32 1.1754944e-38, %v1216_v18  ;;  %v1188_v62 = vsel %vm1185_vm2, %v1187_v60, %v1183_v49  ;;  %vm1215_vm14 = vcmp.eq.f32.partialorder %v1214_v58, 8.507059e+37 }
 0x289   : > { %v1246_v19 = vmul.f32 %v6302_v37, %v1134_v1  ;;  %v3430_v47 = vpop.eup %3429  ;;  %v1203_v15 = vsel %vm1200_vm12, %v1202_v46, %v1198_v12  ;;  %v6303_v7 = vrot.slane %v4609_v22, 2  ;;  %v1263_v53 = vsub.f32 1.0, %v1188_v62 }
 0x28a   : > { %v3432_v26 = vpop.eup %3431  ;;  %v1213_v10 = vsel %vm1212_vm10, %v3428_v30, %v1209_v13  ;;  %v1264_v9 = vsub.f32 1.0, %v1203_v15  ;;  %v1272_v29 = vmul.f32 %v1203_v15, %v4553_v17  ;;  %v1229_v28 = vand.u32 2147483647, %v4701_v42 }
 0x28b   : > { %v3434_v55 = vpop.eup %3433  ;;  %v1218_v61 = vsel %vm1215_vm14, %v1217_v27, %v1213_v10  ;;  %v1258_v40 = vadd.f32 %v6303_v7, %v1246_v19  ;;  %v1267_v14 = vmul.f32 %v3432_v26, %v1263_v53  ;;  %v1231_v22 = vand.u32 2147483648, %v4701_v42  ;;  %v4813_v53 = vld [vmem:[%s3754_s6 + $0x3] ss:$8 sm:$0x7] }
 0x28c   : > { %v3436_v25 = vpop.eup %3435  ;;  %v1265_v45 = vsub.f32 1.0, %v1218_v61  ;;  %v1268_v3 = vmul.f32 %v3430_v47, %v1264_v9  ;;  %v1273_v21 = vmul.f32 %v1218_v61, %v4558_v59  ;;  %v1271_v56 = vmul.f32 %v1188_v62, %v4551_v41 }
 0x28d   : > { %v1221_v34 = vmul.f32 %v3436_v25, %v4701_v42  ;;  %3437 = vtanh.f32 %v1258_v40  ;;  %vm1226_vm15 = vweird.f32 %v3436_v25  ;;  %vm1225_vm7 = vweird.f32 %v4701_v42 }
 0x28e   : > { %v1269_v51 = vmul.f32 %v3434_v55, %v1265_v45  ;;  %v4764_v0 = vadd.f32 %v1272_v29, %v1268_v3  ;;  %v4774_v58 = vadd.f32 %v1271_v56, %v1267_v14  ;;  %vm1227_vm1 = vmor %vm1225_vm7, %vm1226_vm15  ;;  %v1232_v49 = vor.u32 1.1754944e-38, %v1231_v22  ;;  %v6307_v29 = vld [vmem:[#allocation10_spill] sm:$0xff] }
 0x28f   : > { %v1222_v30 = vsub.f32 1.0, %v1221_v34  ;;  %vm1230_vm5 = vcmp.eq.f32.partialorder %v1229_v28, 8.507059e+37  ;;  %vm6304_vm8 = vcmask 1041409   ;;  %vm6305_vm3 = vcmask 1042434   ;;  %v6308_v34 = vld [vmem:[#allocation11_spill] sm:$0xff] }
 0x290   : > { %v4768_v1 = vadd.f32 %v1273_v21, %v1269_v51  ;;  %v1288_v6 = vpack.c.bf16 %v4764_v0, %v4764_v0  ;;  %v1287_v47 = vpack.c.bf16 %v4774_v58, %v4774_v58  ;;  %vm6306_vm0 = vcmask 1043459   ;;  %v4816_v51 = vld [vmem:[%s3754_s6 + $0x1b] ss:$8 sm:$0x7] }
 0x291   : > { %v1223_v18 = vmul.f32 %v3436_v25, %v1222_v30  ;;  %v4819_v21 = vld [vmem:[%s3754_s6 + $0x33] ss:$8 sm:$0x7] }
 0x292   : > { %v1289_v60 = vpack.c.bf16 %v4768_v1, %v4768_v1  ;;  %v1296_v37 = vunpack.c.l.b16 %v1288_v6  ;;  %v1295_v10 = vunpack.c.l.b16 %v1287_v47  ;;  %v4822_v30 = vld [vmem:[%s3754_s6 + $0x4b] ss:$8 sm:$0x7] }
 0x293   : > { %v1224_v4 = vadd.f32 %v3436_v25, %v1223_v18  ;;  %v3438_v19 = vpop.eup %3437 }
 0x294   : > { %v1297_v27 = vunpack.c.l.b16 %v1289_v60  ;;  %v1299_v26 = vrot.slane %v1296_v37, 7  ;;  %v1438_v37 = vrot.slane %v4816_v51, 1 }
 0x295   : > { %v1228_v46 = vsel %vm1227_vm1, %v3436_v25, %v1224_v4 }
 0x296   : > { %v1233_v12 = vsel %vm1230_vm5, %v1232_v49, %v1228_v46  ;;  %v1301_v9 = vrot.slane %v1297_v27, 6  ;;  %v1300_v61 = vsel %vm6304_vm8, %v1299_v26, %v1295_v10  ;;  %v1437_v46 = vrot.slane %v4813_v53, 1 }
 0x297   : > { %v1266_v13 = vsub.f32 1.0, %v1233_v12  ;;  %v1274_v42 = vmul.f32 %v1233_v12, %v4565_v38 }
 0x298   : > { %v1302_v7 = vsel %vm6305_vm3, %v1301_v9, %v1300_v61 }
 0x299   : > { %v1270_v15 = vmul.f32 %v3438_v19, %v1266_v13  ;;  %v1439_v13 = vrot.slane %v4819_v21, 1 }
 0x29b   : > { %v4781_v62 = vadd.f32 %v1274_v42, %v1270_v15  ;;  %v1440_v15 = vrot.slane %v4822_v30, 1 }
 0x29d   : > { %v1290_v55 = vpack.c.bf16 %v4781_v62, %v4781_v62 }
 0x29f   : > { %v1298_v25 = vunpack.c.l.b16 %v1290_v55 }
 0x2a1   : > { %v1303_v40 = vrot.slane %v1298_v25, 5 }
 0x2a3   : > { %v1304_v45 = vsel %vm6306_vm0, %v1303_v40, %v1302_v7 }
 0x2a4   : > { %v1305_v3 = vpack.c.b16 %v1304_v45, %v1304_v45 }
 0x2a6   : > { %1315 = vmatmul.bf16.vlgmr.msra.gmra.mxu1 %v1305_v3  ;;  %1328 = vmatmul.bf16.vlgmr.msra.gmra.mxu2 %v1305_v3 }
 0x2a7   : > { %1341 = vmatmul.bf16.vlgmr.msra.gmra.mxu3 %v1305_v3  ;;  %1927 = vmatpush.bf16.msra.mxu1 %v3812_v31 }
 0x2a8   : > { %2198 = vmatpush.bf16.msra.mxu2 %v3768_v16  ;;  %2211 = vmatpush.bf16.msra.mxu3 %v3779_v20 }
 0x2ab   : > { %1928 = vmatpush.bf16.msra.mxu1 %v3837_v39 }
 0x2ac   : > { %2199 = vmatpush.bf16.msra.mxu2 %v3788_v23  ;;  %2212 = vmatpush.bf16.msra.mxu3 %v3792_v24 }
 0x2af   : > { %1929 = vmatpush.bf16.msra.mxu1 %v3865_v48 }
 0x2b0   : > { %2200 = vmatpush.bf16.msra.mxu2 %v3815_v32  ;;  %2213 = vmatpush.bf16.msra.mxu3 %v3825_v35 }
 0x2b3   : > { %1930 = vmatpush.bf16.msra.mxu1 %v3893_v57 }
 0x2b4   : > { %2201 = vmatpush.bf16.msra.mxu2 %v3849_v43  ;;  %2214 = vmatpush.bf16.msra.mxu3 %v3853_v44 }
 0x2b7   : > { %1931 = vmatpush.bf16.msra.mxu1 %v3921_v2 }
 0x2b8   : > { %2202 = vmatpush.bf16.msra.mxu2 %v3877_v52  ;;  %2215 = vmatpush.bf16.msra.mxu3 %v3884_v54 }
 0x2bb   : > { %1932 = vmatpush.bf16.msra.mxu1 %v3949_v11 }
 0x2bc   : > { %2203 = vmatpush.bf16.msra.mxu2 %v6276_v63  ;;  %2216 = vmatpush.bf16.msra.mxu3 %v6277_v8 }
 0x2bf   : > { %1933 = vmatpush.bf16.msra.mxu1 %v6278_v36 }
 0x2c0   : > { %2204 = vmatpush.bf16.msra.mxu2 %v6279_v5  ;;  %2217 = vmatpush.bf16.msra.mxu3 %v6280_v33 }
 0x2c3   : > { %1934 = vmatpush.bf16.msra.mxu1 %v6281_v50 }
 0x2c4   : > { %2205 = vmatpush.bf16.msra.mxu2 %v6307_v29  ;;  %2218 = vmatpush.bf16.msra.mxu3 %v6308_v34 }
 0x323   : > { %v1316_v14 = vpop.f32.mrf.mxu1 }
 0x324   : > { %v1347_v28 = vrot.slane %v1316_v14, 1  ;;  %v1348_v22 = vrot.slane %v1316_v14, 2  ;;  %v1349_v18 = vrot.slane %v1316_v14, 3  ;;  %v1353_v56 = vadd.f32 %v4813_v53, %v1316_v14 }
 0x326   : > { %v1354_v6 = vadd.f32 %v4816_v51, %v1347_v28  ;;  %v1355_v4 = vadd.f32 %v4819_v21, %v1348_v22  ;;  %v1356_v49 = vadd.f32 %v4822_v30, %v1349_v18  ;;  %v3179_v60 = vmul.f32 -1.442695, %v1353_v56 }
 0x328   : > { %3439 = vpow2.f32 %v3179_v60  ;;  %v3180_v19 = vmul.f32 -1.442695, %v1354_v6  ;;  %v3181_v12 = vmul.f32 -1.442695, %v1355_v4  ;;  %v3182_v47 = vmul.f32 -1.442695, %v1356_v49 }
 0x329   : > { %v1329_v27 = vpop.f32.mrf.mxu2 }
 0x32a   : > { %3441 = vpow2.f32 %v3180_v19  ;;  %v1446_v42 = vrot.slane %v1329_v27, 1  ;;  %v1447_v26 = vrot.slane %v1329_v27, 2  ;;  %v1448_v10 = vrot.slane %v1329_v27, 3  ;;  %v1342_v9 = vpop.f32.mrf.mxu3 }
 0x32b   : > { %3443 = vpow2.f32 %v3181_v12  ;;  %v1452_v55 = vadd.f32 %v1437_v46, %v1329_v27  ;;  %v1318_v61 = vpop.f32.mrf.mxu1 }
 0x32c   : > { %v1453_v25 = vadd.f32 %v1446_v42, %v1438_v37  ;;  %v1454_v7 = vadd.f32 %v1447_v26, %v1439_v13  ;;  %3445 = vpow2.f32 %v3182_v47  ;;  %v1455_v3 = vadd.f32 %v1448_v10, %v1440_v15  ;;  %v6309_v42 = vld [vmem:[#allocation22_spill] sm:$0xff] }
 0x32d   : > { %v3183_v40 = vmul.f32 -1.442695, %v1452_v55  ;;  %v4850_v26 = vadd.f32 %v6309_v42, %v1342_v9 }
 0x32e   : > { %v3440_v45 = vpop.eup %3439  ;;  %v3184_v14 = vmul.f32 -1.442695, %v1453_v25  ;;  %v3185_v28 = vmul.f32 -1.442695, %v1454_v7  ;;  %v3186_v60 = vmul.f32 -1.442695, %v1455_v3 }
 0x32f   : > { %v4832_v22 = vadd.f32 1.0, %v3440_v45  ;;  %3447 = vpow2.f32 %v3183_v40 }
 0x330   : > { %v3442_v18 = vpop.eup %3441  ;;  %3449 = vpow2.f32 %v3184_v14 }
 0x331   : > { %v3444_v56 = vpop.eup %3443  ;;  %v4834_v6 = vadd.f32 1.0, %v3442_v18  ;;  %3451 = vrcp.f32 %v4832_v22  ;;  %v1331_v4 = vpop.f32.mrf.mxu2  ;;  %v1382_v3 = vand.u32 2147483647, %v4832_v22  ;;  %v1384_v14 = vand.u32 2147483648, %v4832_v22 }
 0x332   : > { %v4837_v49 = vadd.f32 1.0, %v3444_v56  ;;  %3453 = vpow2.f32 %v3185_v28  ;;  %v1344_v46 = vpop.f32.mrf.mxu3  ;;  %v3446_v37 = vpop.eup %3445  ;;  %vm1378_vm4 = vweird.f32 %v4832_v22 }
 0x333   : > { %3455 = vrcp.f32 %v4834_v6  ;;  %v4841_v13 = vadd.f32 1.0, %v3446_v37  ;;  %v1399_v18 = vand.u32 2147483648, %v4834_v6  ;;  %v1397_v37 = vand.u32 2147483647, %v4834_v6 }
 0x334   : > { %3457 = vrcp.f32 %v4837_v49  ;;  %vm4885_vm6 = vcmp.eq.f32.partialorder %v1382_v3, 8.507059e+37  ;;  %v1385_v55 = vor.u32 1.1754944e-38, %v1384_v14  ;;  %vm1393_vm9 = vweird.f32 %v4834_v6 }
 0x335   : > { %v3448_v19 = vpop.eup %3447  ;;  %3459 = vpow2.f32 %v3186_v60  ;;  %v1400_v7 = vor.u32 1.1754944e-38, %v1399_v18  ;;  %vm1408_vm11 = vweird.f32 %v4837_v49  ;;  %vm4903_vm13 = vcmp.eq.f32.partialorder %v1397_v37, 8.507059e+37 }
 0x336   : > { %v3450_v12 = vpop.eup %3449  ;;  %v4843_v47 = vadd.f32 1.0, %v3448_v19  ;;  %v1412_v19 = vand.u32 2147483647, %v4837_v49  ;;  %vm1423_vm7 = vweird.f32 %v4841_v13 }
 0x337   : > { %v4845_v27 = vpop.eup %3451  ;;  %v4847_v15 = vadd.f32 1.0, %v3450_v12  ;;  %v1414_v12 = vand.u32 2147483648, %v4837_v49 }
 0x338   : > { %v3454_v10 = vpop.eup %3453  ;;  %3461 = vrcp.f32 %v4843_v47  ;;  %v1374_v9 = vmul.f32 %v4845_v27, %v4832_v22  ;;  %vm1379_vm12 = vweird.f32 %v4845_v27  ;;  %vm4907_vm2 = vcmp.eq.f32.partialorder %v1412_v19, 8.507059e+37 }
 0x339   : > { %v4857_v40 = vadd.f32 1.0, %v3454_v10  ;;  %3463 = vrcp.f32 %v4847_v15  ;;  %v4860_v45 = vpop.eup %3455  ;;  %v1415_v59 = vor.u32 1.1754944e-38, %v1414_v12  ;;  %v1483_v18 = vand.u32 2147483648, %v4843_v47  ;;  %vm4921_vm14 = vmor %vm1378_vm4, %vm1379_vm12 }
 0x33a   : > { %3465 = vrcp.f32 %v4841_v13  ;;  %v4867_v28 = vpop.eup %3457  ;;  %v1375_v46 = vsub.f32 1.0, %v1374_v9  ;;  %v1389_v10 = vmul.f32 %v4860_v45, %v4834_v6  ;;  %vm1394_vm10 = vweird.f32 %v4860_v45 }
 0x33b   : > { %3467 = vrcp.f32 %v4857_v40  ;;  %v3460_v60 = vpop.eup %3459  ;;  %v1481_v19 = vand.u32 2147483647, %v4843_v47  ;;  %vm1409_vm15 = vweird.f32 %v4867_v28  ;;  %vm1477_vm1 = vweird.f32 %v4843_v47  ;;  %vm4946_vm5 = vmor %vm1393_vm9, %vm1394_vm10 }
 0x33c   : > { %v4876_v42 = vadd.f32 1.0, %v3460_v60  ;;  %v1376_v61 = vmul.f32 %v4845_v27, %v1375_v46  ;;  %v1404_v60 = vmul.f32 %v4867_v28, %v4837_v49  ;;  %v1390_v34 = vsub.f32 1.0, %v1389_v10  ;;  %vm1410_vm3 = vmor %vm1408_vm11, %vm1409_vm15 }
 0x33d   : > { %vm1492_vm8 = vweird.f32 %v4847_v15  ;;  %vm1507_vm0 = vweird.f32 %v4857_v40  ;;  %v1427_v49 = vand.u32 2147483647, %v4841_v13  ;;  %vm4971_vm9 = vcmp.eq.f32.partialorder %v1481_v19, 8.507059e+37 }
 0x33e   : > { %v4882_v25 = vpop.eup %3461  ;;  %3469 = vrcp.f32 %v4876_v42  ;;  %v1377_v41 = vadd.f32 %v4845_v27, %v1376_v61  ;;  %v1405_v29 = vsub.f32 1.0, %v1404_v60  ;;  %v1391_v5 = vmul.f32 %v4860_v45, %v1390_v34 }
 0x33f   : > { %v4892_v4 = vpop.eup %3463  ;;  %v1473_v56 = vmul.f32 %v4882_v25, %v4843_v47  ;;  %v4938_v34 = vor.u32 1.1754944e-38, %v1483_v18  ;;  %v1511_v18 = vand.u32 2147483647, %v4857_v40  ;;  %v1513_v46 = vand.u32 2147483648, %v4857_v40 }
 0x340   : > { %v4898_v3 = vpop.eup %3465  ;;  %v1488_v14 = vmul.f32 %v4892_v4, %v4847_v15  ;;  %v1406_v61 = vmul.f32 %v4867_v28, %v1405_v29  ;;  %v1381_v60 = vsel %vm4921_vm14, %v4845_v27, %v1377_v41  ;;  %v1498_v29 = vand.u32 2147483648, %v4847_v15 }
 0x341   : > { %v4911_v17 = vpop.eup %3467  ;;  %v1474_v50 = vsub.f32 1.0, %v1473_v56  ;;  %v1496_v56 = vand.u32 2147483647, %v4847_v15  ;;  %v1419_v22 = vmul.f32 %v4898_v3, %v4841_v13  ;;  %v1392_v36 = vadd.f32 %v4860_v45, %v1391_v5 }
 0x342   : > { %v1489_v33 = vsub.f32 1.0, %v1488_v14  ;;  %v1503_v37 = vmul.f32 %v4911_v17, %v4857_v40  ;;  %v1407_v41 = vadd.f32 %v4867_v28, %v1406_v61  ;;  %v1386_v6 = vsel %vm4885_vm6, %v1385_v55, %v1381_v60 }
 0x343   : > { %v1475_v27 = vmul.f32 %v4882_v25, %v1474_v50  ;;  %v1420_v61 = vsub.f32 1.0, %v1419_v22  ;;  %vm1424_vm4 = vweird.f32 %v4898_v3  ;;  %vm1478_vm6 = vweird.f32 %v4882_v25 }
 0x344   : > { %v1504_v10 = vsub.f32 1.0, %v1503_v37  ;;  %v4935_v14 = vpop.eup %3469  ;;  %v1490_v12 = vmul.f32 %v4892_v4, %v1489_v33  ;;  %v1396_v33 = vsel %vm4946_vm5, %v4860_v45, %v1392_v36  ;;  %v1411_v50 = vsel %vm1410_vm3, %v4867_v28, %v1407_v41  ;;  %vm5009_vm15 = vmor %vm1477_vm1, %vm1478_vm6 }
 0x345   : > { %v1518_v5 = vmul.f32 %v4935_v14, %v4876_v42  ;;  %v1401_v55 = vsel %vm4903_vm13, %v1400_v7, %v1396_v33  ;;  %v1416_v36 = vsel %vm4907_vm2, %v1415_v59, %v1411_v50  ;;  %v1421_v45 = vmul.f32 %v4898_v3, %v1420_v61  ;;  %vm1425_vm13 = vmor %vm1423_vm7, %vm1424_vm4 }
 0x346   : > { %v1505_v8 = vmul.f32 %v4911_v17, %v1504_v10  ;;  %v1429_v28 = vand.u32 2147483648, %v4841_v13  ;;  %vm1493_vm11 = vweird.f32 %v4892_v4  ;;  %vm4983_vm12 = vcmp.eq.f32.partialorder %v1496_v56, 8.507059e+37 }
 0x347   : > { %v1519_v63 = vsub.f32 1.0, %v1518_v5  ;;  %vm1508_vm10 = vweird.f32 %v4911_v17  ;;  %v1476_v7 = vadd.f32 %v4882_v25, %v1475_v27  ;;  %v1491_v59 = vadd.f32 %v4892_v4, %v1490_v12  ;;  %vm5023_vm7 = vmor %vm1492_vm8, %vm1493_vm11 }
 0x348   : > { %v1422_v19 = vadd.f32 %v4898_v3, %v1421_v45  ;;  %v1430_v56 = vor.u32 1.1754944e-38, %v1429_v28  ;;  %v1540_v10 = vmul.f32 %v4850_v26, %v1386_v6  ;;  %v6324_v60 = vrot.slane %v4850_v26, 1  ;;  %vm5038_vm1 = vmor %vm1507_vm0, %vm1508_vm10 }
 0x349   : > { %v1520_v38 = vmul.f32 %v4935_v14, %v1519_v63  ;;  %v6325_v37 = vrot.slane %v4850_v26, 2  ;;  %v1506_v27 = vadd.f32 %v4911_v17, %v1505_v8  ;;  %vm1523_vm2 = vweird.f32 %v4935_v14 }
 0x34a   : > { %v1541_v22 = vmul.f32 %v6324_v60, %v1401_v55  ;;  %v1426_v63 = vsel %vm1425_vm13, %v4898_v3, %v1422_v19  ;;  %vm1428_vm14 = vcmp.eq.f32.partialorder %v1427_v49, 8.507059e+37  ;;  %v6328_v5 = vrot.slane %v4813_v53, 2 }
 0x34b   : > { %v1542_v41 = vmul.f32 %v6325_v37, %v1416_v36  ;;  %v1431_v12 = vsel %vm1428_vm14, %v1430_v56, %v1426_v63  ;;  %v6329_v33 = vrot.slane %v4816_v51, 2  ;;  %v6330_v50 = vrot.slane %v4819_v21, 2 }
 0x34c   : > { %v1552_v6 = vadd.f32 %v6328_v5, %v1540_v10  ;;  %v1528_v3 = vand.u32 2147483648, %v4876_v42  ;;  %v1480_v53 = vsel %vm5009_vm15, %v4882_v25, %v1476_v7  ;;  %v6333_v51 = vrot.slane %v4850_v26, 3 }
 0x34d   : > { %v1553_v8 = vadd.f32 %v6329_v33, %v1541_v22  ;;  %v1554_v61 = vadd.f32 %v6330_v50, %v1542_v41  ;;  %v1521_v21 = vadd.f32 %v4935_v14, %v1520_v38  ;;  %vm1522_vm5 = vweird.f32 %v4876_v42 }
 0x34e   : > { %v1543_v49 = vmul.f32 %v6333_v51, %v1431_v12  ;;  %v1526_v55 = vand.u32 2147483647, %v4876_v42  ;;  %v1495_v25 = vsel %vm5023_vm7, %v4892_v4, %v1491_v59  ;;  %3471 = vtanh.f32 %v1552_v6  ;;  %vm5049_vm8 = vmor %vm1522_vm5, %vm1523_vm2 }
 0x34f   : > { %v1499_v26 = vor.u32 1.1754944e-38, %v1498_v29  ;;  %v1510_v40 = vsel %vm5038_vm1, %v4911_v17, %v1506_v27  ;;  %v6338_v45 = vrot.slane %v4822_v30, 2  ;;  %3473 = vtanh.f32 %v1553_v8 }
 0x350   : > { %v1514_v42 = vor.u32 1.1754944e-38, %v1513_v46  ;;  %v1485_v4 = vsel %vm4971_vm9, %v4938_v34, %v1480_v53  ;;  %3475 = vtanh.f32 %v1554_v61  ;;  %v1525_v29 = vsel %vm5049_vm8, %v4935_v14, %v1521_v21 }
 0x351   : > { %v1555_v28 = vadd.f32 %v6338_v45, %v1543_v49  ;;  %vm1512_vm3 = vcmp.eq.f32.partialorder %v1511_v18, 8.507059e+37  ;;  %v1529_v7 = vor.u32 1.1754944e-38, %v1528_v3  ;;  %v1500_v59 = vsel %vm4983_vm12, %v1499_v26, %v1495_v25  ;;  %v5120_v45 = vld [vmem:[%s3754_s6 + $0x34] ss:$8 sm:$0x7] }
 0x352   : > { %v1515_v17 = vsel %vm1512_vm3, %v1514_v42, %v1510_v40  ;;  %vm1527_vm0 = vcmp.eq.f32.partialorder %v1526_v55, 8.507059e+37  ;;  %v1560_v30 = vsub.f32 1.0, %v1485_v4  ;;  %v1561_v19 = vsub.f32 1.0, %v1500_v59  ;;  %v6350_v40 = vld [vmem:[#allocation11_spill] sm:$0xff] }
 0x353   : > { %3477 = vtanh.f32 %v1555_v28  ;;  %v1530_v38 = vsel %vm1527_vm0, %v1529_v7, %v1525_v29  ;;  %v1562_v11 = vsub.f32 1.0, %v1515_v17  ;;  %v1568_v10 = vmul.f32 %v1485_v4, %v4774_v58  ;;  %v5123_v28 = vld [vmem:[%s3754_s6 + $0x4c] ss:$8 sm:$0x7] }
 0x354   : > { %v3472_v46 = vpop.eup %3471  ;;  %v1569_v14 = vmul.f32 %v1500_v59, %v4764_v0  ;;  %v1563_v18 = vsub.f32 1.0, %v1530_v38  ;;  %v1570_v27 = vmul.f32 %v1515_v17, %v4768_v1  ;;  %v1571_v12 = vmul.f32 %v1530_v38, %v4781_v62 }
 0x355   : > { %v3474_v56 = vpop.eup %3473  ;;  %v1564_v34 = vmul.f32 %v3472_v46, %v1560_v30  ;;  %vm6339_vm4 = vcmask 1041409   ;;  %vm6340_vm9 = vcmask 1042434   ;;  %vm6341_vm6 = vcmask 1043459  }
 0x356   : > { %v3476_v60 = vpop.eup %3475  ;;  %v1565_v22 = vmul.f32 %v3474_v56, %v1561_v19  ;;  %v1736_v59 = vrot.slane %v5120_v45, 1  ;;  %v1737_v17 = vrot.slane %v5123_v28, 1 }
 0x357   : > { %v1566_v9 = vmul.f32 %v3476_v60, %v1562_v11  ;;  %v5068_v41 = vadd.f32 %v1568_v10, %v1564_v34 }
 0x358   : > { %v5071_v63 = vadd.f32 %v1569_v14, %v1565_v22 }
 0x359   : > { %v3478_v37 = vpop.eup %3477  ;;  %v5074_v5 = vadd.f32 %v1570_v27, %v1566_v9  ;;  %v1584_v33 = vpack.c.bf16 %v5068_v41, %v5068_v41 }
 0x35a   : > { %v1567_v13 = vmul.f32 %v3478_v37, %v1563_v18  ;;  %v1585_v8 = vpack.c.bf16 %v5071_v63, %v5071_v63 }
 0x35b   : > { %v1586_v50 = vpack.c.bf16 %v5074_v5, %v5074_v5  ;;  %v1592_v53 = vunpack.c.l.b16 %v1584_v33 }
 0x35c   : > { %v5076_v6 = vadd.f32 %v1571_v12, %v1567_v13  ;;  %v1593_v47 = vunpack.c.l.b16 %v1585_v8 }
 0x35d   : > { %v1594_v3 = vunpack.c.l.b16 %v1586_v50 }
 0x35e   : > { %v1587_v61 = vpack.c.bf16 %v5076_v6, %v5076_v6  ;;  %v1596_v49 = vrot.slane %v1593_v47, 7 }
 0x35f   : > { %v1598_v21 = vrot.slane %v1594_v3, 6 }
 0x360   : > { %v1595_v51 = vunpack.c.l.b16 %v1587_v61  ;;  %v1597_v15 = vsel %vm6339_vm4, %v1596_v49, %v1592_v53 }
 0x361   : > { %v1599_v25 = vsel %vm6340_vm9, %v1598_v21, %v1597_v15 }
 0x362   : > { %v1600_v55 = vrot.slane %v1595_v51, 5 }
 0x364   : > { %v1601_v26 = vsel %vm6341_vm6, %v1600_v55, %v1599_v25 }
 0x365   : > { %v1602_v36 = vpack.c.b16 %v1601_v26, %v1601_v26 }
 0x367   : > { %1612 = vmatmul.bf16.vlgmr.msrb.gmra.mxu0 %v1602_v36  ;;  %1625 = vmatmul.bf16.vlgmr.msrb.gmra.mxu1 %v1602_v36 }
 0x368   : > { %1638 = vmatmul.bf16.vlgmr.msrb.gmra.mxu2 %v1602_v36  ;;  %2224 = vmatpush.bf16.msrb.mxu0 %v3812_v31 }
 0x369   : > { %2495 = vmatpush.bf16.msrb.mxu1 %v3768_v16  ;;  %2508 = vmatpush.bf16.msrb.mxu2 %v3779_v20  ;;  %v6342_v16 = vld [vmem:[#allocation9_spill] sm:$0xff] }
 0x36a   : > { %v6343_v20 = vld [vmem:[#allocation5_spill] sm:$0xff] }
 0x36c   : > { %2225 = vmatpush.bf16.msrb.mxu0 %v3837_v39 }
 0x36d   : > { %2496 = vmatpush.bf16.msrb.mxu1 %v3788_v23  ;;  %2509 = vmatpush.bf16.msrb.mxu2 %v3792_v24  ;;  %v6344_v23 = vld [vmem:[#allocation6_spill] sm:$0xff]  ;;  %v6345_v24 = vld [vmem:[#allocation12_spill] sm:$0xff] }
 0x370   : > { %2226 = vmatpush.bf16.msrb.mxu0 %v3865_v48 }
 0x371   : > { %2497 = vmatpush.bf16.msrb.mxu1 %v3815_v32  ;;  %2510 = vmatpush.bf16.msrb.mxu2 %v3825_v35  ;;  %v6346_v32 = vld [vmem:[#allocation7_spill] sm:$0xff]  ;;  %v6347_v35 = vld [vmem:[#allocation8_spill] sm:$0xff] }
 0x374   : > { %2227 = vmatpush.bf16.msrb.mxu0 %v3893_v57 }
 0x375   : > { %2498 = vmatpush.bf16.msrb.mxu1 %v3849_v43  ;;  %2511 = vmatpush.bf16.msrb.mxu2 %v3853_v44  ;;  %v6348_v43 = vld [vmem:[#allocation13_spill] sm:$0xff]  ;;  %v6349_v44 = vld [vmem:[#allocation10_spill] sm:$0xff] }
 0x378   : > { %2228 = vmatpush.bf16.msrb.mxu0 %v3921_v2 }
 0x379   : > { %2499 = vmatpush.bf16.msrb.mxu1 %v3877_v52  ;;  %2512 = vmatpush.bf16.msrb.mxu2 %v3884_v54  ;;  %v5114_v52 = vld [vmem:[%s3754_s6 + $0x4] ss:$8 sm:$0x7] }
 0x37a   : > { %v5117_v54 = vld [vmem:[%s3754_s6 + $0x1c] ss:$8 sm:$0x7]  ;;  %v1734_v42 = vrot.slane %v5114_v52, 1 }
 0x37b   : > { %v1735_v7 = vrot.slane %v5117_v54, 1 }
 0x37c   : > { %2229 = vmatpush.bf16.msrb.mxu0 %v6342_v16 }
 0x37d   : > { %2500 = vmatpush.bf16.msrb.mxu1 %v6343_v20  ;;  %2513 = vmatpush.bf16.msrb.mxu2 %v6344_v23 }
 0x380   : > { %2230 = vmatpush.bf16.msrb.mxu0 %v6345_v24 }
 0x381   : > { %2501 = vmatpush.bf16.msrb.mxu1 %v6346_v32  ;;  %2514 = vmatpush.bf16.msrb.mxu2 %v6347_v35 }
 0x384   : > { %2231 = vmatpush.bf16.msrb.mxu0 %v6348_v43 }
 0x385   : > { %2502 = vmatpush.bf16.msrb.mxu1 %v6349_v44  ;;  %2515 = vmatpush.bf16.msrb.mxu2 %v6350_v40 }
 0x3e4   : > { %v1613_v4 = vpop.f32.mrf.mxu0  ;;  %v1626_v29 = vpop.f32.mrf.mxu1 }
 0x3e5   : > { %v1644_v30 = vrot.slane %v1613_v4, 1  ;;  %v1645_v38 = vrot.slane %v1613_v4, 2  ;;  %v1646_v46 = vrot.slane %v1613_v4, 3  ;;  %v1650_v19 = vadd.f32 %v5114_v52, %v1613_v4 }
 0x3e6   : > { %v1743_v56 = vrot.slane %v1626_v29, 1  ;;  %v1744_v11 = vrot.slane %v1626_v29, 2  ;;  %v1745_v34 = vrot.slane %v1626_v29, 3  ;;  %v1749_v10 = vadd.f32 %v1734_v42, %v1626_v29  ;;  %v5151_v29 = vld [vmem:[%s6158_s2] ss:$0 sm:$0xff] }
 0x3e7   : > { %v1651_v60 = vadd.f32 %v5117_v54, %v1644_v30  ;;  %v1652_v22 = vadd.f32 %v5120_v45, %v1645_v38  ;;  %v1653_v14 = vadd.f32 %v5123_v28, %v1646_v46  ;;  %v3191_v18 = vmul.f32 -1.442695, %v1650_v19 }
 0x3e8   : > { %v1750_v37 = vadd.f32 %v1743_v56, %v1735_v7  ;;  %v1751_v9 = vadd.f32 %v1744_v11, %v1736_v59  ;;  %v1752_v27 = vadd.f32 %v1745_v34, %v1737_v17  ;;  %v3195_v13 = vmul.f32 -1.442695, %v1749_v10 }
 0x3e9   : > { %3479 = vpow2.f32 %v3191_v18  ;;  %v3192_v12 = vmul.f32 -1.442695, %v1651_v60  ;;  %v3193_v33 = vmul.f32 -1.442695, %v1652_v22  ;;  %v3194_v8 = vmul.f32 -1.442695, %v1653_v14 }
 0x3ea   : > { %3481 = vpow2.f32 %v3195_v13  ;;  %v3196_v50 = vmul.f32 -1.442695, %v1750_v37  ;;  %v3197_v61 = vmul.f32 -1.442695, %v1751_v9  ;;  %v3198_v3 = vmul.f32 -1.442695, %v1752_v27 }
 0x3eb   : > { %3483 = vpow2.f32 %v3192_v12  ;;  %v1639_v47 = vpop.f32.mrf.mxu2  ;;  %v1841_v30 = vrot.slane %v5114_v52, 2  ;;  %v6368_v52 = vrot.slane %v5120_v45, 2 }
 0x3ec   : > { %3485 = vpow2.f32 %v3193_v33  ;;  %v1615_v53 = vpop.f32.mrf.mxu0  ;;  %v1628_v51 = vpop.f32.mrf.mxu1  ;;  %v5154_v7 = vadd.f32 %v5151_v29, %v1639_v47 }
 0x3ed   : > { %3487 = vpow2.f32 %v3194_v8 }
 0x3ee   : > { %3489 = vpow2.f32 %v3196_v50  ;;  %v1831_v22 = vrot.slane %v5154_v7, 1  ;;  %v1832_v37 = vrot.slane %v5154_v7, 2 }
 0x3ef   : > { %v3480_v49 = vpop.eup %3479  ;;  %3491 = vpow2.f32 %v3197_v61 }
 0x3f0   : > { %v3482_v21 = vpop.eup %3481  ;;  %v5133_v15 = vadd.f32 1.0, %v3480_v49  ;;  %3493 = vpow2.f32 %v3198_v3 }
 0x3f1   : > { %v3484_v55 = vpop.eup %3483  ;;  %v5135_v25 = vadd.f32 1.0, %v3482_v21 }
 0x3f2   : > { %v3486_v26 = vpop.eup %3485  ;;  %v5137_v36 = vadd.f32 1.0, %v3484_v55  ;;  %3495 = vrcp.f32 %v5133_v15  ;;  %v1679_v18 = vand.u32 2147483647, %v5133_v15  ;;  %vm1675_vm11 = vweird.f32 %v5133_v15 }
 0x3f3   : > { %v3488_v20 = vpop.eup %3487  ;;  %3497 = vrcp.f32 %v5135_v25  ;;  %v1641_v23 = vpop.f32.mrf.mxu2  ;;  %v5142_v44 = vadd.f32 1.0, %v3486_v26  ;;  %v1780_v11 = vand.u32 2147483648, %v5135_v25  ;;  %v1778_v27 = vand.u32 2147483647, %v5135_v25 }
 0x3f4   : > { %v3490_v32 = vpop.eup %3489  ;;  %3499 = vrcp.f32 %v5137_v36  ;;  %v5166_v19 = vadd.f32 1.0, %v3488_v20  ;;  %v1681_v13 = vand.u32 2147483648, %v5133_v15  ;;  %vm1690_vm12 = vweird.f32 %v5137_v36 }
 0x3f5   : > { %v3492_v35 = vpop.eup %3491  ;;  %v5144_v40 = vadd.f32 1.0, %v3490_v32  ;;  %v5191_v50 = vor.u32 1.1754944e-38, %v1780_v11  ;;  %vm5206_vm10 = vcmp.eq.f32.partialorder %v1679_v18, 8.507059e+37  ;;  %v1694_v11 = vand.u32 2147483647, %v5137_v36 }
 0x3f6   : > { %v3494_v42 = vpop.eup %3493  ;;  %v5146_v4 = vadd.f32 1.0, %v3492_v35  ;;  %vm1774_vm15 = vweird.f32 %v5135_v25  ;;  %vm1705_vm6 = vweird.f32 %v5142_v44  ;;  %v1726_v23 = vand.u32 2147483648, %v5166_v19 }
 0x3f7   : > { %v5156_v59 = vadd.f32 1.0, %v3494_v42  ;;  %3501 = vrcp.f32 %v5144_v40  ;;  %v1795_v53 = vand.u32 2147483648, %v5144_v40  ;;  %v1793_v21 = vand.u32 2147483647, %v5144_v40 }
 0x3f8   : > { %v5159_v17 = vpop.eup %3495  ;;  %3503 = vrcp.f32 %v5146_v4  ;;  %vm5250_vm3 = vcmp.eq.f32.partialorder %v1694_v11, 8.507059e+37  ;;  %vm1789_vm0 = vweird.f32 %v5144_v40  ;;  %vm1804_vm9 = vweird.f32 %v5146_v4 }
 0x3f9   : > { %v5164_v46 = vpop.eup %3497  ;;  %3505 = vrcp.f32 %v5142_v44  ;;  %v1671_v14 = vmul.f32 %v5159_v17, %v5133_v15  ;;  %vm1676_vm13 = vweird.f32 %v5159_v17  ;;  %v5220_v18 = vor.u32 1.1754944e-38, %v1795_v53 }
 0x3fa   : > { %v5171_v34 = vpop.eup %3499  ;;  %v1770_v60 = vmul.f32 %v5164_v46, %v5135_v25  ;;  %3507 = vrcp.f32 %v5156_v59  ;;  %vm1775_vm14 = vweird.f32 %v5164_v46  ;;  %vm5234_vm1 = vmor %vm1675_vm11, %vm1676_vm13  ;;  %vm5271_vm11 = vcmp.eq.f32.partialorder %v1778_v27, 8.507059e+37 }
 0x3fb   : > { %v1686_v12 = vmul.f32 %v5171_v34, %v5137_v36  ;;  %3509 = vrcp.f32 %v5166_v19  ;;  %v1672_v61 = vsub.f32 1.0, %v1671_v14  ;;  %vm1691_vm2 = vweird.f32 %v5171_v34 }
 0x3fc   : > { %v1771_v8 = vsub.f32 1.0, %v1770_v60  ;;  %vm5246_vm8 = vmor %vm1690_vm12, %vm1691_vm2  ;;  %vm5279_vm12 = vcmp.eq.f32.partialorder %v1793_v21, 8.507059e+37  ;;  %vm1819_vm13 = vweird.f32 %v5156_v59 }
 0x3fd   : > { %v5188_v33 = vpop.eup %3501  ;;  %v1687_v51 = vsub.f32 1.0, %v1686_v12  ;;  %v1673_v20 = vmul.f32 %v5159_v17, %v1672_v61  ;;  %v1682_v61 = vor.u32 1.1754944e-38, %v1681_v13 }
 0x3fe   : > { %v5193_v47 = vpop.eup %3503  ;;  %v1785_v3 = vmul.f32 %v5188_v33, %v5144_v40  ;;  %v1772_v60 = vmul.f32 %v5164_v46, %v1771_v8  ;;  %vm1790_vm7 = vweird.f32 %v5188_v33 }
 0x3ff   : > { %v5199_v49 = vpop.eup %3505  ;;  %v1800_v55 = vmul.f32 %v5193_v47, %v5146_v4  ;;  %v1674_v14 = vadd.f32 %v5159_v17, %v1673_v20  ;;  %v1688_v12 = vmul.f32 %v5171_v34, %v1687_v51  ;;  %v1696_v20 = vand.u32 2147483648, %v5137_v36 }
 0x400   : > { %v5210_v32 = vpop.eup %3507  ;;  %v1786_v35 = vsub.f32 1.0, %v1785_v3  ;;  %v1701_v3 = vmul.f32 %v5199_v49, %v5142_v44  ;;  %vm1805_vm5 = vweird.f32 %v5193_v47  ;;  %vm1706_vm4 = vweird.f32 %v5199_v49 }
 0x401   : > { %v5224_v10 = vpop.eup %3509  ;;  %v1801_v8 = vsub.f32 1.0, %v1800_v55  ;;  %v1815_v51 = vmul.f32 %v5210_v32, %v5156_v59  ;;  %v1689_v13 = vadd.f32 %v5171_v34, %v1688_v12  ;;  %v1773_v12 = vadd.f32 %v5164_v46, %v1772_v60  ;;  %vm1707_vm2 = vmor %vm1705_vm6, %vm1706_vm4 }
 0x402   : > { %v1787_v26 = vmul.f32 %v5188_v33, %v1786_v35  ;;  %v1702_v42 = vsub.f32 1.0, %v1701_v3  ;;  %v1678_v35 = vsel %vm5234_vm1, %v5159_v17, %v1674_v14  ;;  %v1709_v3 = vand.u32 2147483647, %v5142_v44 }
 0x403   : > { %v1693_v36 = vsel %vm5246_vm8, %v5171_v34, %v1689_v13  ;;  %v1711_v60 = vand.u32 2147483648, %v5142_v44  ;;  %v1716_v9 = vmul.f32 %v5224_v10, %v5166_v19  ;;  %v1802_v53 = vmul.f32 %v5193_v47, %v1801_v8  ;;  %vm5300_vm8 = vmor %vm1774_vm15, %vm1775_vm14 }
 0x404   : > { %v1703_v11 = vmul.f32 %v5199_v49, %v1702_v42  ;;  %v1816_v17 = vsub.f32 1.0, %v1815_v51  ;;  %v1697_v14 = vor.u32 1.1754944e-38, %v1696_v20  ;;  %v1788_v13 = vadd.f32 %v5188_v33, %v1787_v26  ;;  %vm5317_vm14 = vmor %vm1789_vm0, %vm1790_vm7 }
 0x405   : > { %v1683_v42 = vsel %vm5206_vm10, %v1682_v61, %v1678_v35  ;;  %v1717_v56 = vsub.f32 1.0, %v1716_v9  ;;  %v1712_v27 = vor.u32 1.1754944e-38, %v1711_v60  ;;  %v1724_v26 = vand.u32 2147483647, %v5166_v19  ;;  %vm5333_vm15 = vmor %vm1804_vm9, %vm1805_vm5 }
 0x406   : > { %v1704_v55 = vadd.f32 %v5199_v49, %v1703_v11  ;;  %v1698_v44 = vsel %vm5250_vm3, %v1697_v14, %v1693_v36  ;;  %vm1710_vm10 = vcmp.eq.f32.partialorder %v1709_v3, 8.507059e+37  ;;  %vm1721_vm1 = vweird.f32 %v5224_v10 }
 0x407   : > { %v1718_v9 = vmul.f32 %v5224_v10, %v1717_v56  ;;  %v1803_v21 = vadd.f32 %v5193_v47, %v1802_v53  ;;  %v1817_v8 = vmul.f32 %v5210_v32, %v1816_v17  ;;  %v1837_v20 = vmul.f32 %v5154_v7, %v1683_v42 }
 0x408   : > { %v1708_v61 = vsel %vm1707_vm2, %v5199_v49, %v1704_v55  ;;  %vm1720_vm3 = vweird.f32 %v5166_v19  ;;  %v1838_v56 = vmul.f32 %v1831_v22, %v1698_v44  ;;  %vm1820_vm4 = vweird.f32 %v5210_v32 }
 0x409   : > { %v1713_v51 = vsel %vm1710_vm10, %v1712_v27, %v1708_v61  ;;  %v1719_v49 = vadd.f32 %v5224_v10, %v1718_v9  ;;  %vm1722_vm6 = vmor %vm1720_vm3, %vm1721_vm1  ;;  %vm1725_vm2 = vcmp.eq.f32.partialorder %v1724_v26, 8.507059e+37  ;;  %v1727_v36 = vor.u32 1.1754944e-38, %v1726_v23 }
 0x40a   : > { %v1839_v35 = vmul.f32 %v1832_v37, %v1713_v51  ;;  %v1849_v25 = vadd.f32 %v1841_v30, %v1837_v20  ;;  %v1777_v37 = vsel %vm5300_vm8, %v5164_v46, %v1773_v12  ;;  %v6367_v11 = vrot.slane %v5117_v54, 2  ;;  %vm5359_vm5 = vmor %vm1819_vm13, %vm1820_vm4 }
 0x40b   : > { %v1723_v22 = vsel %vm1722_vm6, %v5224_v10, %v1719_v49  ;;  %v1792_v10 = vsel %vm5317_vm14, %v5188_v33, %v1788_v13  ;;  %v1818_v54 = vadd.f32 %v5210_v32, %v1817_v8  ;;  %v1825_v46 = vand.u32 2147483648, %v5156_v59 }
 0x40c   : > { %v1850_v3 = vadd.f32 %v6367_v11, %v1838_v56  ;;  %v1851_v30 = vadd.f32 %v6368_v52, %v1839_v35  ;;  %v1728_v60 = vsel %vm1725_vm2, %v1727_v36, %v1723_v22  ;;  %3511 = vtanh.f32 %v1849_v25 }
 0x40d   : > { %v1807_v45 = vsel %vm5333_vm15, %v5193_v47, %v1803_v21  ;;  %v6371_v12 = vrot.slane %v5154_v7, 3  ;;  %v6372_v17 = vand.u32 2147483648, %v5146_v4  ;;  %v1823_v42 = vand.u32 2147483647, %v5156_v59 }
 0x40e   : > { %3513 = vtanh.f32 %v1850_v3  ;;  %v1782_v33 = vsel %vm5271_vm11, %v5191_v50, %v1777_v37  ;;  %v6373_v13 = vand.u32 2147483647, %v5146_v4  ;;  %v1797_v47 = vsel %vm5279_vm12, %v5220_v18, %v1792_v10 }
 0x40f   : > { %v1840_v53 = vmul.f32 %v6371_v12, %v1728_v60  ;;  %v1811_v14 = vor.u32 1.1754944e-38, %v6372_v17  ;;  %3515 = vtanh.f32 %v1851_v30  ;;  %v6376_v55 = vrot.slane %v5123_v28, 2 }
 0x410   : > { %vm1809_vm7 = vcmp.eq.f32.partialorder %v6373_v13, 8.507059e+37  ;;  %v1822_v4 = vsel %vm5359_vm5, %v5210_v32, %v1818_v54  ;;  %v1826_v44 = vor.u32 1.1754944e-38, %v1825_v46  ;;  %v1857_v27 = vsub.f32 1.0, %v1782_v33 }
 0x411   : > { %v1852_v34 = vadd.f32 %v6376_v55, %v1840_v53  ;;  %v1812_v50 = vsel %vm1809_vm7, %v1811_v14, %v1807_v45  ;;  %v1858_v26 = vsub.f32 1.0, %v1797_v47  ;;  %vm1824_vm0 = vcmp.eq.f32.partialorder %v1823_v42, 8.507059e+37  ;;  %v5403_v14 = vld [vmem:[%s3754_s6 + $0x5] ss:$8 sm:$0x7] }
 0x412   : > { %v3512_v59 = vpop.eup %3511  ;;  %v1859_v61 = vsub.f32 1.0, %v1812_v50  ;;  %v1865_v38 = vmul.f32 %v1782_v33, %v5068_v41  ;;  %v1827_v18 = vsel %vm1824_vm0, %v1826_v44, %v1822_v4  ;;  %v1866_v8 = vmul.f32 %v1797_v47, %v5071_v63  ;;  %v5406_v42 = vld [vmem:[%s3754_s6 + $0x1d] ss:$8 sm:$0x7] }
 0x413   : > { %3517 = vtanh.f32 %v1852_v34  ;;  %v1861_v9 = vmul.f32 %v3512_v59, %v1857_v27  ;;  %v1867_v32 = vmul.f32 %v1812_v50, %v5074_v5  ;;  %v1860_v49 = vsub.f32 1.0, %v1827_v18  ;;  %v5409_v33 = vld [vmem:[%s3754_s6 + $0x35] ss:$8 sm:$0x7] }
 0x414   : > { %v3514_v23 = vpop.eup %3513  ;;  %v1868_v25 = vmul.f32 %v1827_v18, %v5076_v6  ;;  %vm6377_vm9 = vcmask 1041409   ;;  %vm6378_vm11 = vcmask 1042434   ;;  %vm6379_vm12 = vcmask 1043459  }
 0x415   : > { %v3516_v21 = vpop.eup %3515  ;;  %v1862_v28 = vmul.f32 %v3514_v23, %v1858_v26  ;;  %v5373_v20 = vadd.f32 %v1865_v38, %v1861_v9 }
 0x416   : > { %v1863_v51 = vmul.f32 %v3516_v21, %v1859_v61 }
 0x417   : > { %v5376_v15 = vadd.f32 %v1866_v8, %v1862_v28  ;;  %v1881_v19 = vpack.c.bf16 %v5373_v20, %v5373_v20 }
 0x418   : > { %v5378_v35 = vadd.f32 %v1867_v32, %v1863_v51 }
 0x419   : > { %v3518_v56 = vpop.eup %3517  ;;  %v1882_v22 = vpack.c.bf16 %v5376_v15, %v5376_v15  ;;  %v1889_v40 = vunpack.c.l.b16 %v1881_v19 }
 0x41a   : > { %v1864_v36 = vmul.f32 %v3518_v56, %v1860_v49  ;;  %v1883_v37 = vpack.c.bf16 %v5378_v35, %v5378_v35 }
 0x41b   : > { %v1890_v3 = vunpack.c.l.b16 %v1882_v22 }
 0x41c   : > { %v5387_v11 = vadd.f32 %v1868_v25, %v1864_v36  ;;  %v1891_v52 = vunpack.c.l.b16 %v1883_v37 }
 0x41d   : > { %v1893_v60 = vrot.slane %v1890_v3, 7 }
 0x41e   : > { %v1884_v30 = vpack.c.bf16 %v5387_v11, %v5387_v11  ;;  %v1895_v10 = vrot.slane %v1891_v52, 6 }
 0x41f   : > { %v1894_v46 = vsel %vm6377_vm9, %v1893_v60, %v1889_v40 }
 0x420   : > { %v1892_v54 = vunpack.c.l.b16 %v1884_v30  ;;  %v1896_v45 = vsel %vm6378_vm11, %v1895_v10, %v1894_v46 }
 0x422   : > { %v1897_v12 = vrot.slane %v1892_v54, 5 }
 0x424   : > { %v1898_v53 = vsel %vm6379_vm12, %v1897_v12, %v1896_v45 }
 0x425   : > { %v1899_v17 = vpack.c.b16 %v1898_v53, %v1898_v53 }
 0x427   : > { %1909 = vmatmul.bf16.vlgmr.msrb.gmra.mxu3 %v1899_v17  ;;  %1922 = vmatmul.bf16.vlgmr.msra.gmra.mxu0 %v1899_v17 }
 0x428   : > { %1935 = vmatmul.bf16.vlgmr.msra.gmra.mxu1 %v1899_v17  ;;  %2521 = vmatpush.bf16.msrb.mxu3 %v3812_v31  ;;  %v5412_v31 = vld [vmem:[%s3754_s6 + $0x4d] ss:$8 sm:$0x7] }
 0x42c   : > { %2522 = vmatpush.bf16.msrb.mxu3 %v3837_v39  ;;  %v2031_v39 = vrot.slane %v5403_v14, 1 }
 0x430   : > { %2523 = vmatpush.bf16.msrb.mxu3 %v3865_v48  ;;  %v2032_v48 = vrot.slane %v5406_v42, 1 }
 0x434   : > { %2524 = vmatpush.bf16.msrb.mxu3 %v3893_v57  ;;  %v2033_v57 = vrot.slane %v5409_v33, 1 }
 0x438   : > { %2525 = vmatpush.bf16.msrb.mxu3 %v3921_v2  ;;  %v2034_v2 = vrot.slane %v5412_v31, 1 }
 0x43c   : > { %2526 = vmatpush.bf16.msrb.mxu3 %v6342_v16 }
 0x440   : > { %2527 = vmatpush.bf16.msrb.mxu3 %v6345_v24 }
 0x444   : > { %2528 = vmatpush.bf16.msrb.mxu3 %v6348_v43 }
 0x4a4   : > { %v1923_v16 = vpop.f32.mrf.mxu0 }
 0x4a5   : > { %v2040_v24 = vrot.slane %v1923_v16, 1  ;;  %v2041_v13 = vrot.slane %v1923_v16, 2  ;;  %v2042_v43 = vrot.slane %v1923_v16, 3  ;;  %v2046_v7 = vadd.f32 %v2031_v39, %v1923_v16  ;;  %v1936_v47 = vpop.f32.mrf.mxu1 }
 0x4a6   : > { %v5443_v39 = vadd.f32 %v5151_v29, %v1936_v47  ;;  %v2140_v47 = vrot.slane %v5409_v33, 2 }
 0x4a7   : > { %v2047_v55 = vadd.f32 %v2040_v24, %v2032_v48  ;;  %v2048_v34 = vadd.f32 %v2041_v13, %v2033_v57  ;;  %v2049_v50 = vadd.f32 %v2042_v43, %v2034_v2  ;;  %v3207_v4 = vmul.f32 -1.442695, %v2046_v7 }
 0x4a8   : > { %v2138_v24 = vrot.slane %v5403_v14, 2  ;;  %v2139_v13 = vrot.slane %v5406_v42, 2 }
 0x4a9   : > { %3519 = vpow2.f32 %v3207_v4  ;;  %v3208_v44 = vmul.f32 -1.442695, %v2047_v55  ;;  %v3209_v27 = vmul.f32 -1.442695, %v2048_v34  ;;  %v3210_v59 = vmul.f32 -1.442695, %v2049_v50 }
 0x4aa   : > { %v1910_v26 = vpop.f32.mrf.mxu3  ;;  %v2141_v34 = vrot.slane %v5412_v31, 2  ;;  %v2128_v4 = vrot.slane %v5443_v39, 1 }
 0x4ab   : > { %3521 = vpow2.f32 %v3208_v44  ;;  %v1941_v23 = vrot.slane %v1910_v26, 1  ;;  %v1942_v61 = vrot.slane %v1910_v26, 2  ;;  %v1943_v9 = vrot.slane %v1910_v26, 3 }
 0x4ac   : > { %3523 = vpow2.f32 %v3209_v27  ;;  %v1947_v38 = vadd.f32 %v5403_v14, %v1910_v26  ;;  %v1925_v18 = vpop.f32.mrf.mxu0  ;;  %v2129_v44 = vrot.slane %v5443_v39, 2  ;;  %v2130_v27 = vrot.slane %v5443_v39, 3 }
 0x4ad   : > { %3525 = vpow2.f32 %v3210_v59  ;;  %v1948_v21 = vadd.f32 %v5406_v42, %v1941_v23  ;;  %v1938_v28 = vpop.f32.mrf.mxu1  ;;  %v1949_v32 = vadd.f32 %v5409_v33, %v1942_v61  ;;  %v1950_v36 = vadd.f32 %v5412_v31, %v1943_v9 }
 0x4ae   : > { %v3203_v8 = vmul.f32 -1.442695, %v1947_v38 }
 0x4af   : > { %v3520_v51 = vpop.eup %3519  ;;  %v3204_v49 = vmul.f32 -1.442695, %v1948_v21  ;;  %v3205_v52 = vmul.f32 -1.442695, %v1949_v32  ;;  %v3206_v30 = vmul.f32 -1.442695, %v1950_v36 }
 0x4b0   : > { %v5421_v56 = vadd.f32 1.0, %v3520_v51  ;;  %3527 = vpow2.f32 %v3203_v8 }
 0x4b1   : > { %v3522_v25 = vpop.eup %3521  ;;  %3529 = vpow2.f32 %v3204_v49 }
 0x4b2   : > { %v3524_v19 = vpop.eup %3523  ;;  %v5424_v22 = vadd.f32 1.0, %v3522_v25  ;;  %3531 = vrcp.f32 %v5421_v56  ;;  %v1912_v37 = vpop.f32.mrf.mxu3  ;;  %v2077_v57 = vand.u32 2147483648, %v5421_v56  ;;  %vm2071_vm13 = vweird.f32 %v5421_v56 }
 0x4b3   : > { %v3526_v3 = vpop.eup %3525  ;;  %v5427_v40 = vadd.f32 1.0, %v3524_v19  ;;  %v2075_v23 = vand.u32 2147483647, %v5421_v56 }
 0x4b4   : > { %v5429_v10 = vadd.f32 1.0, %v3526_v3  ;;  %3533 = vrcp.f32 %v5424_v22  ;;  %v2092_v55 = vand.u32 2147483648, %v5424_v22  ;;  %v5465_v61 = vor.u32 1.1754944e-38, %v2077_v57 }
 0x4b5   : > { %3535 = vpow2.f32 %v3205_v52  ;;  %v2090_v18 = vand.u32 2147483647, %v5424_v22  ;;  %v2105_v32 = vand.u32 2147483647, %v5427_v40  ;;  %v2107_v49 = vand.u32 2147483648, %v5427_v40 }
 0x4b6   : > { %v3528_v60 = vpop.eup %3527  ;;  %3537 = vpow2.f32 %v3206_v30  ;;  %v5473_v51 = vor.u32 1.1754944e-38, %v2092_v55  ;;  %vm5492_vm6 = vcmp.eq.f32.partialorder %v2075_v23, 8.507059e+37  ;;  %vm2086_vm2 = vweird.f32 %v5424_v22 }
 0x4b7   : > { %v3530_v54 = vpop.eup %3529  ;;  %3539 = vrcp.f32 %v5427_v40  ;;  %v1963_v45 = vadd.f32 1.0, %v3528_v60  ;;  %vm5506_vm0 = vcmp.eq.f32.partialorder %v2090_v18, 8.507059e+37  ;;  %v2108_v33 = vor.u32 1.1754944e-38, %v2107_v49 }
 0x4b8   : > { %v5432_v46 = vpop.eup %3531  ;;  %3541 = vrcp.f32 %v5429_v10  ;;  %v5438_v53 = vadd.f32 1.0, %v3530_v54 }
 0x4b9   : > { %v2067_v12 = vmul.f32 %v5432_v46, %v5421_v56  ;;  %3543 = vrcp.f32 %v1963_v45  ;;  %v1976_v37 = vand.u32 2147483647, %v1963_v45  ;;  %vm2072_vm10 = vweird.f32 %v5432_v46 }
 0x4ba   : > { %v5440_v17 = vpop.eup %3533  ;;  %3545 = vrcp.f32 %v5438_v53  ;;  %v1978_v3 = vand.u32 2147483648, %v1963_v45  ;;  %vm1972_vm3 = vweird.f32 %v1963_v45  ;;  %vm5488_vm4 = vmor %vm2071_vm13, %vm2072_vm10  ;;  %v1993_v55 = vand.u32 2147483648, %v5438_v53 }
 0x4bb   : > { %v3536_v48 = vpop.eup %3535  ;;  %v2068_v16 = vsub.f32 1.0, %v2067_v12  ;;  %v2082_v7 = vmul.f32 %v5440_v17, %v5424_v22  ;;  %vm2087_vm8 = vweird.f32 %v5440_v17  ;;  %vm1977_vm14 = vcmp.eq.f32.partialorder %v1976_v37, 8.507059e+37 }
 0x4bc   : > { %v3538_v2 = vpop.eup %3537  ;;  %v5461_v59 = vadd.f32 1.0, %v3536_v48  ;;  %v1991_v56 = vand.u32 2147483647, %v5438_v53  ;;  %vm1987_vm5 = vweird.f32 %v5438_v53 }
 0x4bd   : > { %v5449_v43 = vpop.eup %3539  ;;  %v5467_v9 = vadd.f32 1.0, %v3538_v2  ;;  %v2069_v38 = vmul.f32 %v5432_v46, %v2068_v16  ;;  %v2083_v8 = vsub.f32 1.0, %v2082_v7 }
 0x4be   : > { %v5456_v50 = vpop.eup %3541  ;;  %v2097_v21 = vmul.f32 %v5449_v43, %v5427_v40  ;;  %3547 = vrcp.f32 %v5461_v59  ;;  %vm2102_vm9 = vweird.f32 %v5449_v43  ;;  %vm1992_vm13 = vcmp.eq.f32.partialorder %v1991_v56, 8.507059e+37 }
 0x4bf   : > { %v3544_v26 = vpop.eup %3543  ;;  %v2112_v25 = vmul.f32 %v5456_v50, %v5429_v10  ;;  %3549 = vrcp.f32 %v5467_v9  ;;  %v2070_v30 = vadd.f32 %v5432_v46, %v2069_v38  ;;  %v2084_v12 = vmul.f32 %v5440_v17, %v2083_v8 }
 0x4c0   : > { %v1968_v28 = vmul.f32 %v3544_v26, %v1963_v45  ;;  %v3546_v36 = vpop.eup %3545  ;;  %v2098_v60 = vsub.f32 1.0, %v2097_v21  ;;  %vm1973_vm1 = vweird.f32 %v3544_v26  ;;  %v1979_v45 = vor.u32 1.1754944e-38, %v1978_v3 }
 0x4c1   : > { %v1983_v52 = vmul.f32 %v3546_v36, %v5438_v53  ;;  %v2113_v16 = vsub.f32 1.0, %v2112_v25  ;;  %vm1974_vm15 = vmor %vm1972_vm3, %vm1973_vm1  ;;  %vm1988_vm7 = vweird.f32 %v3546_v36  ;;  %v2074_v23 = vsel %vm5488_vm4, %v5432_v46, %v2070_v30 }
 0x4c2   : > { %v1969_v19 = vsub.f32 1.0, %v1968_v28  ;;  %v2099_v28 = vmul.f32 %v5449_v43, %v2098_v60  ;;  %vm1989_vm11 = vmor %vm1987_vm5, %vm1988_vm7  ;;  %vm2117_vm12 = vweird.f32 %v5456_v50  ;;  %v2006_v18 = vand.u32 2147483647, %v5461_v59 }
 0x4c3   : > { %v1984_v48 = vsub.f32 1.0, %v1983_v52  ;;  %v2114_v46 = vmul.f32 %v5456_v50, %v2113_v16  ;;  %v2008_v57 = vand.u32 2147483648, %v5461_v59  ;;  %v2079_v56 = vsel %vm5492_vm6, %v5465_v61, %v2074_v23  ;;  %vm5531_vm3 = vmor %vm2086_vm2, %vm2087_vm8 }
 0x4c4   : > { %v1970_v54 = vmul.f32 %v3544_v26, %v1969_v19  ;;  %v3548_v21 = vpop.eup %3547  ;;  %v2085_v19 = vadd.f32 %v5440_v17, %v2084_v12  ;;  %vm2002_vm4 = vweird.f32 %v5461_v59  ;;  %vm2017_vm6 = vweird.f32 %v5467_v9 }
 0x4c5   : > { %v1985_v38 = vmul.f32 %v3546_v36, %v1984_v48  ;;  %v3550_v25 = vpop.eup %3549  ;;  %v1998_v3 = vmul.f32 %v3548_v21, %v5461_v59  ;;  %vm2003_vm10 = vweird.f32 %v3548_v21  ;;  %v2009_v61 = vor.u32 1.1754944e-38, %v2008_v57 }
 0x4c6   : > { %v1971_v7 = vadd.f32 %v3544_v26, %v1970_v54  ;;  %v2013_v53 = vmul.f32 %v3550_v25, %v5467_v9  ;;  %vm2018_vm1 = vweird.f32 %v3550_v25  ;;  %vm2007_vm8 = vcmp.eq.f32.partialorder %v2006_v18, 8.507059e+37 }
 0x4c7   : > { %v1986_v52 = vadd.f32 %v3546_v36, %v1985_v38  ;;  %v1999_v12 = vsub.f32 1.0, %v1998_v3  ;;  %vm2019_vm2 = vmor %vm2017_vm6, %vm2018_vm1  ;;  %v2100_v59 = vadd.f32 %v5449_v43, %v2099_v28  ;;  %vm2101_vm7 = vweird.f32 %v5427_v40 }
 0x4c8   : > { %v1975_v8 = vsel %vm1974_vm15, %v3544_v26, %v1971_v7  ;;  %v1994_v26 = vor.u32 1.1754944e-38, %v1993_v55  ;;  %v2014_v7 = vsub.f32 1.0, %v2013_v53  ;;  %v2023_v55 = vand.u32 2147483648, %v5467_v9  ;;  %vm5556_vm5 = vmor %vm2101_vm7, %vm2102_vm9 }
 0x4c9   : > { %v1980_v37 = vsel %vm1977_vm14, %v1979_v45, %v1975_v8  ;;  %v1990_v60 = vsel %vm1989_vm11, %v3546_v36, %v1986_v52  ;;  %v2000_v45 = vmul.f32 %v3548_v21, %v1999_v12  ;;  %v2021_v36 = vand.u32 2147483647, %v5467_v9  ;;  %vm2004_vm14 = vmor %vm2002_vm4, %vm2003_vm10 }
 0x4ca   : > { %v2134_v30 = vmul.f32 %v5443_v39, %v1980_v37  ;;  %v1995_v48 = vsel %vm1992_vm13, %v1994_v26, %v1990_v60  ;;  %v2015_v8 = vmul.f32 %v3550_v25, %v2014_v7  ;;  %v2089_v37 = vsel %vm5531_vm3, %v5440_v17, %v2085_v19 }
 0x4cb   : > { %v2135_v38 = vmul.f32 %v2128_v4, %v1995_v48  ;;  %v2024_v23 = vor.u32 1.1754944e-38, %v2023_v55  ;;  %vm2022_vm15 = vcmp.eq.f32.partialorder %v2021_v36, 8.507059e+37  ;;  %v2094_v19 = vsel %vm5506_vm0, %v5473_v51, %v2089_v37 }
 0x4cc   : > { %v2146_v16 = vadd.f32 %v2138_v24, %v2134_v30  ;;  %v2001_v24 = vadd.f32 %v3548_v21, %v2000_v45  ;;  %v2016_v2 = vadd.f32 %v3550_v25, %v2015_v8  ;;  %v2115_v9 = vadd.f32 %v5456_v50, %v2114_v46 }
 0x4cd   : > { %v2147_v4 = vadd.f32 %v2139_v13, %v2135_v38  ;;  %v2122_v3 = vand.u32 2147483648, %v5429_v10  ;;  %vm2116_vm11 = vweird.f32 %v5429_v10  ;;  %v2154_v51 = vsub.f32 1.0, %v2079_v56 }
 0x4ce   : > { %3551 = vtanh.f32 %v2146_v16  ;;  %v2005_v22 = vsel %vm2004_vm14, %v3548_v21, %v2001_v24  ;;  %v2020_v42 = vsel %vm2019_vm2, %v3550_v25, %v2016_v2  ;;  %vm2106_vm0 = vcmp.eq.f32.partialorder %v2105_v32, 8.507059e+37  ;;  %vm5568_vm13 = vmor %vm2116_vm11, %vm2117_vm12 }
 0x4cf   : > { %3553 = vtanh.f32 %v2147_v4  ;;  %v2010_v52 = vsel %vm2007_vm8, %v2009_v61, %v2005_v22  ;;  %v2025_v13 = vsel %vm2022_vm15, %v2024_v23, %v2020_v42  ;;  %v2155_v46 = vsub.f32 1.0, %v2094_v19 }
 0x4d0   : > { %v2136_v17 = vmul.f32 %v2129_v44, %v2010_v52  ;;  %v2137_v28 = vmul.f32 %v2130_v27, %v2025_v13  ;;  %v2120_v44 = vand.u32 2147483647, %v5429_v10  ;;  %v2104_v27 = vsel %vm5556_vm5, %v5449_v43, %v2100_v59 }
 0x4d1   : > { %v2123_v53 = vor.u32 1.1754944e-38, %v2122_v3  ;;  %v2163_v60 = vmul.f32 %v2094_v19, %v5376_v15  ;;  %v2109_v43 = vsel %vm2106_vm0, %v2108_v33, %v2104_v27  ;;  %v2162_v31 = vmul.f32 %v2079_v56, %v5373_v20  ;;  %v5606_v19 = vld [vmem:[%s3754_s6 + $0x6] ss:$8 sm:$0x7] }
 0x4d2   : > { %v2148_v54 = vadd.f32 %v2140_v47, %v2136_v17  ;;  %v2149_v10 = vadd.f32 %v2141_v34, %v2137_v28  ;;  %v2119_v47 = vsel %vm5568_vm13, %v5456_v50, %v2115_v9  ;;  %vm2121_vm9 = vcmp.eq.f32.partialorder %v2120_v44, 8.507059e+37  ;;  %v5609_v9 = vld [vmem:[%s3754_s6 + $0x1e] ss:$8 sm:$0x7] }
 0x4d3   : > { %v2124_v34 = vsel %vm2121_vm9, %v2123_v53, %v2119_v47  ;;  %v2156_v49 = vsub.f32 1.0, %v2109_v43  ;;  %v2164_v16 = vmul.f32 %v2109_v43, %v5378_v35  ;;  %vm6392_vm12 = vcmask 1041409   ;;  %v5613_v3 = vld [vmem:[%s3754_s6 + $0x36] ss:$8 sm:$0x7] }
 0x4d4   : > { %v3552_v21 = vpop.eup %3551  ;;  %3555 = vtanh.f32 %v2148_v54  ;;  %v2157_v48 = vsub.f32 1.0, %v2124_v34  ;;  %v2165_v38 = vmul.f32 %v2124_v34, %v5387_v11  ;;  %vm6393_vm10 = vcmask 1042434  }
 0x4d5   : > { %v3554_v26 = vpop.eup %3553  ;;  %v2158_v32 = vmul.f32 %v3552_v21, %v2154_v51  ;;  %3557 = vtanh.f32 %v2149_v10  ;;  %vm6394_vm1 = vcmask 1043459   ;;  %v2328_v21 = vrot.slane %v5606_v19, 1  ;;  %v5618_v10 = vld [vmem:[%s3754_s6 + $0x4e] ss:$8 sm:$0x7] }
 0x4d6   : > { %v2159_v30 = vmul.f32 %v3554_v26, %v2155_v46  ;;  %v2329_v44 = vrot.slane %v5609_v9, 1  ;;  %v2330_v46 = vrot.slane %v5613_v3, 1 }
 0x4d7   : > { %v5586_v40 = vadd.f32 %v2162_v31, %v2158_v32 }
 0x4d8   : > { %v5584_v12 = vadd.f32 %v2163_v60, %v2159_v30 }
 0x4d9   : > { %v2178_v8 = vpack.c.bf16 %v5586_v40, %v5586_v40 }
 0x4da   : > { %v2179_v50 = vpack.c.bf16 %v5584_v12, %v5584_v12  ;;  %v3556_v18 = vpop.eup %3555 }
 0x4db   : > { %v3558_v57 = vpop.eup %3557  ;;  %v2160_v7 = vmul.f32 %v3556_v18, %v2156_v49  ;;  %v2186_v37 = vunpack.c.l.b16 %v2178_v8 }
 0x4dc   : > { %v2187_v45 = vunpack.c.l.b16 %v2179_v50  ;;  %v2161_v55 = vmul.f32 %v3558_v57, %v2157_v48  ;;  %v2331_v57 = vrot.slane %v5618_v10, 1 }
 0x4dd   : > { %v5594_v36 = vadd.f32 %v2164_v16, %v2160_v7 }
 0x4de   : > { %v5596_v56 = vadd.f32 %v2165_v38, %v2161_v55  ;;  %v2190_v14 = vrot.slane %v2187_v45, 7 }
 0x4df   : > { %v2180_v24 = vpack.c.bf16 %v5594_v36, %v5594_v36 }
 0x4e0   : > { %v2181_v4 = vpack.c.bf16 %v5596_v56, %v5596_v56  ;;  %v2191_v22 = vsel %vm6392_vm12, %v2190_v14, %v2186_v37 }
 0x4e1   : > { %v2188_v61 = vunpack.c.l.b16 %v2180_v24 }
 0x4e2   : > { %v2189_v2 = vunpack.c.l.b16 %v2181_v4 }
 0x4e3   : > { %v2192_v23 = vrot.slane %v2188_v61, 6 }
 0x4e4   : > { %v2194_v59 = vrot.slane %v2189_v2, 5 }
 0x4e5   : > { %v2193_v52 = vsel %vm6393_vm10, %v2192_v23, %v2191_v22 }
 0x4e6   : > { %v2195_v42 = vsel %vm6394_vm1, %v2194_v59, %v2193_v52 }
 0x4e7   : > { %v2196_v13 = vpack.c.b16 %v2195_v42, %v2195_v42 }
 0x4e9   : > { %2206 = vmatmul.bf16.vlgmr.msra.gmra.mxu2 %v2196_v13  ;;  %2219 = vmatmul.bf16.vlgmr.msra.gmra.mxu3 %v2196_v13 }
 0x4ea   : > { %2232 = vmatmul.bf16.vlgmr.msrb.gmra.mxu0 %v2196_v13 }
 0x567   : > { %v2233_v17 = vpop.f32.mrf.mxu0 }
 0x568   : > { %v5628_v37 = vadd.f32 %v5151_v29, %v2233_v17 }
 0x56a   : > { %v2425_v13 = vrot.slane %v5628_v37, 1 }
 0x56c   : > { %v2207_v28 = vpop.f32.mrf.mxu2  ;;  %v2220_v25 = vpop.f32.mrf.mxu3 }
 0x56d   : > { %v2238_v51 = vrot.slane %v2207_v28, 1  ;;  %v2239_v54 = vrot.slane %v2207_v28, 2  ;;  %v2240_v39 = vrot.slane %v2207_v28, 3  ;;  %v2244_v27 = vadd.f32 %v5606_v19, %v2207_v28 }
 0x56e   : > { %v2337_v26 = vrot.slane %v2220_v25, 1  ;;  %v2338_v33 = vrot.slane %v2220_v25, 2  ;;  %v2343_v47 = vadd.f32 %v2328_v21, %v2220_v25  ;;  %v2339_v7 = vrot.slane %v2220_v25, 3 }
 0x56f   : > { %v2245_v32 = vadd.f32 %v5609_v9, %v2238_v51  ;;  %v2246_v53 = vadd.f32 %v5613_v3, %v2239_v54  ;;  %v2247_v30 = vadd.f32 %v5618_v10, %v2240_v39  ;;  %v3215_v60 = vmul.f32 -1.442695, %v2244_v27  ;;  %v2235_v43 = vpop.f32.mrf.mxu0 }
 0x570   : > { %v2344_v50 = vadd.f32 %v2337_v26, %v2329_v44  ;;  %v2345_v18 = vadd.f32 %v2338_v33, %v2330_v46  ;;  %v3219_v48 = vmul.f32 -1.442695, %v2343_v47  ;;  %v2346_v24 = vadd.f32 %v2339_v7, %v2331_v57 }
 0x571   : > { %3559 = vpow2.f32 %v3215_v60  ;;  %v3216_v31 = vmul.f32 -1.442695, %v2245_v32  ;;  %v3217_v34 = vmul.f32 -1.442695, %v2246_v53  ;;  %v3218_v49 = vmul.f32 -1.442695, %v2247_v30 }
 0x572   : > { %v3220_v55 = vmul.f32 -1.442695, %v2344_v50  ;;  %v3221_v8 = vmul.f32 -1.442695, %v2345_v18  ;;  %v3222_v52 = vmul.f32 -1.442695, %v2346_v24 }
 0x573   : > { %3561 = vpow2.f32 %v3216_v31  ;;  %v2426_v21 = vrot.slane %v5628_v37, 2  ;;  %v2427_v28 = vrot.slane %v5628_v37, 3  ;;  %v2435_v25 = vrot.slane %v5606_v19, 2 }
 0x574   : > { %3563 = vpow2.f32 %v3217_v34  ;;  %v2209_v16 = vpop.f32.mrf.mxu2  ;;  %v2222_v45 = vpop.f32.mrf.mxu3  ;;  %v2436_v54 = vrot.slane %v5609_v9, 2  ;;  %v2437_v39 = vrot.slane %v5613_v3, 2  ;;  %v2438_v27 = vrot.slane %v5618_v10, 2 }
 0x575   : > { %3565 = vpow2.f32 %v3218_v49 }
 0x576   : > { %3567 = vpow2.f32 %v3219_v48 }
 0x577   : > { %v3560_v38 = vpop.eup %3559  ;;  %3569 = vpow2.f32 %v3220_v55 }
 0x578   : > { %v5625_v14 = vadd.f32 1.0, %v3560_v38 }
 0x579   : > { %v3562_v4 = vpop.eup %3561 }
 0x57a   : > { %v3564_v61 = vpop.eup %3563  ;;  %v5630_v2 = vadd.f32 1.0, %v3562_v4  ;;  %3571 = vrcp.f32 %v5625_v14  ;;  %v2273_v29 = vand.u32 2147483647, %v5625_v14  ;;  %v2275_v17 = vand.u32 2147483648, %v5625_v14 }
 0x57b   : > { %v3566_v22 = vpop.eup %3565  ;;  %v5633_v23 = vadd.f32 1.0, %v3564_v61  ;;  %3573 = vpow2.f32 %v3221_v8  ;;  %vm2269_vm3 = vweird.f32 %v5625_v14 }
 0x57c   : > { %v5635_v59 = vadd.f32 1.0, %v3566_v22  ;;  %3575 = vrcp.f32 %v5630_v2  ;;  %v3568_v42 = vpop.eup %3567  ;;  %v2288_v51 = vand.u32 2147483647, %v5630_v2  ;;  %v2290_v26 = vand.u32 2147483648, %v5630_v2 }
 0x57d   : > { %3577 = vrcp.f32 %v5633_v23  ;;  %v3570_v44 = vpop.eup %3569  ;;  %v5652_v33 = vadd.f32 1.0, %v3568_v42  ;;  %vm5655_vm4 = vcmp.eq.f32.partialorder %v2273_v29, 8.507059e+37  ;;  %v2276_v30 = vor.u32 1.1754944e-38, %v2275_v17 }
 0x57e   : > { %3579 = vrcp.f32 %v5635_v59  ;;  %vm2284_vm14 = vweird.f32 %v5630_v2  ;;  %vm2299_vm6 = vweird.f32 %v5633_v23  ;;  %v2303_v43 = vand.u32 2147483647, %v5633_v23 }
 0x57f   : > { %3581 = vpow2.f32 %v3222_v52  ;;  %v5662_v31 = vadd.f32 1.0, %v3570_v44  ;;  %vm5666_vm8 = vcmp.eq.f32.partialorder %v2288_v51, 8.507059e+37  ;;  %v2305_v48 = vand.u32 2147483648, %v5633_v23 }
 0x580   : > { %v3572_v46 = vpop.eup %3571  ;;  %3583 = vrcp.f32 %v5652_v33  ;;  %v2291_v7 = vor.u32 1.1754944e-38, %v2290_v26  ;;  %v2318_v45 = vand.u32 2147483647, %v5635_v59  ;;  %vm5679_vm15 = vcmp.eq.f32.partialorder %v2303_v43, 8.507059e+37 }
 0x581   : > { %v3574_v47 = vpop.eup %3573  ;;  %v2265_v32 = vmul.f32 %v3572_v46, %v5625_v14  ;;  %vm2270_vm2 = vweird.f32 %v3572_v46  ;;  %vm2314_vm7 = vweird.f32 %v5635_v59  ;;  %v2320_v52 = vand.u32 2147483648, %v5635_v59 }
 0x582   : > { %v3576_v60 = vpop.eup %3575  ;;  %v5675_v55 = vadd.f32 1.0, %v3574_v47  ;;  %3585 = vrcp.f32 %v5662_v31  ;;  %vm2271_vm11 = vmor %vm2269_vm3, %vm2270_vm2  ;;  %v2306_v26 = vor.u32 1.1754944e-38, %v2305_v48  ;;  %vm5698_vm9 = vcmp.eq.f32.partialorder %v2318_v45, 8.507059e+37 }
 0x583   : > { %v3578_v34 = vpop.eup %3577  ;;  %v2266_v49 = vsub.f32 1.0, %v2265_v32  ;;  %v2280_v50 = vmul.f32 %v3576_v60, %v5630_v2  ;;  %vm2285_vm5 = vweird.f32 %v3576_v60  ;;  %v2321_v48 = vor.u32 1.1754944e-38, %v2320_v52 }
 0x584   : > { %v5671_v57 = vpop.eup %3579  ;;  %v2295_v16 = vmul.f32 %v3578_v34, %v5633_v23  ;;  %vm2300_vm0 = vweird.f32 %v3578_v34  ;;  %3587 = vrcp.f32 %v5675_v55  ;;  %vm2286_vm13 = vmor %vm2284_vm14, %vm2285_vm5  ;;  %vm2368_vm1 = vweird.f32 %v5652_v33 }
 0x585   : > { %v2267_v38 = vmul.f32 %v3572_v46, %v2266_v49  ;;  %v2281_v8 = vsub.f32 1.0, %v2280_v50  ;;  %v2310_v24 = vmul.f32 %v5671_v57, %v5635_v59  ;;  %v3582_v4 = vpop.eup %3581  ;;  %vm2301_vm12 = vmor %vm2299_vm6, %vm2300_vm0  ;;  %vm2315_vm10 = vweird.f32 %v5671_v57 }
 0x586   : > { %v2296_v61 = vsub.f32 1.0, %v2295_v16  ;;  %v5686_v44 = vpop.eup %3583  ;;  %vm5725_vm3 = vmor %vm2314_vm7, %vm2315_vm10  ;;  %v2387_v19 = vand.u32 2147483647, %v5662_v31  ;;  %v2404_v3 = vand.u32 2147483648, %v5675_v55  ;;  %vm2398_vm5 = vweird.f32 %v5675_v55 }
 0x587   : > { %v2268_v42 = vadd.f32 %v3572_v46, %v2267_v38  ;;  %v2282_v29 = vmul.f32 %v3576_v60, %v2281_v8  ;;  %v2311_v17 = vsub.f32 1.0, %v2310_v24  ;;  %v2364_v49 = vmul.f32 %v5686_v44, %v5652_v33 }
 0x588   : > { %v2297_v51 = vmul.f32 %v3578_v34, %v2296_v61  ;;  %v5705_v8 = vadd.f32 1.0, %v3582_v4  ;;  %v3586_v53 = vpop.eup %3585  ;;  %v2372_v4 = vand.u32 2147483647, %v5652_v33  ;;  %vm2369_vm14 = vweird.f32 %v5686_v44 }
 0x589   : > { %v2272_v47 = vsel %vm2271_vm11, %v3572_v46, %v2268_v42  ;;  %v2283_v32 = vadd.f32 %v3576_v60, %v2282_v29  ;;  %v2312_v43 = vmul.f32 %v5671_v57, %v2311_v17  ;;  %v2365_v24 = vsub.f32 1.0, %v2364_v49  ;;  %vm5748_vm2 = vmor %vm2368_vm1, %vm2369_vm14 }
 0x58a   : > { %v2277_v50 = vsel %vm5655_vm4, %v2276_v30, %v2272_v47  ;;  %v2298_v14 = vadd.f32 %v3578_v34, %v2297_v51  ;;  %v3588_v61 = vpop.eup %3587  ;;  %v2379_v52 = vmul.f32 %v3586_v53, %v5662_v31  ;;  %v2374_v42 = vand.u32 2147483648, %v5652_v33 }
 0x58b   : > { %v2287_v38 = vsel %vm2286_vm13, %v3576_v60, %v2283_v32  ;;  %v2431_v46 = vmul.f32 %v5628_v37, %v2277_v50  ;;  %v2313_v45 = vadd.f32 %v5671_v57, %v2312_v43  ;;  %vm2383_vm4 = vweird.f32 %v5662_v31 }
 0x58c   : > { %v2292_v2 = vsel %vm5666_vm8, %v2291_v7, %v2287_v38  ;;  %v2302_v30 = vsel %vm2301_vm12, %v3578_v34, %v2298_v14  ;;  %v2366_v7 = vmul.f32 %v5686_v44, %v2365_v24  ;;  %v2394_v29 = vmul.f32 %v3588_v61, %v5675_v55 }
 0x58d   : > { %v2307_v60 = vsel %vm5679_vm15, %v2306_v26, %v2302_v30  ;;  %v2432_v23 = vmul.f32 %v2425_v13, %v2292_v2  ;;  %v2443_v34 = vadd.f32 %v2435_v25, %v2431_v46  ;;  %v2380_v25 = vsub.f32 1.0, %v2379_v52 }
 0x58e   : > { %v2433_v18 = vmul.f32 %v2426_v21, %v2307_v60  ;;  %v2317_v21 = vsel %vm5725_vm3, %v5671_v57, %v2313_v45  ;;  %v2367_v9 = vadd.f32 %v5686_v44, %v2366_v7  ;;  %vm2384_vm6 = vweird.f32 %v3586_v53 }
 0x58f   : > { %v2444_v13 = vadd.f32 %v2436_v54, %v2432_v23  ;;  %v2389_v54 = vand.u32 2147483648, %v5662_v31  ;;  %v2381_v17 = vmul.f32 %v3586_v53, %v2380_v25  ;;  %v2395_v51 = vsub.f32 1.0, %v2394_v29  ;;  %vm2385_vm15 = vmor %vm2383_vm4, %vm2384_vm6 }
 0x590   : > { %v2445_v59 = vadd.f32 %v2437_v39, %v2433_v18  ;;  %v2322_v57 = vsel %vm5698_vm9, %v2321_v48, %v2317_v21  ;;  %vm2399_vm8 = vweird.f32 %v3588_v61  ;;  %v2402_v32 = vand.u32 2147483647, %v5675_v55 }
 0x591   : > { %3589 = vtanh.f32 %v2444_v13  ;;  %v2382_v26 = vadd.f32 %v3586_v53, %v2381_v17  ;;  %v2396_v47 = vmul.f32 %v3588_v61, %v2395_v51  ;;  %v2371_v43 = vsel %vm5748_vm2, %v5686_v44, %v2367_v9  ;;  %vm2400_vm0 = vmor %vm2398_vm5, %vm2399_vm8 }
 0x592   : > { %3591 = vtanh.f32 %v2443_v34  ;;  %v2375_v49 = vor.u32 1.1754944e-38, %v2374_v42  ;;  %vm2388_vm7 = vcmp.eq.f32.partialorder %v2387_v19, 8.507059e+37  ;;  %v2390_v33 = vor.u32 1.1754944e-38, %v2389_v54 }
 0x593   : > { %3593 = vtanh.f32 %v2445_v59  ;;  %v2434_v50 = vmul.f32 %v2427_v28, %v2322_v57  ;;  %v2386_v14 = vsel %vm2385_vm15, %v3586_v53, %v2382_v26  ;;  %v2397_v16 = vadd.f32 %v3588_v61, %v2396_v47 }
 0x594   : > { %3595 = vrcp.f32 %v5705_v8  ;;  %vm2373_vm11 = vcmp.eq.f32.partialorder %v2372_v4, 8.507059e+37  ;;  %v2405_v38 = vor.u32 1.1754944e-38, %v2404_v3  ;;  %v2391_v46 = vsel %vm2388_vm7, %v2390_v33, %v2386_v14 }
 0x595   : > { %v2376_v24 = vsel %vm2373_vm11, %v2375_v49, %v2371_v43  ;;  %vm2403_vm13 = vcmp.eq.f32.partialorder %v2402_v32, 8.507059e+37  ;;  %v2401_v31 = vsel %vm2400_vm0, %v3588_v61, %v2397_v16  ;;  %v2452_v2 = vsub.f32 1.0, %v2391_v46 }
 0x596   : > { %v2406_v45 = vsel %vm2403_vm13, %v2405_v38, %v2401_v31  ;;  %v2446_v37 = vadd.f32 %v2438_v27, %v2434_v50  ;;  %v2460_v55 = vmul.f32 %v2391_v46, %v5584_v12  ;;  %v2451_v4 = vsub.f32 1.0, %v2376_v24  ;;  %v5799_v31 = vld [vmem:[%s3754_s6 + $0x37] ss:$8 sm:$0x7] }
 0x597   : > { %v3590_v48 = vpop.eup %3589  ;;  %v2453_v28 = vsub.f32 1.0, %v2406_v45  ;;  %v2461_v34 = vmul.f32 %v2406_v45, %v5594_v36  ;;  %v2417_v22 = vand.u32 2147483647, %v5705_v8  ;;  %v2419_v10 = vand.u32 2147483648, %v5705_v8 }
 0x598   : > { %v3592_v44 = vpop.eup %3591  ;;  %v2456_v53 = vmul.f32 %v3590_v48, %v2452_v2  ;;  %3597 = vtanh.f32 %v2446_v37  ;;  %v2459_v42 = vmul.f32 %v2376_v24, %v5586_v40  ;;  %vm2413_vm12 = vweird.f32 %v5705_v8  ;;  %v5796_v24 = vld [vmem:[%s3754_s6 + $0x1f] ss:$8 sm:$0x7] }
 0x599   : > { %v3594_v30 = vpop.eup %3593  ;;  %v2455_v52 = vmul.f32 %v3592_v44, %v2451_v4  ;;  %v2420_v25 = vor.u32 1.1754944e-38, %v2419_v10  ;;  %vm2418_vm1 = vcmp.eq.f32.partialorder %v2417_v22, 8.507059e+37  ;;  %vm6407_vm3 = vcmask 1041409   ;;  %v5793_v44 = vld [vmem:[%s3754_s6 + $0x7] ss:$8 sm:$0x7] }
 0x59a   : > { %v3596_v60 = vpop.eup %3595  ;;  %v2457_v18 = vmul.f32 %v3594_v30, %v2453_v28  ;;  %v5768_v7 = vadd.f32 %v2460_v55, %v2456_v53  ;;  %vm6408_vm4 = vcmask 1042434   ;;  %vm6409_vm14 = vcmask 1043459   ;;  %v5802_v2 = vld [vmem:[%s3754_s6 + $0x4f] ss:$8 sm:$0x7] }
 0x59b   : > { %v2409_v23 = vmul.f32 %v3596_v60, %v5705_v8  ;;  %vm2414_vm9 = vweird.f32 %v3596_v60  ;;  %v5778_v59 = vadd.f32 %v2459_v42, %v2455_v52  ;;  %v6410_v53 = vld [vmem:[#allocation14_spill] sm:$0xff]  ;;  %vm2848_vm6 = vcmask 1040384   ;;  %v6412_v22 = vld [vmem:[#allocation20_spill] sm:$0xff] }
 0x59c   : > { %v5772_v27 = vadd.f32 %v2461_v34, %v2457_v18  ;;  %v2476_v19 = vpack.c.bf16 %v5768_v7, %v5768_v7  ;;  %vm2415_vm10 = vmor %vm2413_vm12, %vm2414_vm9  ;;  %v2768_v55 = vperm.slane %v6410_v53, 0  ;;  %v2770_v10 = vperm.slane %v6412_v22, 0 }
 0x59d   : > { %v2410_v61 = vsub.f32 1.0, %v2409_v23  ;;  %v2475_v3 = vpack.c.bf16 %v5778_v59, %v5778_v59  ;;  %v6411_v23 = vld [vmem:[#allocation19_spill] sm:$0xff]  ;;  %vm2853_vm8 = vcmask 1041408   ;;  %vm2858_vm2 = vcmask 1042432  }
 0x59e   : > { %v2477_v29 = vpack.c.bf16 %v5772_v27, %v5772_v27  ;;  %v2484_v54 = vunpack.c.l.b16 %v2476_v19  ;;  %v3598_v17 = vpop.eup %3597  ;;  %v2769_v4 = vperm.slane %v6411_v23, 0  ;;  %v2625_v19 = vrot.slane %v5793_v44, 1 }
 0x59f   : > { %v2411_v13 = vmul.f32 %v3596_v60, %v2410_v61  ;;  %v2483_v43 = vunpack.c.l.b16 %v2475_v3  ;;  %v2794_v22 = vperm.slane %v5074_v5, 0  ;;  %vm2863_vm15 = vcmask 1043456  }
 0x5a0   : > { %v2485_v39 = vunpack.c.l.b16 %v2477_v29  ;;  %v2487_v47 = vrot.slane %v2484_v54, 7 }
 0x5a1   : > { %v2412_v21 = vadd.f32 %v3596_v60, %v2411_v13  ;;  %v6413_v13 = vld [vmem:[#allocation21_spill] sm:$0xff] }
 0x5a2   : > { %v2489_v49 = vrot.slane %v2485_v39, 6  ;;  %v2488_v50 = vsel %vm6407_vm3, %v2487_v47, %v2483_v43  ;;  %v2771_v42 = vperm.slane %v6413_v13, 0  ;;  %v6415_v43 = vld [vmem:[#allocation16_spill] sm:$0xff] }
 0x5a3   : > { %v2416_v9 = vsel %vm2415_vm10, %v3596_v60, %v2412_v21  ;;  %v2626_v21 = vrot.slane %v5796_v24, 1 }
 0x5a4   : > { %v2421_v51 = vsel %vm2418_vm1, %v2420_v25, %v2416_v9  ;;  %v2490_v16 = vsel %vm6408_vm4, %v2489_v49, %v2488_v50  ;;  %v2627_v9 = vrot.slane %v5799_v31, 1  ;;  %v2850_v49 = vsel %vm2848_vm6, %v6415_v43, %v2769_v4 }
 0x5a5   : > { %v2454_v57 = vsub.f32 1.0, %v2421_v51  ;;  %v2462_v8 = vmul.f32 %v2421_v51, %v5596_v56  ;;  %v2628_v51 = vrot.slane %v5802_v2, 1  ;;  %v2782_v4 = vperm.slane %v4768_v1, 0 }
 0x5a7   : > { %v2458_v26 = vmul.f32 %v3598_v17, %v2454_v57 }
 0x5a9   : > { %v5785_v32 = vadd.f32 %v2462_v8, %v2458_v26  ;;  %v6414_v8 = vld [vmem:[#allocation15_spill] sm:$0xff] }
 0x5aa   : > { %v2849_v47 = vsel %vm2848_vm6, %v6414_v8, %v2768_v55 }
 0x5ab   : > { %v2478_v33 = vpack.c.bf16 %v5785_v32, %v5785_v32 }
 0x5ad   : > { %v2486_v14 = vunpack.c.l.b16 %v2478_v33 }
 0x5af   : > { %v2491_v48 = vrot.slane %v2486_v14, 5  ;;  %v6416_v14 = vld [vmem:[#allocation17_spill] sm:$0xff] }
 0x5b1   : > { %v2492_v38 = vsel %vm6409_vm14, %v2491_v48, %v2490_v16  ;;  %v2851_v16 = vsel %vm2848_vm6, %v6416_v14, %v2770_v10  ;;  %v6417_v48 = vld [vmem:[#allocation18_spill] sm:$0xff]  ;;  %v2795_v10 = vperm.slane %v5076_v6, 0 }
 0x5b2   : > { %v2493_v46 = vpack.c.b16 %v2492_v38, %v2492_v38  ;;  %v2852_v38 = vsel %vm2848_vm6, %v6417_v48, %v2771_v42  ;;  %v2856_v5 = vsel %vm2853_vm8, %v2851_v16, %v2782_v4  ;;  %v2733_v48 = vrot.slane %v5796_v24, 2 }
 0x5b4   : > { %2503 = vmatmul.bf16.vlgmr.msrb.gmra.mxu1 %v2493_v46  ;;  %2516 = vmatmul.bf16.vlgmr.msrb.gmra.mxu2 %v2493_v46 }
 0x5b5   : > { %2529 = vmatmul.bf16.vlgmr.msrb.gmra.mxu3 %v2493_v46 }
 0x631   : > { %v2504_v30 = vpop.f32.mrf.mxu1 }
 0x632   : > { %v2535_v45 = vrot.slane %v2504_v30, 1  ;;  %v2536_v60 = vrot.slane %v2504_v30, 2  ;;  %v2537_v37 = vrot.slane %v2504_v30, 3  ;;  %v2541_v28 = vadd.f32 %v5793_v44, %v2504_v30 }
 0x634   : > { %v2542_v18 = vadd.f32 %v5796_v24, %v2535_v45  ;;  %v2543_v34 = vadd.f32 %v5799_v31, %v2536_v60  ;;  %v2544_v61 = vadd.f32 %v5802_v2, %v2537_v37  ;;  %v3227_v52 = vmul.f32 -1.442695, %v2541_v28 }
 0x635   : > { %v2780_v45 = vperm.slane %v4774_v58, 0  ;;  %v2781_v60 = vperm.slane %v4764_v0, 0  ;;  %v2793_v58 = vperm.slane %v5071_v63, 0 }
 0x636   : > { %3599 = vpow2.f32 %v3227_v52  ;;  %v3228_v25 = vmul.f32 -1.442695, %v2542_v18  ;;  %v3229_v29 = vmul.f32 -1.442695, %v2543_v34  ;;  %v3230_v54 = vmul.f32 -1.442695, %v2544_v61 }
 0x637   : > { %v2517_v17 = vpop.f32.mrf.mxu2  ;;  %v2783_v18 = vperm.slane %v4781_v62, 0  ;;  %v2792_v52 = vperm.slane %v5068_v41, 0  ;;  %v2804_v62 = vperm.slane %v5373_v20, 0  ;;  %v2854_v63 = vsel %vm2853_vm8, %v2849_v47, %v2780_v45 }
 0x638   : > { %3601 = vpow2.f32 %v3228_v25  ;;  %v2634_v57 = vrot.slane %v2517_v17, 1  ;;  %v2635_v3 = vrot.slane %v2517_v17, 2  ;;  %v2636_v39 = vrot.slane %v2517_v17, 3  ;;  %v2530_v26 = vpop.f32.mrf.mxu3 }
 0x639   : > { %3603 = vpow2.f32 %v3229_v29  ;;  %v2640_v33 = vadd.f32 %v2625_v19, %v2517_v17  ;;  %v2506_v50 = vpop.f32.mrf.mxu1  ;;  %v2857_v25 = vsel %vm2853_vm8, %v2852_v38, %v2783_v18  ;;  %v2859_v29 = vsel %vm2858_vm2, %v2854_v63, %v2792_v52 }
 0x63a   : > { %v2641_v46 = vadd.f32 %v2634_v57, %v2626_v21  ;;  %v2642_v30 = vadd.f32 %v2635_v3, %v2627_v9  ;;  %3605 = vpow2.f32 %v3230_v54  ;;  %v2643_v53 = vadd.f32 %v2636_v39, %v2628_v51  ;;  %v3641_v51 = vld [vmem:[%s6158_s2] ss:$0 sm:$0xff] }
 0x63b   : > { %v3231_v37 = vmul.f32 -1.442695, %v2640_v33  ;;  %v2855_v21 = vsel %vm2853_vm8, %v2850_v49, %v2781_v60  ;;  %v5850_v54 = vsel %vm2858_vm2, %v2856_v5, %v2794_v22  ;;  %v5853_v17 = vsel %vm2858_vm2, %v2857_v25, %v2795_v10 }
 0x63c   : > { %v3600_v28 = vpop.eup %3599  ;;  %v3232_v55 = vmul.f32 -1.442695, %v2641_v46  ;;  %v3233_v23 = vmul.f32 -1.442695, %v2642_v30  ;;  %v3234_v41 = vmul.f32 -1.442695, %v2643_v53  ;;  %v5846_v9 = vsel %vm2858_vm2, %v2855_v21, %v2793_v58 }
 0x63d   : > { %v5828_v34 = vadd.f32 1.0, %v3600_v28  ;;  %3607 = vpow2.f32 %v3231_v37  ;;  %v5859_v57 = vadd.f32 %v3641_v51, %v2530_v26  ;;  %v5863_v8 = vsel %vm2863_vm15, %v2859_v29, %v2804_v62 }
 0x63e   : > { %v3602_v61 = vpop.eup %3601  ;;  %3609 = vpow2.f32 %v3232_v55  ;;  %v2732_v50 = vrot.slane %v5793_v44, 2 }
 0x63f   : > { %v3604_v0 = vpop.eup %3603  ;;  %v5834_v13 = vadd.f32 1.0, %v3602_v61  ;;  %3611 = vrcp.f32 %v5828_v34  ;;  %v2519_v1 = vpop.f32.mrf.mxu2  ;;  %v2722_v45 = vrot.slane %v5859_v57, 1  ;;  %v2570_v28 = vand.u32 2147483647, %v5828_v34 }
 0x640   : > { %v5838_v42 = vadd.f32 1.0, %v3604_v0  ;;  %3613 = vpow2.f32 %v3233_v23  ;;  %v2532_v19 = vpop.f32.mrf.mxu3  ;;  %v3606_v6 = vpop.eup %3605  ;;  %v2572_v53 = vand.u32 2147483648, %v5828_v34  ;;  %v2723_v55 = vrot.slane %v5859_v57, 2 }
 0x641   : > { %3615 = vrcp.f32 %v5834_v13  ;;  %v5874_v16 = vadd.f32 1.0, %v3606_v6  ;;  %vm2566_vm7 = vweird.f32 %v5828_v34  ;;  %v2587_v4 = vand.u32 2147483648, %v5834_v13 }
 0x642   : > { %3617 = vrcp.f32 %v5838_v42  ;;  %v2585_v58 = vand.u32 2147483647, %v5834_v13  ;;  %v2602_v0 = vand.u32 2147483648, %v5838_v42  ;;  %vm2581_vm5 = vweird.f32 %v5834_v13 }
 0x643   : > { %v3608_v20 = vpop.eup %3607  ;;  %3619 = vpow2.f32 %v3234_v41  ;;  %v2600_v1 = vand.u32 2147483647, %v5838_v42  ;;  %vm5910_vm11 = vcmp.eq.f32.partialorder %v2570_v28, 8.507059e+37  ;;  %v2573_v21 = vor.u32 1.1754944e-38, %v2572_v53 }
 0x644   : > { %v3610_v3 = vpop.eup %3609  ;;  %v5865_v47 = vadd.f32 1.0, %v3608_v20  ;;  %v2588_v20 = vor.u32 1.1754944e-38, %v2587_v4  ;;  %vm2596_vm0 = vweird.f32 %v5838_v42  ;;  %vm5927_vm9 = vcmp.eq.f32.partialorder %v2585_v58, 8.507059e+37 }
 0x645   : > { %v5867_v43 = vpop.eup %3611  ;;  %v5872_v14 = vadd.f32 1.0, %v3610_v3  ;;  %vm5935_vm12 = vcmp.eq.f32.partialorder %v2600_v1, 8.507059e+37  ;;  %vm2611_vm3 = vweird.f32 %v5874_v16 }
 0x646   : > { %v3614_v26 = vpop.eup %3613  ;;  %3621 = vrcp.f32 %v5865_v47  ;;  %v2562_v37 = vmul.f32 %v5867_v43, %v5828_v34  ;;  %v2671_v41 = vand.u32 2147483648, %v5865_v47  ;;  %v2669_v51 = vand.u32 2147483647, %v5865_v47 }
 0x647   : > { %v5880_v30 = vadd.f32 1.0, %v3614_v26  ;;  %3623 = vrcp.f32 %v5872_v14  ;;  %v5884_v60 = vpop.eup %3615  ;;  %v2686_v29 = vand.u32 2147483648, %v5872_v14  ;;  %vm2567_vm13 = vweird.f32 %v5867_v43 }
 0x648   : > { %v5891_v23 = vpop.eup %3617  ;;  %v2563_v52 = vsub.f32 1.0, %v2562_v37  ;;  %v2577_v10 = vmul.f32 %v5884_v60, %v5834_v13  ;;  %v2603_v37 = vor.u32 1.1754944e-38, %v2602_v0  ;;  %v2684_v53 = vand.u32 2147483647, %v5872_v14  ;;  %vm5952_vm10 = vmor %vm2566_vm7, %vm2567_vm13 }
 0x649   : > { %3625 = vrcp.f32 %v5880_v30  ;;  %v3620_v61 = vpop.eup %3619  ;;  %v2592_v5 = vmul.f32 %v5891_v23, %v5838_v42  ;;  %v5941_v58 = vor.u32 1.1754944e-38, %v2671_v41  ;;  %v5945_v38 = vor.u32 1.1754944e-38, %v2686_v29 }
 0x64a   : > { %3627 = vrcp.f32 %v5874_v16  ;;  %v5900_v22 = vadd.f32 1.0, %v3620_v61  ;;  %v2564_v19 = vmul.f32 %v5867_v43, %v2563_v52  ;;  %v2578_v61 = vsub.f32 1.0, %v2577_v10 }
 0x64b   : > { %v2593_v52 = vsub.f32 1.0, %v2592_v5  ;;  %vm2582_vm1 = vweird.f32 %v5884_v60  ;;  %vm2665_vm4 = vweird.f32 %v5865_v47  ;;  %vm2680_vm6 = vweird.f32 %v5872_v14 }
 0x64c   : > { %v5906_v62 = vpop.eup %3621  ;;  %3629 = vrcp.f32 %v5900_v22  ;;  %v2565_v4 = vadd.f32 %v5867_v43, %v2564_v19  ;;  %v2579_v1 = vmul.f32 %v5884_v60, %v2578_v61  ;;  %v2701_v19 = vand.u32 2147483648, %v5880_v30  ;;  %vm2583_vm13 = vmor %vm2581_vm5, %vm2582_vm1 }
 0x64d   : > { %v5916_v6 = vpop.eup %3623  ;;  %v2661_v25 = vmul.f32 %v5906_v62, %v5865_v47  ;;  %v2594_v34 = vmul.f32 %v5891_v23, %v2593_v52  ;;  %vm2666_vm14 = vweird.f32 %v5906_v62  ;;  %vm2597_vm8 = vweird.f32 %v5891_v23 }
 0x64e   : > { %v2676_v3 = vmul.f32 %v5916_v6, %v5872_v14  ;;  %v2569_v5 = vsel %vm5952_vm10, %v5867_v43, %v2565_v4  ;;  %v2580_v29 = vadd.f32 %v5884_v60, %v2579_v1  ;;  %vm2681_vm2 = vweird.f32 %v5916_v6  ;;  %vm2598_vm5 = vmor %vm2596_vm0, %vm2597_vm8 }
 0x64f   : > { %v5931_v28 = vpop.eup %3625  ;;  %v2662_v39 = vsub.f32 1.0, %v2661_v25  ;;  %vm2695_vm7 = vweird.f32 %v5880_v30  ;;  %v2574_v4 = vsel %vm5910_vm11, %v2573_v21, %v2569_v5  ;;  %vm5987_vm10 = vcmp.eq.f32.partialorder %v2669_v51, 8.507059e+37 }
 0x650   : > { %v5939_v49 = vpop.eup %3627  ;;  %v2677_v46 = vsub.f32 1.0, %v2676_v3  ;;  %v2691_v0 = vmul.f32 %v5931_v28, %v5880_v30  ;;  %v2584_v52 = vsel %vm2583_vm13, %v5884_v60, %v2580_v29  ;;  %v2617_v13 = vand.u32 2147483648, %v5874_v16 }
 0x651   : > { %v2607_v3 = vmul.f32 %v5939_v49, %v5874_v16  ;;  %v2663_v61 = vmul.f32 %v5906_v62, %v2662_v39  ;;  %v2595_v39 = vadd.f32 %v5891_v23, %v2594_v34  ;;  %vm2612_vm1 = vweird.f32 %v5939_v49 }
 0x652   : > { %v2692_v41 = vsub.f32 1.0, %v2691_v0  ;;  %v5965_v25 = vpop.eup %3629  ;;  %v2678_v0 = vmul.f32 %v5916_v6, %v2677_v46  ;;  %vm2868_vm11 = vcmask 1044480   ;;  %vm5998_vm13 = vcmp.eq.f32.partialorder %v2684_v53, 8.507059e+37  ;;  %vm2613_vm8 = vmor %vm2611_vm3, %vm2612_vm1 }
 0x653   : > { %v2706_v43 = vmul.f32 %v5965_v25, %v5900_v22  ;;  %v2608_v46 = vsub.f32 1.0, %v2607_v3  ;;  %v2589_v63 = vsel %vm5927_vm9, %v2588_v20, %v2584_v52  ;;  %v2599_v21 = vsel %vm2598_vm5, %v5891_v23, %v2595_v39  ;;  %vm6041_vm3 = vmor %vm2680_vm6, %vm2681_vm2 }
 0x654   : > { %v2693_v1 = vmul.f32 %v5931_v28, %v2692_v41  ;;  %v2615_v41 = vand.u32 2147483647, %v5874_v16  ;;  %v2664_v42 = vadd.f32 %v5906_v62, %v2663_v61  ;;  %v2716_v34 = vand.u32 2147483648, %v5900_v22 }
 0x655   : > { %v2707_v18 = vsub.f32 1.0, %v2706_v43  ;;  %v2609_v51 = vmul.f32 %v5939_v49, %v2608_v46  ;;  %v2604_v53 = vsel %vm5935_vm12, %v2603_v37, %v2599_v21  ;;  %v2679_v29 = vadd.f32 %v5916_v6, %v2678_v0  ;;  %vm6028_vm12 = vmor %vm2665_vm4, %vm2666_vm14 }
 0x656   : > { %vm2696_vm0 = vweird.f32 %v5931_v28  ;;  %v2728_v23 = vmul.f32 %v5859_v57, %v2574_v4  ;;  %v2694_v26 = vadd.f32 %v5931_v28, %v2693_v1  ;;  %vm2711_vm9 = vweird.f32 %v5965_v25 }
 0x657   : > { %v2708_v5 = vmul.f32 %v5965_v25, %v2707_v18  ;;  %v2610_v20 = vadd.f32 %v5939_v49, %v2609_v51  ;;  %v2618_v18 = vor.u32 1.1754944e-38, %v2617_v13  ;;  %v2729_v33 = vmul.f32 %v2722_v45, %v2589_v63  ;;  %vm6055_vm4 = vmor %vm2695_vm7, %vm2696_vm0 }
 0x658   : > { %vm2616_vm5 = vcmp.eq.f32.partialorder %v2615_v41, 8.507059e+37  ;;  %v2730_v61 = vmul.f32 %v2723_v55, %v2604_v53  ;;  %v2740_v16 = vadd.f32 %v2732_v50, %v2728_v23  ;;  %v2683_v50 = vsel %vm6041_vm3, %v5916_v6, %v2679_v29 }
 0x659   : > { %v2614_v3 = vsel %vm2613_vm8, %v5939_v49, %v2610_v20  ;;  %v2709_v47 = vadd.f32 %v5965_v25, %v2708_v5  ;;  %v2668_v49 = vsel %vm6028_vm12, %v5906_v62, %v2664_v42  ;;  %v2741_v55 = vadd.f32 %v2733_v48, %v2729_v33 }
 0x65a   : > { %v2619_v0 = vsel %vm2616_vm5, %v2618_v18, %v2614_v3  ;;  %v6436_v14 = vrot.slane %v5859_v57, 3  ;;  %v6437_v62 = vrot.slane %v5799_v31, 2  ;;  %3631 = vtanh.f32 %v2740_v16 }
 0x65b   : > { %vm2710_vm14 = vweird.f32 %v5900_v22  ;;  %v2714_v24 = vand.u32 2147483647, %v5900_v22  ;;  %v2698_v48 = vsel %vm6055_vm4, %v5931_v28, %v2694_v26  ;;  %3633 = vtanh.f32 %v2741_v55 }
 0x65c   : > { %v2731_v43 = vmul.f32 %v6436_v14, %v2619_v0  ;;  %v2742_v4 = vadd.f32 %v6437_v62, %v2730_v61  ;;  %v2702_v52 = vor.u32 1.1754944e-38, %v2701_v19  ;;  %vm6075_vm6 = vmor %vm2710_vm14, %vm2711_vm9  ;;  %v2673_v31 = vsel %vm5987_vm10, %v5941_v58, %v2668_v49 }
 0x65d   : > { %v6440_v22 = vrot.slane %v5802_v2, 2  ;;  %v6441_v28 = vperm.slane %v5376_v15, 0  ;;  %v6442_v19 = vand.u32 2147483647, %v5880_v30  ;;  %v2688_v46 = vsel %vm5998_vm13, %v5945_v38, %v2683_v50 }
 0x65e   : > { %3635 = vtanh.f32 %v2742_v4  ;;  %v2713_v58 = vsel %vm6075_vm6, %v5965_v25, %v2709_v47  ;;  %v6443_v2 = vperm.slane %v5378_v35, 0  ;;  %v2717_v15 = vor.u32 1.1754944e-38, %v2716_v34 }
 0x65f   : > { %v2743_v6 = vadd.f32 %v6440_v22, %v2731_v43  ;;  %v2865_v39 = vsel %vm2863_vm15, %v5846_v9, %v6441_v28  ;;  %vm2700_vm2 = vcmp.eq.f32.partialorder %v6442_v19, 8.507059e+37  ;;  %v2807_v9 = vperm.slane %v5387_v11, 0 }
 0x660   : > { %v2866_v10 = vsel %vm2863_vm15, %v5850_v54, %v6443_v2  ;;  %v2703_v1 = vsel %vm2700_vm2, %v2702_v52, %v2698_v48  ;;  %v6444_v30 = vperm.slane %v5586_v40, 0  ;;  %vm2715_vm7 = vcmp.eq.f32.partialorder %v2714_v24, 8.507059e+37  ;;  %v3632_v60 = vpop.eup %3631 }
 0x661   : > { %3637 = vtanh.f32 %v2743_v6  ;;  %v2748_v38 = vsub.f32 1.0, %v2673_v31  ;;  %v2817_v25 = vperm.slane %v5584_v12, 0  ;;  %v2818_v35 = vperm.slane %v5594_v36, 0  ;;  %v3634_v54 = vpop.eup %3633 }
 0x662   : > { %v2869_v13 = vsel %vm2868_vm11, %v5863_v8, %v6444_v30  ;;  %v2718_v63 = vsel %vm2715_vm7, %v2717_v15, %v2713_v58  ;;  %v2749_v21 = vsub.f32 1.0, %v2688_v46  ;;  %v2819_v51 = vperm.slane %v5596_v56, 0 }
 0x663   : > { %v2750_v41 = vsub.f32 1.0, %v2703_v1  ;;  %v2752_v42 = vmul.f32 %v3632_v60, %v2748_v38  ;;  %v2756_v11 = vmul.f32 %v2673_v31, %v5778_v59  ;;  %v2828_v5 = vperm.slane %v5778_v59, 0 }
 0x664   : > { %v3636_v40 = vpop.eup %3635  ;;  %v2829_v8 = vperm.slane %v5768_v7, 0  ;;  %v2753_v34 = vmul.f32 %v3634_v54, %v2749_v21  ;;  %v2757_v53 = vmul.f32 %v2688_v46, %v5768_v7  ;;  %v2751_v12 = vsub.f32 1.0, %v2718_v63 }
 0x665   : > { %v2754_v29 = vmul.f32 %v3636_v40, %v2750_v41  ;;  %v2758_v36 = vmul.f32 %v2703_v1, %v5772_v27  ;;  %v2760_v20 = vadd.f32 %v2756_v11, %v2752_v42  ;;  %v2830_v56 = vperm.slane %v5772_v27, 0 }
 0x666   : > { %vm2873_vm10 = vcmask 1045504   ;;  %v2759_v26 = vmul.f32 %v2718_v63, %v5785_v32  ;;  %v2761_v18 = vadd.f32 %v2757_v53, %v2753_v34  ;;  %vm2878_vm1 = vcmask 1046528  }
 0x667   : > { %v3638_v23 = vpop.eup %3637  ;;  %v2762_v37 = vadd.f32 %v2758_v36, %v2754_v29  ;;  %v2840_v59 = vperm.slane %v2760_v20, 0  ;;  %2891 = vst [vmem:[#allocation1] ss:$9 sm:$0xff] %v2760_v20  ;;  %v2870_v3 = vsel %vm2868_vm11, %v2865_v39, %v2817_v25  ;;  %v2871_v7 = vsel %vm2868_vm11, %v2866_v10, %v2818_v35 }
 0x668   : > { %v2755_v33 = vmul.f32 %v3638_v23, %v2751_v12  ;;  %v2831_v61 = vperm.slane %v5785_v32, 0  ;;  %v2841_v16 = vperm.slane %v2761_v18, 0  ;;  %2893 = vst [vmem:[#allocation1 + $0x1] ss:$9 sm:$0xff] %v2761_v18  ;;  %v2874_v47 = vsel %vm2873_vm10, %v2869_v13, %v2828_v5 }
 0x669   : > { %v2842_v27 = vperm.slane %v2762_v37, 0  ;;  %v2875_v0 = vsel %vm2873_vm10, %v2870_v3, %v2829_v8  ;;  %2895 = vst [vmem:[#allocation1 + $0x2] ss:$9 sm:$0xff] %v2762_v37  ;;  %v2867_v49 = vsel %vm2863_vm15, %v5853_v17, %v2807_v9  ;;  %v2876_v55 = vsel %vm2873_vm10, %v2871_v7, %v2830_v56 }
 0x66a   : > { %v2763_v45 = vadd.f32 %v2759_v26, %v2755_v33  ;;  %v2879_v44 = vsel %vm2878_vm1, %v2874_v47, %v2840_v59  ;;  %v2880_v32 = vsel %vm2878_vm1, %v2875_v0, %v2841_v16  ;;  %v2872_v50 = vsel %vm2868_vm11, %v2867_v49, %v2819_v51 }
 0x66b   : > { %v2881_v43 = vsel %vm2878_vm1, %v2876_v55, %v2842_v27  ;;  %v3266_v62 = vpack.c.bf16 %v2880_v32, %v2879_v44  ;;  %v2877_v4 = vsel %vm2873_vm10, %v2872_v50, %v2831_v61 }
 0x66c   : > { %v2843_v14 = vperm.slane %v2763_v45, 0  ;;  %2897 = vst [vmem:[#allocation1 + $0x3] ss:$9 sm:$0xff] %v2763_v45 }
 0x66d   : > { %3267 = vst [vmem:[%s3756_s7] sm:$0xff] %v3266_v62  }
 0x66e   : > { %v2882_v24 = vsel %vm2878_vm1, %v2877_v4, %v2843_v14 }
 0x66f   : > { %v3271_v48 = vpack.c.bf16 %v2882_v24, %v2881_v43 }
 0x670   : > { %2907 = sbr.rel (!%p3738_p6) target bundleno = 1659 (0x67b), region = 63 }
 0x671   : > { %3273 = vst [vmem:[%s3756_s7 + $0x8] sm:$0xff] %v3271_v48  }
 0x673   : > { %v2898_v17 = vld [vmem:[#allocation1] sm:$0xff] }
 0x674   : > { %2900 = vst [vmem:[#allocation2] sm:$0xf] %v2898_v17  ;;  %v2929_v52 = vld [vmem:[%s3756_s7] sm:$0xf] (%p3738_p6)  ;;  %v2931_v57 = vld [vmem:[%s3756_s7 + $0x4] sm:$0xf] (%p3738_p6) }
 0x675   : > { %2930 = vst [vmem:[%s2912_s4] sm:$0xf] %v2929_v52 }
 0x676   : > { %2932 = vst [vmem:[%s2912_s4 + $0x8] sm:$0xf] %v2931_v57 }
 0x678   : > { %v2933_v31 = vld [vmem:[%s3756_s7 + $0x8] sm:$0xf]  ;;  %v2935_v22 = vld [vmem:[%s3756_s7 + $0xc] sm:$0xf] }
 0x679   : > { %2934 = vst [vmem:[%s2912_s4 + $0x10] sm:$0xf] %v2933_v31 }
 0x67a   : > { %2936 = vst [vmem:[%s2912_s4 + $0x18] sm:$0xf] %v2935_v22 }
 0x67b PF: > { %s13_s16 = sadd.s32 1, %s3680_s16   ;;  %s6445_s12 = smov %s3668_s13 }
 0x67c   : > { %p10_p12 = scmp.ge.s32.totalorder %s13_s16, 4   ;;  %s6446_s13 = smov %s3743_s22 }
 0x67d   : > { %s6447_s14 = smov %s3676_s15  ;;  %s6448_s15 = smov %s6450_s17 }
 0x67e   :  { %12 = sbr.rel (!%p10_p12) target bundleno = 3 (0x3), region = 169 }

</bundles_post_ra>
